<compile_context>
chip_gen: v7x
topology: tpu7x:2x2x1
jax: 0.10.0
libtpu: 0.0.40
codegen_flags: <defaults>
</compile_context>

<pallas_src>
import functools

import jax
import jax.numpy as jnp
from jax import lax
from jax.experimental import pallas as pl
from jax.experimental.pallas import tpu as pltpu

BN_EPS = 1e-5
LANE = 128
VMEM_LIMIT = 32 * 1024 * 1024   # <= scoped default on v5e/v6e/v7x, half of v7x physical


def _round_up(x, m):
    return ((x + m - 1) // m) * m


def _next_pow2(x):
    return 1 << (max(int(x), 1) - 1).bit_length()


def _divmod_exact(x, d):
    """Exact (x // d, x % d) for int32 vectors x >= 0 without vector integer division:
    f32 reciprocal estimate + one +/-1 correction (exact while x/d << 2**23)."""
    q = jnp.floor(x.astype(jnp.float32) * (1.0 / float(d))).astype(jnp.int32)
    r = x - q * d
    q = jnp.where(r < 0, q - 1, q)
    r = jnp.where(r < 0, r + d, r)
    q = jnp.where(r >= d, q + 1, q)
    r = jnp.where(r >= d, r - d, r)
    return q, r


def _conv_mish_stats_kernel(xlo_ref, xhi_ref, w_ref, act_ref, stats_ref, slab_ref, *,
                            tm, halo_pad, img_w, img_h, h_out, w_out, rows_total,
                            kh, kw, n_i):
    """Direct conv (single folded-K MXU matmul) + Mish + per-channel sum/sumsq."""
    c = pl.program_id(1)   # core-split index (v7x megacore); sequential on v5e/v6e
    i = pl.program_id(2)   # M-tile index within this core's range (stats reduction)

    # Stitch the current tile and its (small) halo into one contiguous f32 slab so
    # every shifted flat-row window [off, off+tm) is a static in-VMEM slice.
    slab_ref[0:tm, :] = xlo_ref[...].astype(jnp.float32)
    slab_ref[tm:tm + halo_pad, :] = xhi_ref[...].astype(jnp.float32)

    # Fold the kh*kw taps into the matmul K dimension: lane-concat the shifted
    # windows -> (tm, kh*kw*CIN_P), then one bf16 MXU matmul with f32 accumulation.
    pieces = []
    for t in range(kh * kw):                           # static unroll
        off = (t // kw) * img_w + (t % kw)             # static shift in flat-row space
        pieces.append(slab_ref[off:off + tm, :])
    xop = jnp.concatenate(pieces, axis=1).astype(jnp.bfloat16)
    acc = jnp.dot(xop, w_ref[...], preferred_element_type=jnp.float32)

    # Mish(y) = y * tanh(softplus(y)) == y * t(t+2) / (t(t+2)+2) with t = exp(y):
    # one EUP transcendental + one approximate reciprocal.
    t_ = jnp.exp(jnp.minimum(acc, 20.0))               # beyond 20 the ratio is 1.0 in f32
    num = t_ * (t_ + 2.0)
    act = acc * num * pl.reciprocal(num + 2.0, approx=True)

    # In-kernel validity mask: row (n*H + h)*W + w is a real conv output iff
    # h < Hout and w < Wout (and the row is not padding). Zeroed rows do not
    # pollute the batch statistics.
    row0 = (c * n_i + i) * tm
    rows = row0 + lax.broadcasted_iota(jnp.int32, (tm, 1), 0)
    hq, w_coord = _divmod_exact(rows, img_w)
    _, h_coord = _divmod_exact(hq, img_h)
    valid = (rows < rows_total) & (h_coord < h_out) & (w_coord < w_out)
    act = act * valid.astype(jnp.float32)

    # bf16 activation store (stats below use the f32 value).
    act_ref[...] = act.astype(act_ref.dtype)

    # One-pass BN statistics: per-channel sum / sum-of-squares accumulated across
    # the innermost ("arbitrary") M grid axis in a VMEM-resident output block.
    @pl.when(i == 0)
    def _init():
        stats_ref[...] = jnp.zeros_like(stats_ref)

    stats_ref[0:1, :] = stats_ref[0:1, :] + jnp.sum(act, axis=0, keepdims=True)
    stats_ref[1:2, :] = stats_ref[1:2, :] + jnp.sum(act * act, axis=0, keepdims=True)


@jax.jit
def basic_conv2d(x, weight, gamma, beta):
    """x: (N, Cin, H, W) f32; weight: (Cout, Cin, kh, kw) f32 (PyTorch layouts)."""
    N, Cin, H, W = x.shape
    Cout, Cin_w, kh, kw = weight.shape
    assert Cin == Cin_w
    Hout, Wout = H - kh + 1, W - kw + 1               # nn.Conv2d defaults: stride=1, pad=0

    R = N * H * W                                      # full-size flat rows (incl. margins)
    halo = (kh - 1) * W + (kw - 1)

    # ---- tiling ----
    CIN_P = _round_up(Cin, 8)
    COUT_PAD = _round_up(Cout, LANE)                   # lane-dense outputs and stores
    TCOUT = 256 if COUT_PAD % 256 == 0 else LANE       # fill 256-wide v6e/v7x MXU when possible
    nj = COUT_PAD // TCOUT
    KF = kh * kw * CIN_P                               # folded contraction depth

    HALO_PAD = _next_pow2(max(halo, 16))               # power of 2 -> divides TM
    if R >= 4096:
        TM = 1024
    elif R >= 1024:
        TM = 512
    else:
        TM = 256
    TM = max(TM, HALO_PAD)

    def _vmem_bytes(tm):                               # explicit per-step VMEM budget check
        blockio = (2 * tm * CIN_P * 2 + 2 * HALO_PAD * CIN_P * 2
                   + 2 * KF * TCOUT * 2 + 2 * tm * TCOUT * 2 + 2 * 2 * TCOUT * 4)
        scratch = (tm + HALO_PAD) * CIN_P * 4
        temps = tm * KF * (4 + 2) + 3 * tm * TCOUT * 4
        return blockio + scratch + temps

    while TM > HALO_PAD and _vmem_bytes(TM) > VMEM_LIMIT // 2:
        TM //= 2

    nc = 2 if R > TM else 1                            # v7x: real parallel axis over M halves
    M_pad = _round_up(R, nc * TM)
    ni = M_pad // (nc * TM)                            # M tiles per core

    # ---- host-side glue: layout + zero padding only (no im2col blow-up) ----
    xf = jnp.transpose(x, (0, 2, 3, 1)).reshape(R, Cin)
    xf = jnp.pad(xf, ((0, M_pad + TM - R), (0, CIN_P - Cin))).astype(jnp.bfloat16)

    # (Cout, Cin, kh, kw) -> (kh*kw*CIN_P, COUT_PAD): tap-major, channel-minor K layout
    # matching the in-kernel lane-concat order of the shifted windows.
    w_flat = jnp.transpose(weight, (2, 3, 1, 0))                       # (kh, kw, Cin, Cout)
    w_flat = jnp.pad(w_flat, ((0, 0), (0, 0), (0, CIN_P - Cin), (0, COUT_PAD - Cout)))
    w_flat = w_flat.reshape(KF, COUT_PAD).astype(jnp.bfloat16)

    kernel = functools.partial(
        _conv_mish_stats_kernel, tm=TM, halo_pad=HALO_PAD, img_w=W, img_h=H,
        h_out=Hout, w_out=Wout, rows_total=R, kh=kh, kw=kw, n_i=ni)

    act, stats = pl.pallas_call(
        kernel,
        out_shape=(
            jax.ShapeDtypeStruct((M_pad, COUT_PAD), jnp.bfloat16),     # Mish(conv) activations
            jax.ShapeDtypeStruct((2, nc * COUT_PAD), jnp.float32),     # per-core [sum; sumsq]
        ),
        grid=(nj, nc, ni),
        in_specs=[
            pl.BlockSpec((TM, CIN_P), lambda j, c, i: (c * ni + i, 0)),       # tile rows
            pl.BlockSpec((HALO_PAD, CIN_P),                                   # small halo
                         lambda j, c, i: ((c * ni + i + 1) * (TM // HALO_PAD), 0)),
            pl.BlockSpec((KF, TCOUT), lambda j, c, i: (0, j)),                # folded weights
        ],
        out_specs=[
            pl.BlockSpec((TM, TCOUT), lambda j, c, i: (c * ni + i, j)),
            pl.BlockSpec((2, TCOUT), lambda j, c, i: (0, c * nj + j)),        # VMEM-resident acc
        ],
        scratch_shapes=[pltpu.VMEM((TM + HALO_PAD, CIN_P), jnp.float32)],
        compiler_params=pltpu.CompilerParams(
            dimension_semantics=("parallel", "parallel", "arbitrary"),
            vmem_limit_bytes=VMEM_LIMIT,
        ),
    )(xf, xf, w_flat)

    # Tiny per-channel epilogue + fused BN affine in plain JAX (fuses with the
    # slice/transpose below; no second full-size Pallas pass).
    count = jnp.float32(N * Hout * Wout)
    ssum = stats.reshape(2, nc, COUT_PAD).sum(axis=1)                   # combine core halves
    mean = ssum[0, :Cout] / count
    var = jnp.maximum(ssum[1, :Cout] / count - mean * mean, 0.0)        # biased variance
    scale = gamma.astype(jnp.float32) * lax.rsqrt(var + BN_EPS)
    shift = beta.astype(jnp.float32) - mean * scale

    y = act[:R].reshape(N, H, W, COUT_PAD)[:, :Hout, :Wout, :Cout].astype(jnp.float32)
    y = y * scale.reshape(1, 1, 1, Cout) + shift.reshape(1, 1, 1, Cout)
    return jnp.transpose(y, (0, 3, 1, 2))


if __name__ == "__main__":
    key = jax.random.PRNGKey(0)
    kx, kw_key = jax.random.split(key)

    # Small shapes: batch=2, in_channels=4, out_channels=8, spatial=16, kernel=3
    N, Cin, H, W = 2, 4, 16, 16
    Cout, KH, KW = 8, 3, 3

    x = jax.random.normal(kx, (N, Cin, H, W), dtype=jnp.float32)
    weight = jax.random.normal(kw_key, (Cout, Cin, KH, KW), dtype=jnp.float32) * 0.1
    gamma = jnp.ones((Cout,), dtype=jnp.float32)    # BatchNorm2d default affine init
    beta = jnp.zeros((Cout,), dtype=jnp.float32)

    y = basic_conv2d(x, weight, gamma, beta)
    jax.block_until_ready(y)
    assert y.shape == (N, Cout, H - KH + 1, W - KW + 1)

    # Self-check against a pure-JAX f32 reference (conv inputs rounded to bf16 to
    # match the kernel's MXU operands; tolerance also covers the bf16 activation
    # store and the approximate reciprocal in Mish).
    x_r = x.astype(jnp.bfloat16).astype(jnp.float32)
    w_r = weight.astype(jnp.bfloat16).astype(jnp.float32)
    yc = lax.conv_general_dilated(x_r, w_r, (1, 1), "VALID",
                                  dimension_numbers=("NCHW", "OIHW", "NCHW"))
    yc = yc * jnp.tanh(jax.nn.softplus(yc))
    mu = jnp.mean(yc, axis=(0, 2, 3), keepdims=True)
    va = jnp.mean((yc - mu) ** 2, axis=(0, 2, 3), keepdims=True)
    y_ref = (yc - mu) * lax.rsqrt(va + BN_EPS)
    y_ref = y_ref * gamma.reshape(1, -1, 1, 1) + beta.reshape(1, -1, 1, 1)
    err = float(jnp.max(jnp.abs(y - y_ref)))
    assert err < 8e-2, f"max abs error vs reference: {err}"

    print("KERNEL_OK")
</pallas_src>

<mosaic_0001>
module attributes {stable_mosaic.version = 11 : i64} {
  func.func @_conv_mish_stats_kernel(%arg0: i32, %arg1: i32, %arg2: i32, %arg3: memref<256x8xbf16, #tpu.memory_space<vmem>>, %arg4: memref<64x8xbf16, #tpu.memory_space<vmem>>, %arg5: memref<72x128xbf16, #tpu.memory_space<vmem>>, %arg6: memref<256x128xbf16, #tpu.memory_space<vmem>>, %arg7: memref<2x128xf32, #tpu.memory_space<vmem>>, %arg8: memref<320x8xf32, #tpu.memory_space<vmem>>) attributes {dimension_semantics = [#tpu.dimension_semantics<parallel>, #tpu.dimension_semantics<parallel>, #tpu.dimension_semantics<arbitrary>], iteration_bounds = array<i64: 1, 2, 1>, scalar_prefetch = 0 : i64, scratch_operands = 1 : i64, tpu.core_type = #tpu.core_type<tc>, window_params = [{transform_indices = @transform_0, window_bounds = array<i64: 256, 8>}, {transform_indices = @transform_1, window_bounds = array<i64: 64, 8>}, {transform_indices = @transform_2, window_bounds = array<i64: 72, 128>}, {transform_indices = @transform_3, window_bounds = array<i64: 256, 128>}, {transform_indices = @transform_4, window_bounds = array<i64: 2, 128>}]} {
    %c0 = arith.constant 0 : index
    %c0_0 = arith.constant 0 : index
    %0 = vector.load %arg3[%c0, %c0_0] : memref<256x8xbf16, #tpu.memory_space<vmem>>, vector<256x8xbf16>
    %1 = arith.extf %0 : vector<256x8xbf16> to vector<256x8xf32>
    %c0_1 = arith.constant 0 : index
    %c0_2 = arith.constant 0 : index
    %2 = vector.load %arg8[%c0_1, %c0_2] : memref<320x8xf32, #tpu.memory_space<vmem>>, vector<256x8xf32>
    tpu.vector_store %arg8[%c0_1, %c0_2], %1 {strides = array<i32>} : memref<320x8xf32, #tpu.memory_space<vmem>>, vector<256x8xf32>,
    %c0_3 = arith.constant 0 : index
    %c0_4 = arith.constant 0 : index
    %3 = vector.load %arg4[%c0_3, %c0_4] : memref<64x8xbf16, #tpu.memory_space<vmem>>, vector<64x8xbf16>
    %4 = arith.extf %3 : vector<64x8xbf16> to vector<64x8xf32>
    %c256 = arith.constant 256 : index
    %c0_5 = arith.constant 0 : index
    %5 = vector.load %arg8[%c256, %c0_5] : memref<320x8xf32, #tpu.memory_space<vmem>>, vector<64x8xf32>
    tpu.vector_store %arg8[%c256, %c0_5], %4 {strides = array<i32>} : memref<320x8xf32, #tpu.memory_space<vmem>>, vector<64x8xf32>,
    %c0_6 = arith.constant 0 : index
    %c0_7 = arith.constant 0 : index
    %6 = vector.load %arg8[%c0_6, %c0_7] : memref<320x8xf32, #tpu.memory_space<vmem>>, vector<256x8xf32>
    %c1 = arith.constant 1 : index
    %c0_8 = arith.constant 0 : index
    %7 = vector.load %arg8[%c1, %c0_8] : memref<320x8xf32, #tpu.memory_space<vmem>>, vector<256x8xf32>
    %c2 = arith.constant 2 : index
    %c0_9 = arith.constant 0 : index
    %8 = vector.load %arg8[%c2, %c0_9] : memref<320x8xf32, #tpu.memory_space<vmem>>, vector<256x8xf32>
    %c16 = arith.constant 16 : index
    %c0_10 = arith.constant 0 : index
    %9 = vector.load %arg8[%c16, %c0_10] : memref<320x8xf32, #tpu.memory_space<vmem>>, vector<256x8xf32>
    %c17 = arith.constant 17 : index
    %c0_11 = arith.constant 0 : index
    %10 = vector.load %arg8[%c17, %c0_11] : memref<320x8xf32, #tpu.memory_space<vmem>>, vector<256x8xf32>
    %c18 = arith.constant 18 : index
    %c0_12 = arith.constant 0 : index
    %11 = vector.load %arg8[%c18, %c0_12] : memref<320x8xf32, #tpu.memory_space<vmem>>, vector<256x8xf32>
    %c32 = arith.constant 32 : index
    %c0_13 = arith.constant 0 : index
    %12 = vector.load %arg8[%c32, %c0_13] : memref<320x8xf32, #tpu.memory_space<vmem>>, vector<256x8xf32>
    %c33 = arith.constant 33 : index
    %c0_14 = arith.constant 0 : index
    %13 = vector.load %arg8[%c33, %c0_14] : memref<320x8xf32, #tpu.memory_space<vmem>>, vector<256x8xf32>
    %c34 = arith.constant 34 : index
    %c0_15 = arith.constant 0 : index
    %14 = vector.load %arg8[%c34, %c0_15] : memref<320x8xf32, #tpu.memory_space<vmem>>, vector<256x8xf32>
    %15 = tpu.concatenate %6, %7, %8, %9, %10, %11, %12, %13, %14 in 1 : vector<256x8xf32>, vector<256x8xf32>, vector<256x8xf32>, vector<256x8xf32>, vector<256x8xf32>, vector<256x8xf32>, vector<256x8xf32>, vector<256x8xf32>, vector<256x8xf32> -> vector<256x72xf32>
    %16 = arith.truncf %15 : vector<256x72xf32> to vector<256x72xbf16>
    %c0_16 = arith.constant 0 : index
    %c0_17 = arith.constant 0 : index
    %17 = vector.load %arg5[%c0_16, %c0_17] : memref<72x128xbf16, #tpu.memory_space<vmem>>, vector<72x128xbf16>
    %cst = arith.constant dense<0.000000e+00> : vector<256x128xf32>
    %18 = tpu.matmul %16, %17, %cst {dimension_numbers = #tpu.dot_dimension_numbers<[1], [0], [0], [1], [0, 0, 1, 1], [], []>} : vector<256x72xbf16>, vector<72x128xbf16>, vector<256x128xf32> -> vector<256x128xf32>
    %cst_18 = arith.constant 2.000000e+01 : f32
    %19 = vector.broadcast %cst_18 : f32 to vector<256x128xf32>
    %20 = arith.minimumf %18, %19 : vector<256x128xf32>
    %21 = math.exp %20 : vector<256x128xf32>
    %cst_19 = arith.constant 2.000000e+00 : f32
    %22 = vector.broadcast %cst_19 : f32 to vector<256x128xf32>
    %23 = arith.addf %21, %22 : vector<256x128xf32>
    %24 = arith.mulf %21, %23 : vector<256x128xf32>
    %25 = arith.mulf %18, %24 : vector<256x128xf32>
    %cst_20 = arith.constant 2.000000e+00 : f32
    %26 = vector.broadcast %cst_20 : f32 to vector<256x128xf32>
    %27 = arith.addf %24, %26 : vector<256x128xf32>
    %28 = tpu.reciprocal %27 {approx = true} : vector<256x128xf32> -> vector<256x128xf32>
    %29 = arith.mulf %25, %28 : vector<256x128xf32>
    %c1_i32 = arith.constant 1 : i32
    %30 = arith.muli %arg1, %c1_i32 : i32
    %31 = arith.addi %30, %arg2 : i32
    %c256_i32 = arith.constant 256 : i32
    %32 = arith.muli %31, %c256_i32 : i32
    %33 = tpu.iota {dimensions = array<i32: 0>} : vector<256x1xi32>
    %34 = vector.broadcast %32 : i32 to vector<256x1xi32>
    %35 = arith.addi %34, %33 : vector<256x1xi32>
    %36 = arith.sitofp %35 : vector<256x1xi32> to vector<256x1xf32>
    %cst_21 = arith.constant 6.250000e-02 : f32
    %37 = vector.broadcast %cst_21 : f32 to vector<256x1xf32>
    %38 = arith.mulf %36, %37 : vector<256x1xf32>
    %39 = math.floor %38 : vector<256x1xf32>
    %40 = arith.fptosi %39 : vector<256x1xf32> to vector<256x1xi32>
    %c16_i32 = arith.constant 16 : i32
    %41 = vector.broadcast %c16_i32 : i32 to vector<256x1xi32>
    %42 = arith.muli %40, %41 : vector<256x1xi32>
    %43 = arith.subi %35, %42 : vector<256x1xi32>
    %c0_i32 = arith.constant 0 : i32
    %44 = vector.broadcast %c0_i32 : i32 to vector<256x1xi32>
    %45 = arith.cmpi slt, %43, %44 : vector<256x1xi32>
    %c1_i32_22 = arith.constant 1 : i32
    %46 = vector.broadcast %c1_i32_22 : i32 to vector<256x1xi32>
    %47 = arith.subi %40, %46 : vector<256x1xi32>
    %48 = arith.select %45, %47, %40 : vector<256x1xi1>, vector<256x1xi32>
    %c0_i32_23 = arith.constant 0 : i32
    %49 = vector.broadcast %c0_i32_23 : i32 to vector<256x1xi32>
    %50 = arith.cmpi slt, %43, %49 : vector<256x1xi32>
    %c16_i32_24 = arith.constant 16 : i32
    %51 = vector.broadcast %c16_i32_24 : i32 to vector<256x1xi32>
    %52 = arith.addi %43, %51 : vector<256x1xi32>
    %53 = arith.select %50, %52, %43 : vector<256x1xi1>, vector<256x1xi32>
    %c16_i32_25 = arith.constant 16 : i32
    %54 = vector.broadcast %c16_i32_25 : i32 to vector<256x1xi32>
    %55 = arith.cmpi sge, %53, %54 : vector<256x1xi32>
    %c1_i32_26 = arith.constant 1 : i32
    %56 = vector.broadcast %c1_i32_26 : i32 to vector<256x1xi32>
    %57 = arith.addi %48, %56 : vector<256x1xi32>
    %58 = arith.select %55, %57, %48 : vector<256x1xi1>, vector<256x1xi32>
    %c16_i32_27 = arith.constant 16 : i32
    %59 = vector.broadcast %c16_i32_27 : i32 to vector<256x1xi32>
    %60 = arith.cmpi sge, %53, %59 : vector<256x1xi32>
    %c16_i32_28 = arith.constant 16 : i32
    %61 = vector.broadcast %c16_i32_28 : i32 to vector<256x1xi32>
    %62 = arith.subi %53, %61 : vector<256x1xi32>
    %63 = arith.select %60, %62, %53 : vector<256x1xi1>, vector<256x1xi32>
    %64 = arith.sitofp %58 : vector<256x1xi32> to vector<256x1xf32>
    %cst_29 = arith.constant 6.250000e-02 : f32
    %65 = vector.broadcast %cst_29 : f32 to vector<256x1xf32>
    %66 = arith.mulf %64, %65 : vector<256x1xf32>
    %67 = math.floor %66 : vector<256x1xf32>
    %68 = arith.fptosi %67 : vector<256x1xf32> to vector<256x1xi32>
    %c16_i32_30 = arith.constant 16 : i32
    %69 = vector.broadcast %c16_i32_30 : i32 to vector<256x1xi32>
    %70 = arith.muli %68, %69 : vector<256x1xi32>
    %71 = arith.subi %58, %70 : vector<256x1xi32>
    %c0_i32_31 = arith.constant 0 : i32
    %72 = vector.broadcast %c0_i32_31 : i32 to vector<256x1xi32>
    %73 = arith.cmpi slt, %71, %72 : vector<256x1xi32>
    %c16_i32_32 = arith.constant 16 : i32
    %74 = vector.broadcast %c16_i32_32 : i32 to vector<256x1xi32>
    %75 = arith.addi %71, %74 : vector<256x1xi32>
    %76 = arith.select %73, %75, %71 : vector<256x1xi1>, vector<256x1xi32>
    %c16_i32_33 = arith.constant 16 : i32
    %77 = vector.broadcast %c16_i32_33 : i32 to vector<256x1xi32>
    %78 = arith.cmpi sge, %76, %77 : vector<256x1xi32>
    %c16_i32_34 = arith.constant 16 : i32
    %79 = vector.broadcast %c16_i32_34 : i32 to vector<256x1xi32>
    %80 = arith.subi %76, %79 : vector<256x1xi32>
    %81 = arith.select %78, %80, %76 : vector<256x1xi1>, vector<256x1xi32>
    %c512_i32 = arith.constant 512 : i32
    %82 = vector.broadcast %c512_i32 : i32 to vector<256x1xi32>
    %83 = arith.cmpi slt, %35, %82 : vector<256x1xi32>
    %c14_i32 = arith.constant 14 : i32
    %84 = vector.broadcast %c14_i32 : i32 to vector<256x1xi32>
    %85 = arith.cmpi slt, %81, %84 : vector<256x1xi32>
    %86 = arith.andi %83, %85 : vector<256x1xi1>
    %c14_i32_35 = arith.constant 14 : i32
    %87 = vector.broadcast %c14_i32_35 : i32 to vector<256x1xi32>
    %88 = arith.cmpi slt, %63, %87 : vector<256x1xi32>
    %89 = arith.andi %86, %88 : vector<256x1xi1>
    %90 = arith.extui %89 : vector<256x1xi1> to vector<256x1xi32>
    %91 = arith.sitofp %90 : vector<256x1xi32> to vector<256x1xf32>
    %92 = vector.broadcast %91 : vector<256x1xf32> to vector<256x128xf32>
    %93 = arith.mulf %29, %92 : vector<256x128xf32>
    %94 = arith.truncf %93 : vector<256x128xf32> to vector<256x128xbf16>
    %c0_36 = arith.constant 0 : index
    %c0_37 = arith.constant 0 : index
    %95 = vector.load %arg6[%c0_36, %c0_37] : memref<256x128xbf16, #tpu.memory_space<vmem>>, vector<256x128xbf16>
    tpu.vector_store %arg6[%c0_36, %c0_37], %94 {strides = array<i32>} : memref<256x128xbf16, #tpu.memory_space<vmem>>, vector<256x128xbf16>,
    %c0_i32_38 = arith.constant 0 : i32
    %96 = arith.cmpi eq, %arg2, %c0_i32_38 : i32
    %97 = arith.extui %96 : i1 to i32
    %c0_i32_39 = arith.constant 0 : i32
    %98 = arith.cmpi ne, %97, %c0_i32_39 : i32
    scf.if %98 {
      %cst_50 = arith.constant 0.000000e+00 : f32
      %110 = vector.broadcast %cst_50 : f32 to vector<2x128xf32>
      %c0_51 = arith.constant 0 : index
      %c0_52 = arith.constant 0 : index
      %111 = vector.load %arg7[%c0_51, %c0_52] : memref<2x128xf32, #tpu.memory_space<vmem>>, vector<2x128xf32>
      tpu.vector_store %arg7[%c0_51, %c0_52], %110 {strides = array<i32>} : memref<2x128xf32, #tpu.memory_space<vmem>>, vector<2x128xf32>,
    } else {
    }
    %c0_40 = arith.constant 0 : index
    %c0_41 = arith.constant 0 : index
    %99 = vector.load %arg7[%c0_40, %c0_41] : memref<2x128xf32, #tpu.memory_space<vmem>>, vector<1x128xf32>
    %cst_42 = arith.constant dense<0.000000e+00> : vector<128xf32>
    %100 = vector.multi_reduction <add>, %93, %cst_42 [0] : vector<256x128xf32> to vector<128xf32>
    %101 = vector.shape_cast %100 : vector<128xf32> to vector<1x128xf32>
    %102 = arith.addf %99, %101 : vector<1x128xf32>
    %c0_43 = arith.constant 0 : index
    %c0_44 = arith.constant 0 : index
    %103 = vector.load %arg7[%c0_43, %c0_44] : memref<2x128xf32, #tpu.memory_space<vmem>>, vector<1x128xf32>
    tpu.vector_store %arg7[%c0_43, %c0_44], %102 {strides = array<i32>} : memref<2x128xf32, #tpu.memory_space<vmem>>, vector<1x128xf32>,
    %c1_45 = arith.constant 1 : index
    %c0_46 = arith.constant 0 : index
    %104 = vector.load %arg7[%c1_45, %c0_46] : memref<2x128xf32, #tpu.memory_space<vmem>>, vector<1x128xf32>
    %105 = arith.mulf %93, %93 : vector<256x128xf32>
    %cst_47 = arith.constant dense<0.000000e+00> : vector<128xf32>
    %106 = vector.multi_reduction <add>, %105, %cst_47 [0] : vector<256x128xf32> to vector<128xf32>
    %107 = vector.shape_cast %106 : vector<128xf32> to vector<1x128xf32>
    %108 = arith.addf %104, %107 : vector<1x128xf32>
    %c1_48 = arith.constant 1 : index
    %c0_49 = arith.constant 0 : index
    %109 = vector.load %arg7[%c1_48, %c0_49] : memref<2x128xf32, #tpu.memory_space<vmem>>, vector<1x128xf32>
    tpu.vector_store %arg7[%c1_48, %c0_49], %108 {strides = array<i32>} : memref<2x128xf32, #tpu.memory_space<vmem>>, vector<1x128xf32>,
    return
  }
  func.func @transform_0(%arg0: i32, %arg1: i32, %arg2: i32) -> (i32, i32) {
    %c1_i32 = arith.constant 1 : i32
    %0 = arith.muli %arg1, %c1_i32 : i32
    %1 = arith.addi %0, %arg2 : i32
    %c0_i32 = arith.constant 0 : i32
    %c0_i32_0 = arith.constant 0 : i32
    return %1, %c0_i32 : i32, i32
  }
  func.func @transform_1(%arg0: i32, %arg1: i32, %arg2: i32) -> (i32, i32) {
    %c1_i32 = arith.constant 1 : i32
    %0 = arith.muli %arg1, %c1_i32 : i32
    %1 = arith.addi %0, %arg2 : i32
    %c1_i32_0 = arith.constant 1 : i32
    %2 = arith.addi %1, %c1_i32_0 : i32
    %c4_i32 = arith.constant 4 : i32
    %3 = arith.muli %2, %c4_i32 : i32
    %c0_i32 = arith.constant 0 : i32
    %c0_i32_1 = arith.constant 0 : i32
    return %3, %c0_i32 : i32, i32
  }
  func.func @transform_2(%arg0: i32, %arg1: i32, %arg2: i32) -> (i32, i32) {
    %c0_i32 = arith.constant 0 : i32
    %c0_i32_0 = arith.constant 0 : i32
    return %c0_i32, %arg0 : i32, i32
  }
  func.func @transform_3(%arg0: i32, %arg1: i32, %arg2: i32) -> (i32, i32) {
    %c1_i32 = arith.constant 1 : i32
    %0 = arith.muli %arg1, %c1_i32 : i32
    %1 = arith.addi %0, %arg2 : i32
    %c0_i32 = arith.constant 0 : i32
    return %1, %arg0 : i32, i32
  }
  func.func @transform_4(%arg0: i32, %arg1: i32, %arg2: i32) -> (i32, i32) {
    %c1_i32 = arith.constant 1 : i32
    %0 = arith.muli %arg1, %c1_i32 : i32
    %1 = arith.addi %0, %arg0 : i32
    %c0_i32 = arith.constant 0 : i32
    %c0_i32_0 = arith.constant 0 : i32
    return %c0_i32, %1 : i32, i32
  }
}

</mosaic_0001>

<bundles_post_ra>
// kernel: basic_conv2d.1
= control target key start
LH: loop header
LB: loop body
LE: loop exit
PB: predicated region body
PF: predicated region fallthrough
CT: control target
= control target key end

     0   :  { %s5386_s15 = smov 0   ;;  %s5388_s16 = smov 0   ;;  %s7786_s0 = inlined_call_operand.vmem [shape: bf16[768,8], index: 0, kind: input, shape index: {}, may-alias: {0,1}]   ;;  %s7787_s1 = inlined_call_operand.vmem [shape: bf16[768,8], index: 1, kind: input, shape index: {}, may-alias: {0,1}]   ;;  %s7788_s2 = inlined_call_operand.vmem [shape: bf16[72,128], index: 2, kind: input, shape index: {}]   ;;  %s7789_s3 = inlined_call_operand.vmem [shape: bf16[512,128], index: 3, kind: output, shape index: {0}]   ;;  %s7790_s4 = inlined_call_operand.vmem [shape: f32[2,256], index: 4, kind: output, shape index: {1}]  }
   0x1   :  { %s5390_s17 = smov 0  }
   0x2 LB: > { %s30_s18 = sadd.s32 1, %s5346_s16  ;;  %p3883_p0 = scmp.ge.s32.totalorder %s5350_s17, 1  ;;  %s5350_s17 = sphi %s5390_s17, %s15_s17   ;;  %s5346_s16 = sphi %s5388_s16, %s7893_s16   ;;  %s5342_s15 = sphi %s5386_s15, %s7892_s15  }
   0x3   : > { %p32_p1 = scmp.ge.s32.totalorder %s30_s18, 2  ;;  %p227_p2 = scmp.lt.s32.totalorder %s5350_s17, 3 }
   0x5   : > { %s7895_s18 = smov (%p32_p1, %s30_s18), 0  ;;  %p228_p3 = pnand %p3883_p0, %p227_p2 }
   0x7   : > { %231 = sbr.rel (%p228_p3) target bundleno = 795 (0x31b), region = 32 }
   0xe   : > { %s5407_s19 = sshll.u32 %s5342_s15, 5  ;;  %vm381_vm0 = vcmask 64512   ;;  %s5352_s30 = smov 8   ;;  %vm1784_vm1 = vcmask 1043456   ;;  %vm1452_vm2 = vcmask 130048   ;;  %vm1485_vm3 = vcmask 195584  }
   0xf   : > { %p277_p4 = scmp.lt.s32.totalorder %s5407_s19, 95  ;;  %s4276_s20 = sadd.s32 32, %s5407_s19  ;;  %vm1518_vm4 = vcmask 261120   ;;  %vm1551_vm5 = vcmask 326656   ;;  %vm1584_vm6 = vcmask 392192   ;;  %vm1617_vm7 = vcmask 457728  }
  0x10   : > { %p287_p5 = scmp.lt.s32.totalorder %s4276_s20, 95  ;;  %s5353_s5 = smov 16   ;;  %vm1650_vm8 = vcmask 523264   ;;  %vm1735_vm9 = vcmask 588800  }
  0x11   : > { %s278_s21 = scalar_select %p277_p4, %s5407_s19, 95 }
  0x12   : > { %s7897_s20 = smov (!%p287_p5, %s4276_s20), 95  ;;  %s5354_s10 = smov 24  }
  0x13   : > { %s3885_s22 = sshll.u32 %s278_s21, 2  ;;  %s3888_s26 = sshll.u32 %s7897_s20, 2 }
  0x14   : > { %s5415_s25 = scalar_lea.vmem %s7786_s0, %s3885_s22  ;;  %s5429_s29 = scalar_lea.vmem %s7787_s1, %s3888_s26 }
  0x15   : > { %v4278_v0 = vld [vmem:[%s5415_s25 + $0x10] sm:$0xff]   ;;  %v4279_v1 = vld [vmem:[%s5415_s25 + $0x18] sm:$0xff]   ;;  %v4116_v2 = vld [vmem:[%s5415_s25] sm:$0xff]   ;;  %s5355_s13 = smov 32   ;;  %s5356_s21 = smov 40  }
  0x16   : > { %v4125_v3 = vunpack.c.l.bf16 %v4278_v0  ;;  %v4126_v4 = vunpack.c.h.bf16 %v4278_v0  ;;  %v4129_v5 = vunpack.c.l.bf16 %v4279_v1  ;;  %v4130_v6 = vunpack.c.h.bf16 %v4279_v1  ;;  %v4277_v7 = vld [vmem:[%s5415_s25 + $0x8] sm:$0xff]   ;;  %v4280_v8 = vld [vmem:[%s5415_s25 + $0x20] sm:$0xff]   ;;  %v4282_v14 = vld [vmem:[%s5415_s25 + $0x30] sm:$0xff]   ;;  %s5357_s24 = smov 48   ;;  %s5359_s26 = smov 64  }
  0x17   : > { %v4281_v9 = vld [vmem:[%s5415_s25 + $0x28] sm:$0xff]   ;;  %v4117_v10 = vunpack.c.l.bf16 %v4116_v2  ;;  %v4118_v11 = vunpack.c.h.bf16 %v4116_v2  ;;  %v4121_v12 = vunpack.c.l.bf16 %v4277_v7  ;;  %v4122_v13 = vunpack.c.h.bf16 %v4277_v7  ;;  %v4283_v15 = vld [vmem:[%s5415_s25 + $0x38] sm:$0xff]   ;;  %v4284_v16 = vld [vmem:[%s5415_s25 + $0x40] sm:$0xff]   ;;  %s3913_s27 = sshll.u32 %s5342_s15, 8  ;;  %p301_p6 = scmp.lt.s32.totalorder %s5407_s19, 63 }
  0x18   : > { %386 = vst.msk [vmem:[#allocation2 + $0x20] sm:$0xff] %vm381_vm0, %v4125_v3  ;;  %387 = vst.msk [vmem:[#allocation2 + $0x28] sm:$0xff] %vm381_vm0, %v4126_v4  ;;  %v4133_v17 = vunpack.c.l.bf16 %v4280_v8  ;;  %v4137_v18 = vunpack.c.l.bf16 %v4281_v9  ;;  %v4138_v19 = vunpack.c.h.bf16 %v4281_v9  ;;  %v4141_v20 = vunpack.c.l.bf16 %v4282_v14  ;;  %v4285_v21 = vld [vmem:[%s5415_s25 + $0x48] sm:$0xff]   ;;  %v4286_v22 = vld [vmem:[%s5415_s25 + $0x50] sm:$0xff]   ;;  %p311_p7 = scmp.lt.s32.totalorder %s5342_s15, 1 }
  0x19   : > { %388 = vst.msk [vmem:[#allocation2 + $0x30] sm:$0xff] %vm381_vm0, %v4129_v5  ;;  %389 = vst.msk [vmem:[#allocation2 + $0x38] sm:$0xff] %vm381_vm0, %v4130_v6  ;;  %v4287_v23 = vld [vmem:[%s5415_s25 + $0x58] sm:$0xff]   ;;  %v4134_v24 = vunpack.c.h.bf16 %v4280_v8  ;;  %v4145_v25 = vunpack.c.l.bf16 %v4283_v15  ;;  %v4146_v26 = vunpack.c.h.bf16 %v4283_v15  ;;  %v4149_v27 = vunpack.c.l.bf16 %v4284_v16  ;;  %v4288_v28 = vld [vmem:[%s5415_s25 + $0x60] sm:$0xff]   ;;  %s7899_s19 = smov (!%p301_p6, %s5407_s19), 63 }
  0x1a   : > { %382 = vst.msk [vmem:[#allocation2] sm:$0xff] %vm381_vm0, %v4117_v10  ;;  %383 = vst.msk [vmem:[#allocation2 + $0x8] sm:$0xff] %vm381_vm0, %v4118_v11  ;;  %v4289_v29 = vld [vmem:[%s5415_s25 + $0x68] sm:$0xff]   ;;  %v4290_v30 = vld [vmem:[%s5415_s25 + $0x70] sm:$0xff]   ;;  %v4142_v31 = vunpack.c.h.bf16 %v4282_v14  ;;  %v4153_v32 = vunpack.c.l.bf16 %v4285_v21  ;;  %v4154_v33 = vunpack.c.h.bf16 %v4285_v21  ;;  %v4157_v34 = vunpack.c.l.bf16 %v4286_v22  ;;  %s3890_s28 = sshll.u32 %s7899_s19, 2  ;;  %s7901_s15 = smov (!%p311_p7, %s5342_s15), 1 }
  0x1b   : > { %384 = vst.msk [vmem:[#allocation2 + $0x10] sm:$0xff] %vm381_vm0, %v4121_v12  ;;  %385 = vst.msk [vmem:[#allocation2 + $0x18] sm:$0xff] %vm381_vm0, %v4122_v13  ;;  %v4291_v35 = vld [vmem:[%s5415_s25 + $0x78] sm:$0xff]   ;;  %v4180_v36 = vld [vmem:[%s5429_s29] sm:$0xff]   ;;  %v4150_v37 = vunpack.c.h.bf16 %v4284_v16  ;;  %v4161_v38 = vunpack.c.l.bf16 %v4287_v23  ;;  %v4162_v39 = vunpack.c.h.bf16 %v4287_v23  ;;  %v4165_v40 = vunpack.c.l.bf16 %v4288_v28  ;;  %s5358_s25 = smov 56  }
  0x1c   : > { %390 = vst.msk [vmem:[#allocation2 + $0x40] sm:$0xff] %vm381_vm0, %v4133_v17  ;;  %392 = vst.msk [vmem:[#allocation2 + $0x50] sm:$0xff] %vm381_vm0, %v4137_v18  ;;  %v4158_v41 = vunpack.c.h.bf16 %v4286_v22  ;;  %v4169_v42 = vunpack.c.l.bf16 %v4289_v29  ;;  %v4170_v43 = vunpack.c.h.bf16 %v4289_v29  ;;  %v4173_v44 = vunpack.c.l.bf16 %v4290_v30 }
  0x1d   : > { %393 = vst.msk [vmem:[#allocation2 + $0x58] sm:$0xff] %vm381_vm0, %v4138_v19  ;;  %394 = vst.msk [vmem:[#allocation2 + $0x60] sm:$0xff] %vm381_vm0, %v4141_v20  ;;  %v4166_v45 = vunpack.c.h.bf16 %v4288_v28  ;;  %v4177_v46 = vunpack.c.l.bf16 %v4291_v35  ;;  %v4178_v47 = vunpack.c.h.bf16 %v4291_v35  ;;  %v4181_v48 = vunpack.c.l.bf16 %v4180_v36 }
  0x1e   : > { %391 = vst.msk [vmem:[#allocation2 + $0x48] sm:$0xff] %vm381_vm0, %v4134_v24  ;;  %396 = vst.msk [vmem:[#allocation2 + $0x70] sm:$0xff] %vm381_vm0, %v4145_v25  ;;  %v4182_v49 = vunpack.c.h.bf16 %v4180_v36  ;;  %v4174_v50 = vunpack.c.h.bf16 %v4290_v30 }
  0x1f   : > { %397 = vst.msk [vmem:[#allocation2 + $0x78] sm:$0xff] %vm381_vm0, %v4146_v26  ;;  %398 = vst.msk [vmem:[#allocation2 + $0x80] sm:$0xff] %vm381_vm0, %v4149_v27  ;;  %v474_v51 = vld [vmem:[#allocation2 + $0x21] sm:$0xff] }
  0x20   : > { %395 = vst.msk [vmem:[#allocation2 + $0x68] sm:$0xff] %vm381_vm0, %v4142_v31  ;;  %400 = vst.msk [vmem:[#allocation2 + $0x90] sm:$0xff] %vm381_vm0, %v4153_v32  ;;  %v475_v52 = vld [vmem:[#allocation2 + $0x29] sm:$0xff]  ;;  %v476_v53 = vld [vmem:[#allocation2 + $0x31] sm:$0xff] }
  0x21   : > { %401 = vst.msk [vmem:[#allocation2 + $0x98] sm:$0xff] %vm381_vm0, %v4154_v33  ;;  %402 = vst.msk [vmem:[#allocation2 + $0xa0] sm:$0xff] %vm381_vm0, %v4157_v34  ;;  %v5471_v54 = vpack.i.bf16 %v475_v52, %v474_v51  ;;  %v470_v55 = vld [vmem:[#allocation2 + $0x1] sm:$0xff] }
  0x22   : > { %399 = vst.msk [vmem:[#allocation2 + $0x88] sm:$0xff] %vm381_vm0, %v4150_v37  ;;  %404 = vst.msk [vmem:[#allocation2 + $0xb0] sm:$0xff] %vm381_vm0, %v4161_v38  ;;  %v471_v56 = vld [vmem:[#allocation2 + $0x9] sm:$0xff]  ;;  %v472_v57 = vld [vmem:[#allocation2 + $0x11] sm:$0xff] }
  0x23   : > { %405 = vst.msk [vmem:[#allocation2 + $0xb8] sm:$0xff] %vm381_vm0, %v4162_v39  ;;  %406 = vst.msk [vmem:[#allocation2 + $0xc0] sm:$0xff] %vm381_vm0, %v4165_v40  ;;  %v4546_v58 = vpack.i.bf16 %v471_v56, %v470_v55  ;;  %v477_v59 = vld [vmem:[#allocation2 + $0x39] sm:$0xff]  ;;  %4557 = vrot.lane.b32.xlu1 %v5471_v54, %s5352_s30  ;;  %v502_v52 = vld [vmem:[#allocation2 + $0x2] sm:$0xff] }
  0x24   : > { %403 = vst.msk [vmem:[#allocation2 + $0xa8] sm:$0xff] %vm381_vm0, %v4158_v41  ;;  %408 = vst.msk [vmem:[#allocation2 + $0xd0] sm:$0xff] %vm381_vm0, %v4169_v42  ;;  %v473_v60 = vld [vmem:[#allocation2 + $0x19] sm:$0xff]  ;;  %v5477_v61 = vpack.i.bf16 %v477_v59, %v476_v53  ;;  %v480_v1 = vld [vmem:[#allocation2 + $0x51] sm:$0xff] }
  0x25   : > { %409 = vst.msk [vmem:[#allocation2 + $0xd8] sm:$0xff] %vm381_vm0, %v4170_v43  ;;  %410 = vst.msk [vmem:[#allocation2 + $0xe0] sm:$0xff] %vm381_vm0, %v4173_v44  ;;  %v478_v62 = vld [vmem:[#allocation2 + $0x41] sm:$0xff]  ;;  %v479_v63 = vld [vmem:[#allocation2 + $0x49] sm:$0xff]  ;;  %4547 = vrot.lane.b32.xlu0 %v4546_v58, %s5352_s30  ;;  %v5480_v0 = vpack.i.bf16 %v473_v60, %v472_v57 }
  0x26   : > { %407 = vst.msk [vmem:[#allocation2 + $0xc8] sm:$0xff] %vm381_vm0, %v4166_v45  ;;  %412 = vst.msk [vmem:[#allocation2 + $0xf0] sm:$0xff] %vm381_vm0, %v4177_v46  ;;  %v481_v2 = vld [vmem:[#allocation2 + $0x59] sm:$0xff]  ;;  %v5482_v3 = vpack.i.bf16 %v479_v63, %v478_v62  ;;  %v484_v7 = vld [vmem:[#allocation2 + $0x71] sm:$0xff] }
  0x27   : > { %413 = vst.msk [vmem:[#allocation2 + $0xf8] sm:$0xff] %vm381_vm0, %v4178_v47  ;;  %430 = vst.msk [vmem:[#allocation2 + $0x100] sm:$0xff] %vm381_vm0, %v4181_v48  ;;  %v482_v4 = vld [vmem:[#allocation2 + $0x61] sm:$0xff]  ;;  %v483_v5 = vld [vmem:[#allocation2 + $0x69] sm:$0xff]  ;;  %v5484_v6 = vpack.i.bf16 %v481_v2, %v480_v1  ;;  %4562 = vrot.lane.b32.xlu1 %v5477_v61, %s5352_s30 }
  0x28   : > { %431 = vst.msk [vmem:[#allocation2 + $0x108] sm:$0xff] %vm381_vm0, %v4182_v49  ;;  %411 = vst.msk [vmem:[#allocation2 + $0xe8] sm:$0xff] %vm381_vm0, %v4174_v50  ;;  %v485_v8 = vld [vmem:[#allocation2 + $0x79] sm:$0xff]  ;;  %v5486_v9 = vpack.i.bf16 %v483_v5, %v482_v4  ;;  %v488_v14 = vld [vmem:[#allocation2 + $0x91] sm:$0xff] }
  0x29   : > { %v5490_v10 = vpack.i.bf16 %v485_v8, %v484_v7  ;;  %4552 = vrot.lane.b32.xlu0 %v5480_v0, %s5352_s30  ;;  %v486_v11 = vld [vmem:[#allocation2 + $0x81] sm:$0xff]  ;;  %v487_v12 = vld [vmem:[#allocation2 + $0x89] sm:$0xff]  ;;  %v489_v15 = vld [vmem:[#allocation2 + $0x99] sm:$0xff] }
  0x2a   : > { %v5494_v13 = vpack.i.bf16 %v487_v12, %v486_v11  ;;  %v492_v16 = vld [vmem:[#allocation2 + $0xb1] sm:$0xff]  ;;  %v513_v18 = vld [vmem:[#allocation2 + $0x5a] sm:$0xff]  ;;  %v5502_v19 = vpack.i.bf16 %v489_v15, %v488_v14  ;;  %v514_v21 = vld [vmem:[#allocation2 + $0x62] sm:$0xff] }
  0x2b   : > { %4572 = vrot.lane.b32.xlu1 %v5484_v6, %s5352_s30  ;;  %v512_v17 = vld [vmem:[#allocation2 + $0x52] sm:$0xff]  ;;  %v515_v22 = vld [vmem:[#allocation2 + $0x6a] sm:$0xff]  ;;  %v490_v24 = vld [vmem:[#allocation2 + $0xa1] sm:$0xff] }
  0x2c   : > { %v493_v20 = vld [vmem:[#allocation2 + $0xb9] sm:$0xff]  ;;  %v5504_v23 = vpack.i.bf16 %v513_v18, %v512_v17  ;;  %v5508_v27 = vpack.i.bf16 %v515_v22, %v514_v21  ;;  %v491_v28 = vld [vmem:[#allocation2 + $0xa9] sm:$0xff]  ;;  %v496_v35 = vld [vmem:[#allocation2 + $0xd1] sm:$0xff] }
  0x2d   : > { %4567 = vrot.lane.b32.xlu0 %v5482_v3, %s5352_s30  ;;  %v516_v25 = vld [vmem:[#allocation2 + $0x72] sm:$0xff]  ;;  %v517_v26 = vld [vmem:[#allocation2 + $0x7a] sm:$0xff]  ;;  %v518_v29 = vld [vmem:[#allocation2 + $0x82] sm:$0xff]  ;;  %v5516_v33 = vpack.i.bf16 %v493_v20, %v492_v16  ;;  %v5520_v34 = vpack.i.bf16 %v491_v28, %v490_v24 }
  0x2e   : > { %v519_v30 = vld [vmem:[#allocation2 + $0x8a] sm:$0xff]  ;;  %v5510_v31 = vpack.i.bf16 %v517_v26, %v516_v25  ;;  %v497_v36 = vld [vmem:[#allocation2 + $0xd9] sm:$0xff]  ;;  %v494_v37 = vld [vmem:[#allocation2 + $0xc1] sm:$0xff] }
  0x2f   : > { %4582 = vrot.lane.b32.xlu1 %v5490_v10, %s5352_s30  ;;  %v5512_v32 = vpack.i.bf16 %v519_v30, %v518_v29  ;;  %v495_v38 = vld [vmem:[#allocation2 + $0xc9] sm:$0xff]  ;;  %v5524_v39 = vpack.i.bf16 %v497_v36, %v496_v35  ;;  %v500_v41 = vld [vmem:[#allocation2 + $0xf1] sm:$0xff]  ;;  %v501_v42 = vld [vmem:[#allocation2 + $0xf9] sm:$0xff] }
  0x30   : > { %v5528_v40 = vpack.i.bf16 %v495_v38, %v494_v37  ;;  %v498_v43 = vld [vmem:[#allocation2 + $0xe1] sm:$0xff]  ;;  %v499_v44 = vld [vmem:[#allocation2 + $0xe9] sm:$0xff]  ;;  %v520_v45 = vld [vmem:[#allocation2 + $0x92] sm:$0xff]  ;;  %v5534_v48 = vpack.i.bf16 %v501_v42, %v500_v41 }
  0x31   : > { %4577 = vrot.lane.b32.xlu0 %v5486_v9, %s5352_s30  ;;  %v521_v46 = vld [vmem:[#allocation2 + $0x9a] sm:$0xff]  ;;  %v5538_v49 = vpack.i.bf16 %v499_v44, %v498_v43  ;;  %v504_v50 = vld [vmem:[#allocation2 + $0x12] sm:$0xff]  ;;  %v503_v53 = vld [vmem:[#allocation2 + $0xa] sm:$0xff] }
  0x32   : > { %v5530_v47 = vpack.i.bf16 %v521_v46, %v520_v45  ;;  %v505_v51 = vld [vmem:[#allocation2 + $0x1a] sm:$0xff]  ;;  %v4626_v56 = vpack.i.bf16 %v503_v53, %v502_v52  ;;  %v508_v57 = vld [vmem:[#allocation2 + $0x32] sm:$0xff]  ;;  %v506_v59 = vld [vmem:[#allocation2 + $0x22] sm:$0xff] }
  0x33   : > { %4592 = vrot.lane.b32.xlu1 %v5502_v19, %s5352_s30  ;;  %v4631_v55 = vpack.i.bf16 %v505_v51, %v504_v50  ;;  %v509_v58 = vld [vmem:[#allocation2 + $0x3a] sm:$0xff]  ;;  %v507_v60 = vld [vmem:[#allocation2 + $0x2a] sm:$0xff]  ;;  %v510_v1 = vld [vmem:[#allocation2 + $0x42] sm:$0xff] }
  0x34   : > { %v5545_v62 = vpack.i.bf16 %v509_v58, %v508_v57  ;;  %v5548_v63 = vpack.i.bf16 %v507_v60, %v506_v59  ;;  %v511_v2 = vld [vmem:[#allocation2 + $0x4a] sm:$0xff]  ;;  %v522_v4 = vld [vmem:[#allocation2 + $0xa2] sm:$0xff]  ;;  %v524_v11 = vld [vmem:[#allocation2 + $0xb2] sm:$0xff] }
  0x35   : > { %4587 = vrot.lane.b32.xlu0 %v5494_v13, %s5352_s30  ;;  %v523_v5 = vld [vmem:[#allocation2 + $0xaa] sm:$0xff]  ;;  %v5556_v8 = vpack.i.bf16 %v511_v2, %v510_v1  ;;  %v525_v12 = vld [vmem:[#allocation2 + $0xba] sm:$0xff]  ;;  %v526_v17 = vld [vmem:[#allocation2 + $0xc2] sm:$0xff] }
  0x36   : > { %v5550_v7 = vpack.i.bf16 %v523_v5, %v522_v4  ;;  %v5566_v14 = vpack.i.bf16 %v525_v12, %v524_v11  ;;  %v5572_v15 = vld [vmem:[#allocation2 + $0x10] sm:$0xff]  ;;  %v5574_v16 = vld [vmem:[#allocation2 + $0x18] sm:$0xff]  ;;  %v5186_v20 = vld [vmem:[%s7788_s2] sm:$0xff]  }
  0x37   : > { %4602 = vrot.lane.b32.xlu1 %v5516_v33, %s5352_s30  ;;  %v527_v18 = vld [vmem:[#allocation2 + $0xca] sm:$0xff]  ;;  %v4691_v21 = vpack.i.bf16 %v5574_v16, %v5572_v15  ;;  %4331 = vmatprep.subr.bf16.mxu0 %v5186_v20  ;;  %v5587_v24 = vld [vmem:[#allocation2 + $0x20] sm:$0xff]  ;;  %v5189_v30 = vld [vmem:[%s7788_s2 + $0x18] sm:$0xff]  }
  0x38   : > { %v5585_v22 = vpack.i.bf16 %v527_v18, %v526_v17  ;;  %v5589_v25 = vld [vmem:[#allocation2 + $0x28] sm:$0xff]  ;;  %4332 = vmatpush3.bf16.msra.mxu0 %v5186_v20  ;;  %4373 = vmatprep.subr.bf16.mxu1 %v5186_v20  ;;  %v5188_v29 = vld [vmem:[%s7788_s2 + $0x10] sm:$0xff]   ;;  %v5190_v36 = vld [vmem:[%s7788_s2 + $0x20] ss:$0 sps:$4 sm:$0xff]  }
  0x39   : > { %4597 = vrot.lane.b32.xlu0 %v5520_v34, %s5352_s30  ;;  %v5187_v26 = vld [vmem:[%s7788_s2 + $0x8] sm:$0xff]   ;;  %4378 = vmatpush3.bf16.msra.mxu1 %v5186_v20  ;;  %v4696_v28 = vpack.i.bf16 %v5589_v25, %v5587_v24  ;;  %v5611_v35 = vld [vmem:[#allocation2 + $0x30] sm:$0xff]  ;;  %v1786_v38 = vsel %vm1784_vm1, %v5190_v36, 0  ;;  %v5630_v41 = vld [vmem:[#allocation2 + $0x40] sm:$0xff] }
  0x3a   : > { %4333 = vmatprep.subr.bf16.mxu0 %v5187_v26  ;;  %4374 = vmatprep.subr.bf16.mxu1 %v5187_v26  ;;  %v5632_v42 = vld [vmem:[#allocation2 + $0x48] sm:$0xff]  ;;  %v5646_v43 = vld [vmem:[#allocation2 + $0x50] sm:$0xff]  ;;  %v5648_v44 = vld [vmem:[#allocation2 + $0x58] sm:$0xff] }
  0x3b   : > { %4612 = vrot.lane.b32.xlu1 %v5524_v39, %s5352_s30  ;;  %v4292_v45 = vld [vmem:[%s5429_s29 + $0x8] sm:$0xff]   ;;  %v5664_v50 = vld [vmem:[#allocation2 + $0x60] sm:$0xff]  ;;  %v4293_v53 = vld [vmem:[%s5429_s29 + $0x10] sm:$0xff]  }
  0x3c   : > { %4334 = vmatpush3.bf16.msra.mxu0 %v5187_v26  ;;  %v4185_v46 = vunpack.c.l.bf16 %v4292_v45  ;;  %v5666_v51 = vld [vmem:[#allocation2 + $0x68] sm:$0xff]  ;;  %v4186_v52 = vunpack.c.h.bf16 %v4292_v45  ;;  %v5685_v57 = vld [vmem:[#allocation2 + $0x70] sm:$0xff]  ;;  %v5687_v58 = vld [vmem:[#allocation2 + $0x78] sm:$0xff] }
  0x3d   : > { %4607 = vrot.lane.b32.xlu0 %v5528_v40, %s5352_s30  ;;  %4379 = vmatpush3.bf16.msra.mxu1 %v5187_v26  ;;  %v5713_v2 = vld [vmem:[#allocation2 + $0x80] sm:$0xff]  ;;  %v5715_v4 = vld [vmem:[#allocation2 + $0x88] sm:$0xff]  ;;  %v5744_v20 = vld [vmem:[#allocation2 + $0x90] sm:$0xff] }
  0x3e   : > { %4335 = vmatprep.subr.bf16.mxu0 %v5188_v29  ;;  %4375 = vmatprep.subr.bf16.mxu1 %v5188_v29  ;;  %432 = vst.msk [vmem:[#allocation2 + $0x110] sm:$0xff] %vm381_vm0, %v4185_v46  ;;  %433 = vst.msk [vmem:[#allocation2 + $0x118] sm:$0xff] %vm381_vm0, %v4186_v52  ;;  %v5797_v52 = vld [vmem:[#allocation2 + $0xb0] sm:$0xff] }
  0x3f   : > { %4622 = vrot.lane.b32.xlu1 %v5534_v48, %s5352_s30  ;;  %7810 = vst [vmem:[#allocation3_spill] sm:$0xff] %v5713_v2  ;;  %7811 = vst [vmem:[#allocation4_spill] sm:$0xff] %v5715_v4 }
  0x40   : > { %4336 = vmatpush3.bf16.msra.mxu0 %v5188_v29  ;;  %7822 = vst [vmem:[#allocation15_spill] sm:$0xff] %v5797_v52 }
  0x41   : > { %4617 = vrot.lane.b32.xlu0 %v5538_v49, %s5352_s30  ;;  %4380 = vmatpush3.bf16.msra.mxu1 %v5188_v29  ;;  %s6914_s30 = scalar_lea.vmem %s7789_s3, %s3890_s28 }
  0x42   : > { %4337 = vmatprep.subr.bf16.mxu0 %v5189_v30  ;;  %4376 = vmatprep.subr.bf16.mxu1 %v5189_v30 }
  0x43   : > { %4632 = vrot.lane.b32.xlu1 %v4631_v55, %s5353_s5 }
  0x44   : > { %4338 = vmatpush3.bf16.msra.mxu0 %v5189_v30 }
  0x45   : > { %4627 = vrot.lane.b32.xlu0 %v4626_v56, %s5353_s5  ;;  %4381 = vmatpush3.bf16.msra.mxu1 %v5189_v30 }
  0x46   : > { %4383 = vmatprep.subr.msk.bf16.mxu0 %vm1784_vm1, %v5190_v36  ;;  %4384 = vmatprep.subr.msk.bf16.mxu1 %vm1784_vm1, %v5190_v36 }
  0x47   : > { %4642 = vrot.lane.b32.xlu1 %v5545_v62, %s5353_s5 }
  0x48   : > { %4340 = vmatpush3.bf16.msra.mxu0 %v1786_v38 }
  0x49   : > { %4637 = vrot.lane.b32.xlu0 %v5548_v63, %s5353_s5  ;;  %4382 = vmatpush3.bf16.msra.mxu1 %v1786_v38 }
  0x4b   : > { %4652 = vrot.lane.b32.xlu1 %v5504_v23, %s5353_s5 }
  0x4d   : > { %4647 = vrot.lane.b32.xlu0 %v5556_v8, %s5353_s5 }
  0x4f   : > { %4662 = vrot.lane.b32.xlu1 %v5510_v31, %s5353_s5 }
  0x51   : > { %4657 = vrot.lane.b32.xlu0 %v5508_v27, %s5353_s5 }
  0x53   : > { %4672 = vrot.lane.b32.xlu1 %v5530_v47, %s5353_s5 }
  0x55   : > { %4667 = vrot.lane.b32.xlu0 %v5512_v32, %s5353_s5 }
  0x57   : > { %4682 = vrot.lane.b32.xlu1 %v5566_v14, %s5353_s5 }
  0x59   : > { %4677 = vrot.lane.b32.xlu0 %v5550_v7, %s5353_s5 }
  0x5b   : > { %4692 = vrot.lane.b32.xlu1 %v4691_v21, %s5354_s10 }
  0x5d   : > { %4687 = vrot.lane.b32.xlu0 %v5585_v22, %s5353_s5 }
  0x5f   : > { %4702 = vrot.lane.b32.xlu1 %v5480_v0, %s5355_s13  ;;  %v5613_v0 = vld [vmem:[#allocation2 + $0x38] sm:$0xff] }
  0x60   : > { %v4726_v37 = vpack.i.bf16 %v5613_v0, %v5611_v35 }
  0x61   : > { %4697 = vrot.lane.b32.xlu0 %v4696_v28, %s5354_s10 }
  0x63   : > { %4712 = vrot.lane.b32.xlu1 %v4631_v55, %s5356_s21  ;;  %v4189_v55 = vunpack.c.l.bf16 %v4293_v53 }
  0x65   : > { %4707 = vrot.lane.b32.xlu0 %v5471_v54, %s5355_s13  ;;  %434 = vst.msk [vmem:[#allocation2 + $0x120] sm:$0xff] %vm381_vm0, %v4189_v55 }
  0x67   : > { %4722 = vrot.lane.b32.xlu1 %v4696_v28, %s5357_s24 }
  0x69   : > { %4717 = vrot.lane.b32.xlu0 %v5548_v63, %s5356_s21 }
  0x6b   : > { %4732 = vrot.lane.b32.xlu1 %v5471_v54, %s5358_s25  ;;  %v4756_v54 = vpack.i.bf16 %v5632_v42, %v5630_v41 }
  0x6d   : > { %4727 = vrot.lane.b32.xlu0 %v4726_v37, %s5357_s24 }
  0x6f   : > { %4742 = vrot.lane.b32.xlu1 %v5548_v63, %s5359_s26 }
  0x71   : > { %4737 = vrot.lane.b32.xlu0 %v5477_v61, %s5358_s25 }
  0x73   : > { %4752 = vrot.lane.b32.xlu1 %v4726_v37, %s5354_s10  ;;  %v5772_v37 = vld [vmem:[#allocation2 + $0xa0] sm:$0xff] }
  0x74   : > { %7818 = vst [vmem:[#allocation11_spill] sm:$0xff] %v5772_v37 }
  0x75   : > { %4747 = vrot.lane.b32.xlu0 %v5545_v62, %s5359_s26 }
  0x77   : > { %4762 = vrot.lane.b32.xlu1 %v5477_v61, %s5355_s13  ;;  %v4786_v61 = vpack.i.bf16 %v5648_v44, %v5646_v43 }
  0x79   : > { %4757 = vrot.lane.b32.xlu0 %v4756_v54, %s5354_s10 }
  0x7b   : > { %4772 = vrot.lane.b32.xlu1 %v5545_v62, %s5356_s21 }
  0x7d   : > { %4767 = vrot.lane.b32.xlu0 %v5482_v3, %s5355_s13 }
  0x7f   : > { %4782 = vrot.lane.b32.xlu1 %v4756_v54, %s5357_s24 }
  0x81   : > { %4777 = vrot.lane.b32.xlu0 %v5556_v8, %s5356_s21 }
  0x83   : > { %4792 = vrot.lane.b32.xlu1 %v5482_v3, %s5358_s25  ;;  %v4816_v3 = vpack.i.bf16 %v5666_v51, %v5664_v50 }
  0x85   : > { %4787 = vrot.lane.b32.xlu0 %v4786_v61, %s5357_s24 }
  0x87   : > { %4802 = vrot.lane.b32.xlu1 %v5556_v8, %s5359_s26 }
  0x89   : > { %4797 = vrot.lane.b32.xlu0 %v5484_v6, %s5358_s25 }
  0x8b   : > { %4812 = vrot.lane.b32.xlu1 %v4786_v61, %s5354_s10 }
  0x8d   : > { %4807 = vrot.lane.b32.xlu0 %v5504_v23, %s5359_s26 }
  0x8f   : > { %4822 = vrot.lane.b32.xlu1 %v5484_v6, %s5355_s13  ;;  %v4846_v6 = vpack.i.bf16 %v5687_v58, %v5685_v57 }
  0x91   : > { %4817 = vrot.lane.b32.xlu0 %v4816_v3, %s5354_s10 }
  0x93   : > { %4832 = vrot.lane.b32.xlu1 %v5504_v23, %s5356_s21 }
  0x95   : > { %4827 = vrot.lane.b32.xlu0 %v5486_v9, %s5355_s13  ;;  %v5683_v56 = vpop.permute.xlu1 %4557 }
  0x97   : > { %v5689_v59 = vpop.permute.xlu0 %4547  ;;  %4842 = vrot.lane.b32.xlu1 %v4816_v3, %s5357_s24 }
  0x99   : > { %4837 = vrot.lane.b32.xlu0 %v5508_v27, %s5356_s21  ;;  %v5696_v23 = vpop.permute.xlu1 %4562 }
  0x9b   : > { %v5698_v60 = vpop.permute.xlu0 %4552  ;;  %4852 = vrot.lane.b32.xlu1 %v5486_v9, %s5358_s25  ;;  %v4876_v9 = vpack.i.bf16 %v5715_v4, %v5713_v2 }
  0x9d   : > { %4847 = vrot.lane.b32.xlu0 %v4846_v6, %s5357_s24  ;;  %v5703_v62 = vpop.permute.xlu1 %4572 }
  0x9f   : > { %v5705_v63 = vpop.permute.xlu0 %4567  ;;  %4862 = vrot.lane.b32.xlu1 %v5508_v27, %s5359_s26 }
  0xa1   : > { %4857 = vrot.lane.b32.xlu0 %v5490_v10, %s5358_s25  ;;  %v5711_v1 = vpop.permute.xlu1 %4582 }
  0xa3   : > { %v5717_v5 = vpop.permute.xlu0 %4577  ;;  %4872 = vrot.lane.b32.xlu1 %v4846_v6, %s5354_s10 }
  0xa5   : > { %4867 = vrot.lane.b32.xlu0 %v5510_v31, %s5359_s26  ;;  %v5724_v27 = vpop.permute.xlu1 %4592 }
  0xa7   : > { %v5726_v8 = vpop.permute.xlu0 %4587  ;;  %4882 = vrot.lane.b32.xlu1 %v5490_v10, %s5355_s13  ;;  %v5746_v10 = vld [vmem:[#allocation2 + $0x98] sm:$0xff] }
  0xa8   : > { %v4906_v21 = vpack.i.bf16 %v5746_v10, %v5744_v20 }
  0xa9   : > { %4877 = vrot.lane.b32.xlu0 %v4876_v9, %s5354_s10  ;;  %v5731_v11 = vpop.permute.xlu1 %4602 }
  0xaa   : > { %7812 = vst [vmem:[#allocation5_spill] sm:$0xff] %v5731_v11 }
  0xab   : > { %v5733_v12 = vpop.permute.xlu0 %4597  ;;  %4892 = vrot.lane.b32.xlu1 %v5510_v31, %s5356_s21 }
  0xac   : > { %7813 = vst [vmem:[#allocation6_spill] sm:$0xff] %v5733_v12 }
  0xad   : > { %4887 = vrot.lane.b32.xlu0 %v5494_v13, %s5355_s13  ;;  %v5739_v17 = vpop.permute.xlu1 %4612 }
  0xae   : > { %7814 = vst [vmem:[#allocation7_spill] sm:$0xff] %v5739_v17  ;;  %v4554_v17 = vunpack.i.l.bf16 %v5698_v60 }
  0xaf   : > { %v5741_v18 = vpop.permute.xlu0 %4607  ;;  %4902 = vrot.lane.b32.xlu1 %v4876_v9, %s5357_s24 }
  0xb0   : > { %7815 = vst [vmem:[#allocation8_spill] sm:$0xff] %v5741_v18  ;;  %v4549_v18 = vunpack.i.l.bf16 %v5689_v59 }
  0xb1   : > { %4897 = vrot.lane.b32.xlu0 %v5512_v32, %s5356_s21  ;;  %v5752_v31 = vpop.permute.xlu1 %4622 }
  0xb2   : > { %7816 = vst [vmem:[#allocation9_spill] sm:$0xff] %v5752_v31 }
  0xb3   : > { %v5754_v26 = vpop.permute.xlu0 %4617  ;;  %4912 = vrot.lane.b32.xlu1 %v5494_v13, %s5358_s25  ;;  %v459_v13 = vld [vmem:[#allocation2 + $0xa8] sm:$0xff] }
  0xb4   : > { %7817 = vst [vmem:[#allocation10_spill] sm:$0xff] %v5754_v26  ;;  %v4936_v38 = vpack.i.bf16 %v459_v13, %v5772_v37  ;;  %v463_v26 = vld [vmem:[#allocation2 + $0xc8] sm:$0xff] }
  0xb5   : > { %4907 = vrot.lane.b32.xlu0 %v4906_v21, %s5357_s24  ;;  %v5759_v28 = vpop.permute.xlu1 %4632 }
  0xb6   : > { %v4634_v37 = vunpack.i.l.bf16 %v5759_v28 }
  0xb7   : > { %v5761_v29 = vpop.permute.xlu0 %4627  ;;  %4922 = vrot.lane.b32.xlu1 %v5512_v32, %s5359_s26 }
  0xb9   : > { %4917 = vrot.lane.b32.xlu0 %v5502_v19, %s5358_s25  ;;  %v5767_v30 = vpop.permute.xlu1 %4642 }
  0xbb   : > { %v5769_v36 = vpop.permute.xlu0 %4637  ;;  %4932 = vrot.lane.b32.xlu1 %v4906_v21, %s5354_s10 }
  0xbd   : > { %4927 = vrot.lane.b32.xlu0 %v5530_v47, %s5359_s26  ;;  %v5777_v54 = vpop.permute.xlu1 %4652 }
  0xbf   : > { %v5779_v32 = vpop.permute.xlu0 %4647  ;;  %4942 = vrot.lane.b32.xlu1 %v5502_v19, %s5355_s13  ;;  %v5799_v19 = vld [vmem:[#allocation2 + $0xb8] sm:$0xff] }
  0xc0   : > { %7823 = vst [vmem:[#allocation16_spill] sm:$0xff] %v5799_v19  ;;  %v4966_v53 = vpack.i.bf16 %v5799_v19, %v5797_v52  ;;  %v4635_v19 = vunpack.i.h.bf16 %v5759_v28  ;;  %v4629_v52 = vunpack.i.l.bf16 %v5761_v29 }
  0xc1   : > { %4937 = vrot.lane.b32.xlu0 %v4936_v38, %s5354_s10  ;;  %v5784_v61 = vpop.permute.xlu1 %4662 }
  0xc3   : > { %v5786_v45 = vpop.permute.xlu0 %4657  ;;  %4952 = vrot.lane.b32.xlu1 %v5530_v47, %s5356_s21 }
  0xc4   : > { %7819 = vst [vmem:[#allocation12_spill] sm:$0xff] %v5786_v45 }
  0xc5   : > { %4947 = vrot.lane.b32.xlu0 %v5520_v34, %s5355_s13  ;;  %v5792_v46 = vpop.permute.xlu1 %4672 }
  0xc6   : > { %7820 = vst [vmem:[#allocation13_spill] sm:$0xff] %v5792_v46 }
  0xc7   : > { %v5794_v3 = vpop.permute.xlu0 %4667  ;;  %4962 = vrot.lane.b32.xlu1 %v4936_v38, %s5357_s24  ;;  %v462_v38 = vld [vmem:[#allocation2 + $0xc0] sm:$0xff] }
  0xc8   : > { %7821 = vst [vmem:[#allocation14_spill] sm:$0xff] %v5794_v3  ;;  %v4630_v3 = vunpack.i.h.bf16 %v5761_v29 }
  0xc9   : > { %4957 = vrot.lane.b32.xlu0 %v5550_v7, %s5356_s21  ;;  %v5805_v47 = vpop.permute.xlu1 %4682 }
  0xca   : > { %7824 = vst [vmem:[#allocation17_spill] sm:$0xff] %v5805_v47  ;;  %v438_v47 = vld [vmem:[#allocation2] sm:$0xff] }
  0xcb   : > { %v5807_v55 = vpop.permute.xlu0 %4677  ;;  %4972 = vrot.lane.b32.xlu1 %v5520_v34, %s5358_s25  ;;  %v4996_v34 = vpack.i.bf16 %v463_v26, %v462_v38  ;;  %v464_v26 = vld [vmem:[#allocation2 + $0xd0] sm:$0xff]  ;;  %v465_v38 = vld [vmem:[#allocation2 + $0xd8] sm:$0xff]  ;;  %v1420_v46 = vsel %vm381_vm0, %v438_v47, %v4549_v18 }
  0xcc   : > { %7825 = vst [vmem:[#allocation18_spill] sm:$0xff] %v5807_v55 }
  0xcd   : > { %4967 = vrot.lane.b32.xlu0 %v4966_v53, %s5357_s24  ;;  %v4693_v6 = vpop.permute.xlu1 %4692 }
  0xce   : > { %v4695_v12 = vunpack.i.h.bf16 %v4693_v6  ;;  %v4694_v11 = vunpack.i.l.bf16 %v4693_v6 }
  0xcf   : > { %v5812_v9 = vpop.permute.xlu0 %4687  ;;  %4982 = vrot.lane.b32.xlu1 %v5550_v7, %s5359_s26  ;;  %v4550_v7 = vunpack.i.h.bf16 %v5689_v59  ;;  %v5834_v59 = vpack.i.bf16 %v465_v38, %v464_v26  ;;  %v1422_v26 = vsel %vm381_vm0, %v5572_v15, %v4554_v17 }
  0xd0   : > { %7826 = vst [vmem:[#allocation19_spill] sm:$0xff] %v5812_v9  ;;  %v439_v9 = vld [vmem:[#allocation2 + $0x8] sm:$0xff]  ;;  %v1455_v29 = vsel %vm1452_vm2, %v1422_v26, %v4634_v37 }
  0xd1   : > { %4977 = vrot.lane.b32.xlu0 %v5516_v33, %s5358_s25  ;;  %v4703_v21 = vpop.permute.xlu1 %4702 }
  0xd2   : > { %v4705_v38 = vunpack.i.h.bf16 %v4703_v21  ;;  %v4704_v2 = vunpack.i.l.bf16 %v4703_v21 }
  0xd3   : > { %v5818_v13 = vpop.permute.xlu0 %4697  ;;  %4992 = vrot.lane.b32.xlu1 %v4966_v53, %s5354_s10  ;;  %v4555_v53 = vunpack.i.h.bf16 %v5698_v60 }
  0xd4   : > { %v4700_v18 = vunpack.i.h.bf16 %v5818_v13  ;;  %v4699_v47 = vunpack.i.l.bf16 %v5818_v13 }
  0xd5   : > { %4987 = vrot.lane.b32.xlu0 %v5566_v14, %s5359_s26  ;;  %v4713_v31 = vpop.permute.xlu1 %4712  ;;  %v1423_v28 = vsel %vm381_vm0, %v5574_v16, %v4555_v53  ;;  %v1453_v16 = vsel %vm1452_vm2, %v1420_v46, %v4629_v52 }
  0xd6   : > { %v4715_v17 = vunpack.i.h.bf16 %v4713_v31  ;;  %v4714_v6 = vunpack.i.l.bf16 %v4713_v31  ;;  %v1488_v46 = vsel %vm1485_vm3, %v1455_v29, %v4699_v47 }
  0xd7   : > { %v5825_v55 = vpop.permute.xlu0 %4707  ;;  %5002 = vrot.lane.b32.xlu1 %v5516_v33, %s5355_s13  ;;  %v1421_v33 = vsel %vm381_vm0, %v439_v9, %v4550_v7  ;;  %v1456_v9 = vsel %vm1452_vm2, %v1423_v28, %v4635_v19 }
  0xd8   : > { %v1454_v15 = vsel %vm1452_vm2, %v1421_v33, %v4630_v3  ;;  %v1489_v31 = vsel %vm1485_vm3, %v1456_v9, %v4700_v18  ;;  %v4710_v3 = vunpack.i.h.bf16 %v5825_v55 }
  0xd9   : > { %4997 = vrot.lane.b32.xlu0 %v4996_v34, %s5354_s10  ;;  %v4723_v60 = vpop.permute.xlu1 %4722  ;;  %v1487_v37 = vsel %vm1485_vm3, %v1454_v15, %v4695_v12 }
  0xda   : > { %v4725_v19 = vunpack.i.h.bf16 %v4723_v60  ;;  %v4724_v7 = vunpack.i.l.bf16 %v4723_v60  ;;  %v1520_v28 = vsel %vm1518_vm4, %v1487_v37, %v4705_v38 }
  0xdb   : > { %v4718_v4 = vpop.permute.xlu0 %4717  ;;  %5012 = vrot.lane.b32.xlu1 %v5566_v14, %s5356_s21  ;;  %v1486_v14 = vsel %vm1485_vm3, %v1453_v16, %v4694_v11  ;;  %v4709_v11 = vunpack.i.l.bf16 %v5825_v55 }
  0xdc   : > { %v1519_v13 = vsel %vm1518_vm4, %v1486_v14, %v4704_v2  ;;  %v1553_v2 = vsel %vm1551_vm5, %v1520_v28, %v4715_v17  ;;  %v4720_v52 = vunpack.i.h.bf16 %v4718_v4  ;;  %v4719_v60 = vunpack.i.l.bf16 %v4718_v4  ;;  %v528_v17 = vld [vmem:[#allocation2 + $0xd2] sm:$0xff] }
  0xdd   : > { %5007 = vrot.lane.b32.xlu0 %v5528_v40, %s5355_s13  ;;  %v4733_v21 = vpop.permute.xlu1 %4732  ;;  %v1552_v12 = vsel %vm1551_vm5, %v1519_v13, %v4714_v6  ;;  %v1586_v38 = vsel %vm1584_vm6, %v1553_v2, %v4725_v19  ;;  %v529_v6 = vld [vmem:[#allocation2 + $0xda] sm:$0xff]  ;;  %v1521_v19 = vsel %vm1518_vm4, %v1488_v46, %v4709_v11 }
  0xde   : > { %v4735_v26 = vunpack.i.h.bf16 %v4733_v21  ;;  %v4734_v45 = vunpack.i.l.bf16 %v4733_v21 }
  0xdf   : > { %v4728_v53 = vpop.permute.xlu0 %4727  ;;  %5022 = vrot.lane.b32.xlu1 %v4996_v34, %s5357_s24  ;;  %v1585_v34 = vsel %vm1584_vm6, %v1552_v12, %v4724_v7  ;;  %v1522_v7 = vsel %vm1518_vm4, %v1489_v31, %v4710_v3 }
  0xe0   : > { %v4730_v47 = vunpack.i.h.bf16 %v4728_v53  ;;  %v4729_v16 = vunpack.i.l.bf16 %v4728_v53  ;;  %v1618_v55 = vsel %vm1617_vm7, %v1585_v34, %v4734_v45  ;;  %v1619_v15 = vsel %vm1617_vm7, %v1586_v38, %v4735_v26  ;;  %v467_v38 = vld [vmem:[#allocation2 + $0xe8] sm:$0xff] }
  0xe1   : > { %5017 = vrot.lane.b32.xlu0 %v5585_v22, %s5356_s21  ;;  %v4743_v33 = vpop.permute.xlu1 %4742  ;;  %v1554_v53 = vsel %vm1551_vm5, %v1521_v19, %v4719_v60  ;;  %v1555_v13 = vsel %vm1551_vm5, %v1522_v7, %v4720_v52  ;;  %v5883_v26 = vpack.i.bf16 %v529_v6, %v528_v17  ;;  %v466_v60 = vld [vmem:[#allocation2 + $0xe0] sm:$0xff]  ;;  %v4565_v6 = vunpack.i.h.bf16 %v5696_v23 }
  0xe2   : > { %v4745_v29 = vunpack.i.h.bf16 %v4743_v33  ;;  %v4744_v9 = vunpack.i.l.bf16 %v4743_v33  ;;  %v1587_v12 = vsel %vm1584_vm6, %v1554_v53, %v4729_v16  ;;  %v1588_v2 = vsel %vm1584_vm6, %v1555_v13, %v4730_v47  ;;  %v531_v47 = vld [vmem:[#allocation2 + $0xea] sm:$0xff] }
  0xe3   : > { %v4738_v18 = vpop.permute.xlu0 %4737  ;;  %5032 = vrot.lane.b32.xlu1 %v5528_v40, %s5358_s25  ;;  %v4645_v19 = vunpack.i.h.bf16 %v5767_v30  ;;  %v4644_v7 = vunpack.i.l.bf16 %v5767_v30 }
  0xe4   : > { %v4740_v4 = vunpack.i.h.bf16 %v4738_v18  ;;  %v4739_v21 = vunpack.i.l.bf16 %v4738_v18  ;;  %v1651_v14 = vsel %vm1650_vm8, %v1618_v55, %v4744_v9  ;;  %v1652_v37 = vsel %vm1650_vm8, %v1619_v15, %v4745_v29  ;;  %v530_v18 = vld [vmem:[#allocation2 + $0xe2] sm:$0xff] }
  0xe5   : > { %5027 = vrot.lane.b32.xlu0 %v5834_v59, %s5357_s24  ;;  %v5879_v40 = vpop.permute.xlu1 %4752  ;;  %v1683_v45 = vpack.c.bf16 %v1652_v37, %v1651_v14  ;;  %v4560_v55 = vunpack.i.h.bf16 %v5683_v56  ;;  %v4559_v15 = vunpack.i.l.bf16 %v5683_v56  ;;  %v469_v14 = vld [vmem:[#allocation2 + $0xf8] sm:$0xff]  ;;  %v5911_v37 = vpack.i.bf16 %v531_v47, %v530_v18 }
  0xe6   : > { %v1620_v46 = vsel %vm1617_vm7, %v1587_v12, %v4739_v21  ;;  %v1621_v31 = vsel %vm1617_vm7, %v1588_v2, %v4740_v4  ;;  %v4564_v4 = vunpack.i.l.bf16 %v5696_v23  ;;  %v468_v21 = vld [vmem:[#allocation2 + $0xf0] sm:$0xff]  ;;  %v4639_v23 = vunpack.i.l.bf16 %v5769_v36 }
  0xe7   : > { %v4748_v28 = vpop.permute.xlu0 %4747  ;;  %5042 = vrot.lane.b32.xlu1 %v5585_v22, %s5359_s26  ;;  %4341 = vmatprep.mubr.msk.bf16.mxu0 %vm1735_vm9, %v1683_v45  ;;  %v5898_v22 = vpack.i.bf16 %v467_v38, %v466_v60  ;;  %v5917_v56 = vpack.i.bf16 %v469_v14, %v468_v21  ;;  %v4640_v45 = vunpack.i.h.bf16 %v5769_v36  ;;  %v1425_v13 = vsel %vm381_vm0, %v5589_v25, %v4560_v55 }
  0xe8   : > { %v4750_v33 = vunpack.i.h.bf16 %v4748_v28  ;;  %v4749_v34 = vunpack.i.l.bf16 %v4748_v28  ;;  %v1424_v28 = vsel %vm381_vm0, %v5587_v24, %v4559_v15  ;;  %v4755_v12 = vunpack.i.h.bf16 %v5879_v40 }
  0xe9   : > { %5037 = vrot.lane.b32.xlu0 %v5524_v39, %s5358_s25  ;;  %v4763_v52 = vpop.permute.xlu1 %4762  ;;  %v4754_v30 = vunpack.i.l.bf16 %v5879_v40  ;;  %v1458_v40 = vsel %vm1452_vm2, %v1425_v13, %v4640_v45 }
  0xea   : > { %v1653_v3 = vsel %vm1650_vm8, %v1620_v46, %v4749_v34  ;;  %v1654_v11 = vsel %vm1650_vm8, %v1621_v31, %v4750_v33  ;;  %v1426_v33 = vsel %vm381_vm0, %v5611_v35, %v4564_v4  ;;  %v4765_v34 = vunpack.i.h.bf16 %v4763_v52 }
  0xeb   : > { %v1684_v29 = vpack.c.bf16 %v1654_v11, %v1653_v3  ;;  %v4758_v9 = vpop.permute.xlu0 %4757  ;;  %5052 = vrot.lane.b32.xlu1 %v5883_v26, %s5353_s5  ;;  %v4764_v36 = vunpack.i.l.bf16 %v4763_v52  ;;  %v1459_v24 = vsel %vm1452_vm2, %v1426_v33, %v4644_v7  ;;  %v1491_v60 = vsel %vm1485_vm3, %v1458_v40, %v4755_v12  ;;  %v532_v33 = vld [vmem:[#allocation2 + $0xf2] sm:$0xff] }
  0xec   : > { %v4760_v46 = vunpack.i.h.bf16 %v4758_v9  ;;  %v4759_v31 = vunpack.i.l.bf16 %v4758_v9  ;;  %v1524_v9 = vsel %vm1518_vm4, %v1491_v60, %v4765_v34  ;;  %v533_v34 = vld [vmem:[#allocation2 + $0xfa] sm:$0xff] }
  0xed   : > { %5047 = vrot.lane.b32.xlu0 %v5883_v26, %s5359_s26  ;;  %4342 = vmatmul.mubr.msk.bf16.vlgmr.msra.gmra.mrb[0].mxu0 %vm1735_vm9, %v1684_v29  ;;  %v4773_v16 = vpop.permute.xlu1 %4772 }
  0xee   : > { %v4775_v3 = vunpack.i.h.bf16 %v4773_v16  ;;  %v4774_v35 = vunpack.i.l.bf16 %v4773_v16  ;;  %v1492_v16 = vsel %vm1485_vm3, %v1459_v24, %v4759_v31 }
  0xef   : > { %v5905_v17 = vpop.permute.xlu0 %4767  ;;  %5062 = vrot.lane.b32.xlu1 %v5898_v22, %s5354_s10 }
  0xf0   : > { %v4769_v4 = vunpack.i.l.bf16 %v5905_v17  ;;  %v1557_v14 = vsel %vm1551_vm5, %v1524_v9, %v4775_v3 }
  0xf1   : > { %5057 = vrot.lane.b32.xlu0 %v5834_v59, %s5354_s10  ;;  %v4783_v53 = vpop.permute.xlu1 %4782  ;;  %v1427_v59 = vsel %vm381_vm0, %v5613_v0, %v4565_v6  ;;  %v1457_v0 = vsel %vm1452_vm2, %v1424_v28, %v4639_v23  ;;  %v4770_v6 = vunpack.i.h.bf16 %v5905_v17 }
  0xf2   : > { %v1460_v25 = vsel %vm1452_vm2, %v1427_v59, %v4645_v19  ;;  %v1490_v52 = vsel %vm1485_vm3, %v1457_v0, %v4754_v30  ;;  %v4785_v38 = vunpack.i.h.bf16 %v4783_v53  ;;  %v4784_v29 = vunpack.i.l.bf16 %v4783_v53 }
  0xf3   : > { %v4778_v2 = vpop.permute.xlu0 %4777  ;;  %5072 = vrot.lane.b32.xlu1 %v5538_v49, %s5355_s13  ;;  %v1523_v47 = vsel %vm1518_vm4, %v1490_v52, %v4764_v36  ;;  %v1493_v15 = vsel %vm1485_vm3, %v1460_v25, %v4760_v46  ;;  %v1525_v46 = vsel %vm1518_vm4, %v1492_v16, %v4769_v4  ;;  %v5969_v52 = vpack.i.bf16 %v533_v34, %v532_v33  ;;  %v535_v4 = vld [vmem:[#allocation2 + $0x108] sm:$0xff] }
  0xf4   : > { %v1556_v21 = vsel %vm1551_vm5, %v1523_v47, %v4774_v35  ;;  %v4780_v19 = vunpack.i.h.bf16 %v4778_v2  ;;  %v4779_v7 = vunpack.i.l.bf16 %v4778_v2  ;;  %v1590_v53 = vsel %vm1584_vm6, %v1557_v14, %v4785_v38  ;;  %v537_v14 = vld [vmem:[#allocation2 + $0x109] sm:$0xff] }
  0xf5   : > { %5067 = vrot.lane.b32.xlu0 %v5524_v39, %s5355_s13  ;;  %v4793_v11 = vpop.permute.xlu1 %4792  ;;  %v1589_v23 = vsel %vm1584_vm6, %v1556_v21, %v4784_v29  ;;  %v1526_v31 = vsel %vm1518_vm4, %v1493_v15, %v4770_v6  ;;  %v534_v6 = vld [vmem:[#allocation2 + $0x100] sm:$0xff]  ;;  %v4650_v34 = vunpack.i.h.bf16 %v5779_v32 }
  0xf6   : > { %v4795_v55 = vunpack.i.h.bf16 %v4793_v11  ;;  %v4794_v39 = vunpack.i.l.bf16 %v4793_v11  ;;  %v1558_v3 = vsel %vm1551_vm5, %v1525_v46, %v4779_v7  ;;  %v1559_v35 = vsel %vm1551_vm5, %v1526_v31, %v4780_v19  ;;  %v536_v21 = vld [vmem:[#allocation2 + $0x101] sm:$0xff]  ;;  %v539_v7 = vld [vmem:[#allocation2 + $0x10a] sm:$0xff] }
  0xf7   : > { %v4788_v18 = vpop.permute.xlu0 %4787  ;;  %5082 = vrot.lane.b32.xlu1 %v5911_v37, %s5356_s21  ;;  %v538_v19 = vld [vmem:[#allocation2 + $0x102] sm:$0xff] }
  0xf8   : > { %v1622_v30 = vsel %vm1617_vm7, %v1589_v23, %v4794_v39  ;;  %v1623_v17 = vsel %vm1617_vm7, %v1590_v53, %v4795_v55  ;;  %v4790_v59 = vunpack.i.h.bf16 %v4788_v18  ;;  %v4574_v23 = vunpack.i.l.bf16 %v5703_v62 }
  0xf9   : > { %5077 = vrot.lane.b32.xlu0 %v5883_v26, %s5356_s21  ;;  %v4803_v45 = vpop.permute.xlu1 %4802  ;;  %v4789_v26 = vunpack.i.l.bf16 %v4788_v18  ;;  %v6007_v33 = vpack.i.bf16 %v539_v7, %v538_v19 }
  0xfa   : > { %v4805_v13 = vunpack.i.h.bf16 %v4803_v45  ;;  %v4804_v28 = vunpack.i.l.bf16 %v4803_v45  ;;  %v1592_v38 = vsel %vm1584_vm6, %v1559_v35, %v4790_v59  ;;  %v4575_v45 = vunpack.i.h.bf16 %v5703_v62 }
  0xfb   : > { %v4798_v12 = vpop.permute.xlu0 %4797  ;;  %5092 = vrot.lane.b32.xlu1 %v5917_v56, %s5357_s24  ;;  %v1591_v60 = vsel %vm1584_vm6, %v1558_v3, %v4789_v26  ;;  %v6001_v59 = vpack.i.bf16 %v537_v14, %v536_v21  ;;  %v4655_v26 = vunpack.i.h.bf16 %v5777_v54  ;;  %v4654_v62 = vunpack.i.l.bf16 %v5777_v54 }
  0xfc   : > { %v1655_v2 = vsel %vm1650_vm8, %v1622_v30, %v4804_v28  ;;  %v1656_v36 = vsel %vm1650_vm8, %v1623_v17, %v4805_v13  ;;  %v4800_v25 = vunpack.i.h.bf16 %v4798_v12  ;;  %v4799_v24 = vunpack.i.l.bf16 %v4798_v12  ;;  %v5993_v28 = vld [vmem:[#allocation2 + $0x110] sm:$0xff]  ;;  %v5995_v12 = vld [vmem:[#allocation2 + $0x118] sm:$0xff] }
  0xfd   : > { %5087 = vrot.lane.b32.xlu0 %v5898_v22, %s5357_s24  ;;  %v1685_v40 = vpack.c.bf16 %v1656_v36, %v1655_v2  ;;  %v5965_v0 = vpop.permute.xlu1 %4812  ;;  %v5991_v13 = vpack.i.bf16 %v535_v4, %v534_v6  ;;  %v4570_v30 = vunpack.i.h.bf16 %v5705_v63  ;;  %v4569_v17 = vunpack.i.l.bf16 %v5705_v63 }
  0xfe   : > { %v1624_v18 = vsel %vm1617_vm7, %v1591_v60, %v4799_v24  ;;  %v1625_v47 = vsel %vm1617_vm7, %v1592_v38, %v4800_v25  ;;  %v4649_v2 = vunpack.i.l.bf16 %v5779_v32  ;;  %v5161_v63 = vpack.i.bf16 %v5995_v12, %v5993_v28 }
  0xff   : > { %v4808_v11 = vpop.permute.xlu0 %4807  ;;  %5102 = vrot.lane.b32.xlu1 %v5534_v48, %s5358_s25  ;;  %4345 = vmatprep.mubr.msk.bf16.mxu0 %vm1735_vm9, %v1685_v40  ;;  %v1431_v25 = vsel %vm381_vm0, %v5648_v44, %v4575_v45  ;;  %v1430_v24 = vsel %vm381_vm0, %v5646_v43, %v4574_v23  ;;  %v4815_v54 = vunpack.i.h.bf16 %v5965_v0  ;;  %v1429_v31 = vsel %vm381_vm0, %v5632_v42, %v4570_v30 }
 0x100   : > { %v4810_v29 = vunpack.i.h.bf16 %v4808_v11  ;;  %v4809_v22 = vunpack.i.l.bf16 %v4808_v11  ;;  %v1428_v32 = vsel %vm381_vm0, %v5630_v41, %v4569_v17  ;;  %v1464_v44 = vsel %vm1452_vm2, %v1431_v25, %v4655_v26  ;;  %v543_v25 = vld [vmem:[#allocation2 + $0x119] sm:$0xff] }
 0x101   : > { %5097 = vrot.lane.b32.xlu0 %v5538_v49, %s5358_s25  ;;  %v4823_v39 = vpop.permute.xlu1 %4822  ;;  %v1463_v43 = vsel %vm1452_vm2, %v1430_v24, %v4654_v62  ;;  %v1462_v42 = vsel %vm1452_vm2, %v1429_v31, %v4650_v34  ;;  %v4585_v28 = vunpack.i.h.bf16 %v5711_v1  ;;  %v4584_v12 = vunpack.i.l.bf16 %v5711_v1 }
 0x102   : > { %v1657_v9 = vsel %vm1650_vm8, %v1624_v18, %v4809_v22  ;;  %v1658_v55 = vsel %vm1650_vm8, %v1625_v47, %v4810_v29  ;;  %v4825_v40 = vunpack.i.h.bf16 %v4823_v39  ;;  %v4824_v3 = vunpack.i.l.bf16 %v4823_v39 }
 0x103   : > { %v1686_v15 = vpack.c.bf16 %v1658_v55, %v1657_v9  ;;  %v4818_v16 = vpop.permute.xlu0 %4817  ;;  %5112 = vrot.lane.b32.xlu1 %v5969_v52, %s5359_s26  ;;  %v1495_v22 = vsel %vm1485_vm3, %v1462_v42, %v4815_v54  ;;  %v4589_v1 = vunpack.i.l.bf16 %v5726_v8 }
 0x104   : > { %v4820_v35 = vunpack.i.h.bf16 %v4818_v16  ;;  %v4819_v11 = vunpack.i.l.bf16 %v4818_v16  ;;  %v1528_v39 = vsel %vm1518_vm4, %v1495_v22, %v4825_v40  ;;  %v545_v22 = vld [vmem:[#allocation2 + $0x11a] sm:$0xff] }
 0x105   : > { %5107 = vrot.lane.b32.xlu0 %v5911_v37, %s5359_s26  ;;  %4346 = vmatmul.mubr.msk.bf16.gmra.mrb[4].mxu0 %vm1735_vm9, %v1686_v15  ;;  %v4833_v49 = vpop.permute.xlu1 %4832 }
 0x106   : > { %v4835_v60 = vunpack.i.h.bf16 %v4833_v49  ;;  %v4834_v41 = vunpack.i.l.bf16 %v4833_v49  ;;  %v1497_v16 = vsel %vm1485_vm3, %v1464_v44, %v4820_v35  ;;  %v1496_v6 = vsel %vm1485_vm3, %v1463_v43, %v4819_v11 }
 0x107   : > { %v5989_v53 = vpop.permute.xlu0 %4827  ;;  %5122 = vrot.lane.b32.xlu1 %v5969_v52, %s5353_s5 }
 0x108   : > { %v4830_v4 = vunpack.i.h.bf16 %v5989_v53  ;;  %v4829_v21 = vunpack.i.l.bf16 %v5989_v53  ;;  %v1561_v49 = vsel %vm1551_vm5, %v1528_v39, %v4835_v60 }
 0x109   : > { %5117 = vrot.lane.b32.xlu0 %v5911_v37, %s5353_s5  ;;  %v4843_v36 = vpop.permute.xlu1 %4842  ;;  %v4814_v37 = vunpack.i.l.bf16 %v5965_v0  ;;  %v1461_v0 = vsel %vm1452_vm2, %v1428_v32, %v4649_v2  ;;  %s3891_s5 = sshll.u32 %s7901_s15, 1 }
 0x10a   : > { %v4845_v18 = vunpack.i.h.bf16 %v4843_v36  ;;  %v4844_v47 = vunpack.i.l.bf16 %v4843_v36  ;;  %v542_v36 = vld [vmem:[#allocation2 + $0x111] sm:$0xff]  ;;  %v1529_v31 = vsel %vm1518_vm4, %v1496_v6, %v4829_v21  ;;  %v1530_v32 = vsel %vm1518_vm4, %v1497_v16, %v4830_v4  ;;  %s7469_s8 = scalar_lea.vmem %s7790_s4, %s3891_s5 }
 0x10b   : > { %v4838_v46 = vpop.permute.xlu0 %4837  ;;  %5132 = vrot.lane.b32.xlu1 %v5991_v13, %s5354_s10  ;;  %v1494_v29 = vsel %vm1485_vm3, %v1461_v0, %v4814_v37  ;;  %v5171_v11 = vpack.i.bf16 %v543_v25, %v542_v36  ;;  %v4594_v16 = vunpack.i.l.bf16 %v5724_v27  ;;  %v4590_v6 = vunpack.i.h.bf16 %v5726_v8 }
 0x10c   : > { %v1527_v55 = vsel %vm1518_vm4, %v1494_v29, %v4824_v3  ;;  %v4840_v19 = vunpack.i.h.bf16 %v4838_v46  ;;  %v4839_v7 = vunpack.i.l.bf16 %v4838_v46  ;;  %v1594_v30 = vsel %vm1584_vm6, %v1561_v49, %v4845_v18  ;;  %v544_v29 = vld [vmem:[#allocation2 + $0x112] sm:$0xff] }
 0x10d   : > { %5127 = vrot.lane.b32.xlu0 %v5917_v56, %s5354_s10  ;;  %v4853_v38 = vpop.permute.xlu1 %4852  ;;  %v1560_v14 = vsel %vm1551_vm5, %v1527_v55, %v4834_v41  ;;  %v6100_v8 = vsel %vm381_vm0, %v5744_v20, %v4594_v16 }
 0x10e   : > { %v4855_v15 = vunpack.i.h.bf16 %v4853_v38  ;;  %v4854_v56 = vunpack.i.l.bf16 %v4853_v38  ;;  %v1593_v23 = vsel %vm1584_vm6, %v1560_v14, %v4844_v47  ;;  %v1562_v44 = vsel %vm1551_vm5, %v1529_v31, %v4839_v7 }
 0x10f   : > { %v4848_v9 = vpop.permute.xlu0 %4847  ;;  %5142 = vrot.lane.b32.xlu1 %v6001_v59, %s5355_s13  ;;  %v1563_v43 = vsel %vm1551_vm5, %v1530_v32, %v4840_v19  ;;  %v1435_v14 = vsel %vm381_vm0, %v5687_v58, %v4585_v28  ;;  %v7827_v19 = vld [vmem:[#allocation12_spill] sm:$0xff] }
 0x110   : > { %v1626_v34 = vsel %vm1617_vm7, %v1593_v23, %v4854_v56  ;;  %v1627_v53 = vsel %vm1617_vm7, %v1594_v30, %v4855_v15  ;;  %v4850_v2 = vunpack.i.h.bf16 %v4848_v9  ;;  %v5181_v15 = vpack.i.bf16 %v545_v22, %v544_v29 }
 0x111   : > { %5137 = vrot.lane.b32.xlu0 %v5534_v48, %s5355_s13  ;;  %v4863_v45 = vpop.permute.xlu1 %4862  ;;  %v4849_v48 = vunpack.i.l.bf16 %v4848_v9  ;;  %v4595_v56 = vunpack.i.h.bf16 %v5724_v27  ;;  %v4660_v20 = vunpack.i.h.bf16 %v7827_v19 }
 0x112   : > { %v4865_v17 = vunpack.i.h.bf16 %v4863_v45  ;;  %v4864_v26 = vunpack.i.l.bf16 %v4863_v45  ;;  %v1596_v42 = vsel %vm1584_vm6, %v1563_v43, %v4850_v2  ;;  %v7829_v45 = vld [vmem:[#allocation4_spill] sm:$0xff]  ;;  %v7831_v2 = vld [vmem:[#allocation6_spill] sm:$0xff] }
 0x113   : > { %v4858_v62 = vpop.permute.xlu0 %4857  ;;  %5152 = vrot.lane.b32.xlu1 %v6007_v33, %s5356_s21  ;;  %v1595_v0 = vsel %vm1584_vm6, %v1562_v44, %v4849_v48  ;;  %v6104_v58 = vsel %vm381_vm0, %v5746_v10, %v4595_v56  ;;  %v7830_v10 = vld [vmem:[#allocation5_spill] sm:$0xff]  ;;  %v4600_v48 = vunpack.i.h.bf16 %v7831_v2 }
 0x114   : > { %v1659_v24 = vsel %vm1650_vm8, %v1626_v34, %v4864_v26  ;;  %v1660_v54 = vsel %vm1650_vm8, %v1627_v53, %v4865_v17  ;;  %v4860_v37 = vunpack.i.h.bf16 %v4858_v62  ;;  %v4859_v46 = vunpack.i.l.bf16 %v4858_v62 }
 0x115   : > { %5147 = vrot.lane.b32.xlu0 %v5969_v52, %s5356_s21  ;;  %v1687_v40 = vpack.c.bf16 %v1660_v54, %v1659_v24  ;;  %v6057_v3 = vpop.permute.xlu1 %4872  ;;  %v4605_v17 = vunpack.i.h.bf16 %v7830_v10  ;;  %v4664_v26 = vunpack.i.l.bf16 %v5784_v61  ;;  %v4604_v53 = vunpack.i.l.bf16 %v7830_v10 }
 0x116   : > { %v1628_v52 = vsel %vm1617_vm7, %v1595_v0, %v4859_v46  ;;  %v1629_v38 = vsel %vm1617_vm7, %v1596_v42, %v4860_v37  ;;  %v4874_v23 = vunpack.i.l.bf16 %v6057_v3  ;;  %v4875_v62 = vunpack.i.h.bf16 %v6057_v3 }
 0x117   : > { %v4868_v35 = vpop.permute.xlu0 %4867  ;;  %5162 = vrot.lane.b32.xlu1 %v5161_v63, %s5357_s24  ;;  %4349 = vmatprep.mubr.msk.bf16.mxu0 %vm1735_vm9, %v1687_v40  ;;  %v4580_v63 = vunpack.i.h.bf16 %v5717_v5 }
 0x118   : > { %v4870_v60 = vunpack.i.h.bf16 %v4868_v35  ;;  %v4869_v41 = vunpack.i.l.bf16 %v4868_v35 }
 0x119   : > { %5157 = vrot.lane.b32.xlu0 %v5991_v13, %s5357_s24  ;;  %v4883_v9 = vpop.permute.xlu1 %4882  ;;  %v4579_v13 = vunpack.i.l.bf16 %v5717_v5  ;;  %v1434_v5 = vsel %vm381_vm0, %v5685_v57, %v4584_v12  ;;  %v1433_v27 = vsel %vm381_vm0, %v5666_v51, %v4580_v63  ;;  %v4659_v57 = vunpack.i.l.bf16 %v7827_v19  ;;  %v7828_v51 = vld [vmem:[#allocation3_spill] sm:$0xff] }
 0x11a   : > { %v1661_v18 = vsel %vm1650_vm8, %v1628_v52, %v4869_v41  ;;  %v1662_v47 = vsel %vm1650_vm8, %v1629_v38, %v4870_v60  ;;  %v6111_v7 = vsel %vm381_vm0, %v7828_v51, %v4589_v1  ;;  %v4885_v25 = vunpack.i.h.bf16 %v4883_v9 }
 0x11b   : > { %v1688_v55 = vpack.c.bf16 %v1662_v47, %v1661_v18  ;;  %v4878_v39 = vpop.permute.xlu0 %4877  ;;  %5172 = vrot.lane.b32.xlu1 %v5171_v11, %s5358_s25  ;;  %v1432_v49 = vsel %vm381_vm0, %v5664_v50, %v4579_v13  ;;  %v6115_v50 = vsel %vm381_vm0, %v7829_v45, %v4590_v6  ;;  %v1466_v31 = vsel %vm1452_vm2, %v1433_v27, %v4660_v20  ;;  %v7832_v45 = vld [vmem:[#allocation13_spill] sm:$0xff] }
 0x11c   : > { %v1465_v24 = vsel %vm1452_vm2, %v1432_v49, %v4659_v57  ;;  %v4880_v54 = vunpack.i.h.bf16 %v4878_v39  ;;  %v4879_v37 = vunpack.i.l.bf16 %v4878_v39  ;;  %v1467_v44 = vsel %vm1452_vm2, %v1434_v5, %v4664_v26 }
 0x11d   : > { %5167 = vrot.lane.b32.xlu0 %v6001_v59, %s5358_s25  ;;  %4350 = vmatmul.mubr.msk.bf16.gmra.mrb[8].mxu0 %vm1735_vm9, %v1688_v55  ;;  %v4893_v4 = vpop.permute.xlu1 %4892  ;;  %v4665_v59 = vunpack.i.h.bf16 %v5784_v61  ;;  %v1498_v61 = vsel %vm1485_vm3, %v1465_v24, %v4874_v23  ;;  %v1499_v43 = vsel %vm1485_vm3, %v1466_v31, %v4875_v62  ;;  %v4675_v20 = vunpack.i.h.bf16 %v7832_v45  ;;  %v7833_v23 = vld [vmem:[#allocation15_spill] sm:$0xff] }
 0x11e   : > { %v4894_v46 = vunpack.i.l.bf16 %v4893_v4  ;;  %v4895_v32 = vunpack.i.h.bf16 %v4893_v4  ;;  %v1532_v42 = vsel %vm1518_vm4, %v1499_v43, %v4885_v25  ;;  %v1500_v29 = vsel %vm1485_vm3, %v1467_v44, %v4879_v37  ;;  %v7834_v37 = vld [vmem:[#allocation14_spill] sm:$0xff]  ;;  %v7835_v43 = vld [vmem:[#allocation11_spill] sm:$0xff] }
 0x11f   : > { %v6086_v21 = vpop.permute.xlu0 %4887  ;;  %5182 = vrot.lane.b32.xlu1 %v5181_v15, %s5359_s26  ;;  %v1468_v36 = vsel %vm1452_vm2, %v1435_v14, %v4665_v59  ;;  %v4599_v59 = vunpack.i.l.bf16 %v7831_v2  ;;  %v2239_v24 = vlaneseq }
 0x120   : > { %v4889_v60 = vunpack.i.l.bf16 %v6086_v21  ;;  %v1501_v38 = vsel %vm1485_vm3, %v1468_v36, %v4880_v54  ;;  %v4890_v18 = vunpack.i.h.bf16 %v6086_v21  ;;  %v1565_v47 = vsel %vm1551_vm5, %v1532_v42, %v4895_v32 }
 0x121   : > { %5177 = vrot.lane.b32.xlu0 %v6007_v33, %s5359_s26  ;;  %v4903_v30 = vpop.permute.xlu1 %4902  ;;  %v4884_v33 = vunpack.i.l.bf16 %v4883_v9  ;;  %v4674_v54 = vunpack.i.l.bf16 %v7832_v45  ;;  %v6164_v44 = vshrl.u32 %v2239_v24, 7 }
 0x122   : > { %v4904_v40 = vunpack.i.l.bf16 %v4903_v30  ;;  %v4905_v11 = vunpack.i.h.bf16 %v4903_v30  ;;  %v1533_v16 = vsel %vm1518_vm4, %v1500_v29, %v4889_v60  ;;  %v1534_v49 = vsel %vm1518_vm4, %v1501_v38, %v4890_v18 }
 0x123   : > { %v4898_v34 = vpop.permute.xlu0 %4897  ;;  %v1531_v35 = vsel %vm1518_vm4, %v1498_v61, %v4884_v33  ;;  %v6151_v30 = vsel %vm381_vm0, %v7833_v23, %v4604_v53  ;;  %v4669_v61 = vunpack.i.l.bf16 %v7834_v37  ;;  %v1471_v18 = vsel %vm1452_vm2, %v6100_v8, %v4674_v54 }
 0x124   : > { %v1564_v22 = vsel %vm1551_vm5, %v1531_v35, %v4894_v46  ;;  %v4900_v55 = vunpack.i.h.bf16 %v4898_v34  ;;  %v4899_v39 = vunpack.i.l.bf16 %v4898_v34  ;;  %v1598_v12 = vsel %vm1584_vm6, %v1565_v47, %v4905_v11  ;;  %v7836_v11 = vld [vmem:[#allocation16_spill] sm:$0xff] }
 0x125   : > { %v4913_v3 = vpop.permute.xlu1 %4912  ;;  %v1597_v9 = vsel %vm1584_vm6, %v1564_v22, %v4904_v40  ;;  %v4670_v46 = vunpack.i.h.bf16 %v7834_v37  ;;  %v6168_v35 = vsel %vm381_vm0, %v7835_v43, %v4599_v59  ;;  %v2242_v22 = vadd.s32 16, %v6164_v44 }
 0x126   : > { %v4915_v41 = vunpack.i.h.bf16 %v4913_v3  ;;  %v4914_v52 = vunpack.i.l.bf16 %v4913_v3  ;;  %v1566_v19 = vsel %vm1551_vm5, %v1533_v16, %v4899_v39  ;;  %v1567_v26 = vsel %vm1551_vm5, %v1534_v49, %v4900_v55 }
 0x127   : > { %v4908_v0 = vpop.permute.xlu0 %4907 }
 0x128   : > { %v4909_v63 = vunpack.i.l.bf16 %v4908_v0  ;;  %v1630_v6 = vsel %vm1617_vm7, %v1597_v9, %v4914_v52  ;;  %v1631_v1 = vsel %vm1617_vm7, %v1598_v12, %v4915_v41  ;;  %v4910_v4 = vunpack.i.h.bf16 %v4908_v0 }
 0x129   : > { %v4923_v28 = vpop.permute.xlu1 %4922  ;;  %v6174_v0 = vsel %vm381_vm0, %v7836_v11, %v4605_v17  ;;  %v1472_v52 = vsel %vm1452_vm2, %v6104_v58, %v4675_v20  ;;  %v6183_v17 = vstv %s3913_s27  ;;  %v1469_v9 = vsel %vm1452_vm2, %v6111_v7, %v4669_v61 }
 0x12a   : > { %v4925_v15 = vunpack.i.h.bf16 %v4923_v28  ;;  %v4924_v13 = vunpack.i.l.bf16 %v4923_v28  ;;  %v1599_v62 = vsel %vm1584_vm6, %v1566_v19, %v4909_v63  ;;  %v1600_v34 = vsel %vm1584_vm6, %v1567_v26, %v4910_v4 }
 0x12b   : > { %v4918_v56 = vpop.permute.xlu0 %4917  ;;  %v1470_v58 = vsel %vm1452_vm2, %v6115_v50, %v4670_v46  ;;  %v6190_v39 = vadd.s32 %v6183_v17, %v2242_v22  ;;  %v2243_v28 = vadd.s32 24, %v6164_v44 }
 0x12c   : > { %v1663_v21 = vsel %vm1650_vm8, %v1630_v6, %v4924_v13  ;;  %v1664_v14 = vsel %vm1650_vm8, %v1631_v1, %v4925_v15  ;;  %v4920_v5 = vunpack.i.h.bf16 %v4918_v56  ;;  %v4919_v27 = vunpack.i.l.bf16 %v4918_v56 }
 0x12d   : > { %v1689_v57 = vpack.c.bf16 %v1664_v14, %v1663_v21  ;;  %v4933_v51 = vpop.permute.xlu1 %4932  ;;  %v6196_v15 = vadd.s32 %v6183_v17, %v6164_v44  ;;  %v2241_v13 = vadd.s32 8, %v6164_v44  ;;  %v2307_v56 = vcvt.s32.f32 %v6190_v39 }
 0x12e   : > { %v1632_v53 = vsel %vm1617_vm7, %v1599_v62, %v4919_v27  ;;  %v1633_v31 = vsel %vm1617_vm7, %v1600_v34, %v4920_v5  ;;  %v4934_v42 = vunpack.i.l.bf16 %v4933_v51  ;;  %v4935_v38 = vunpack.i.h.bf16 %v4933_v51 }
 0x12f   : > { %v4928_v33 = vpop.permute.xlu0 %4927  ;;  %4353 = vmatprep.mubr.msk.bf16.mxu0 %vm1735_vm9, %v1689_v57  ;;  %v6203_v16 = vadd.s32 %v6183_v17, %v2243_v28  ;;  %v2305_v4 = vcvt.s32.f32 %v6196_v15  ;;  %v6209_v21 = vadd.s32 %v6183_v17, %v2241_v13  ;;  %v2339_v59 = vmul.f32 0.0625, %v2307_v56 }
 0x130   : > { %v4930_v36 = vunpack.i.h.bf16 %v4928_v33  ;;  %v4929_v25 = vunpack.i.l.bf16 %v4928_v33  ;;  %v1502_v8 = vsel %vm1485_vm3, %v1469_v9, %v4934_v42  ;;  %v1503_v7 = vsel %vm1485_vm3, %v1470_v58, %v4935_v38 }
 0x131   : > { %v4943_v3 = vpop.permute.xlu1 %4942  ;;  %v2308_v49 = vcvt.s32.f32 %v6203_v16  ;;  %v2337_v20 = vmul.f32 0.0625, %v2305_v4  ;;  %v2371_v62 = vfloor.f32 %v2339_v59  ;;  %v2306_v24 = vcvt.s32.f32 %v6209_v21 }
 0x132   : > { %v1665_v32 = vsel %vm1650_vm8, %v1632_v53, %v4929_v25  ;;  %v1666_v40 = vsel %vm1650_vm8, %v1633_v31, %v4930_v36  ;;  %v4944_v29 = vunpack.i.l.bf16 %v4943_v3  ;;  %v4945_v47 = vunpack.i.h.bf16 %v4943_v3 }
 0x133   : > { %v1690_v60 = vpack.c.bf16 %v1666_v40, %v1665_v32  ;;  %v4938_v41 = vpop.permute.xlu0 %4937  ;;  %v2340_v33 = vmul.f32 0.0625, %v2308_v49  ;;  %v2369_v25 = vfloor.f32 %v2337_v20  ;;  %v4389_v53 = vtrunc.f32 %v2371_v62 }
 0x134   : > { %v4940_v10 = vunpack.i.h.bf16 %v4938_v41  ;;  %v4939_v12 = vunpack.i.l.bf16 %v4938_v41  ;;  %v1535_v50 = vsel %vm1518_vm4, %v1502_v8, %v4944_v29  ;;  %v1536_v6 = vsel %vm1518_vm4, %v1503_v7, %v4945_v47 }
 0x135   : > { %4354 = vmatmul.mubr.msk.bf16.gmra.mrb[12].mxu0 %vm1735_vm9, %v1690_v60  ;;  %v4953_v55 = vpop.permute.xlu1 %4952  ;;  %v2372_v31 = vfloor.f32 %v2340_v33  ;;  %v4385_v43 = vtrunc.f32 %v2369_v25  ;;  %v4390_v41 = vcvt.f32.s32 %v4389_v53  ;;  %v2338_v22 = vmul.f32 0.0625, %v2306_v24  ;;  %v7837_v53 = vld [vmem:[#allocation7_spill] sm:$0xff] }
 0x136   : > { %v1505_v1 = vsel %vm1485_vm3, %v1472_v52, %v4940_v10  ;;  %v4955_v14 = vunpack.i.h.bf16 %v4953_v55  ;;  %v4954_v5 = vunpack.i.l.bf16 %v4953_v55  ;;  %v1504_v19 = vsel %vm1485_vm3, %v1471_v18, %v4939_v12 }
 0x137   : > { %v4948_v63 = vpop.permute.xlu0 %4947  ;;  %v4386_v29 = vcvt.f32.s32 %v4385_v43  ;;  %v2435_v9 = vmul.u32 16, %v4390_v41  ;;  %v4391_v58 = vtrunc.f32 %v2372_v31  ;;  %v3916_v4 = vadd.s32 4294967295, %v4390_v41 }
 0x138   : > { %v4950_v57 = vunpack.i.h.bf16 %v4948_v63  ;;  %v4949_v51 = vunpack.i.l.bf16 %v4948_v63  ;;  %v1568_v54 = vsel %vm1551_vm5, %v1535_v50, %v4954_v5  ;;  %v1569_v37 = vsel %vm1551_vm5, %v1536_v6, %v4955_v14 }
 0x139   : > { %v4963_v27 = vpop.permute.xlu1 %4962  ;;  %v2433_v63 = vmul.u32 16, %v4386_v29  ;;  %v2467_v56 = vsub.s32 %v6190_v39, %v2435_v9  ;;  %v2370_v49 = vfloor.f32 %v2338_v22  ;;  %v6232_v20 = vcvt.f32.s32 %v4391_v58 }
 0x13a   : > { %v4965_v23 = vunpack.i.h.bf16 %v4963_v27  ;;  %v4964_v26 = vunpack.i.l.bf16 %v4963_v27  ;;  %v1537_v61 = vsel %vm1518_vm4, %v1504_v19, %v4949_v51  ;;  %v1538_v32 = vsel %vm1518_vm4, %v1505_v1, %v4950_v57 }
 0x13b   : > { %v4958_v45 = vpop.permute.xlu0 %4957  ;;  %v2465_v14 = vsub.s32 %v6196_v15, %v2433_v63  ;;  %vm2499_vm10 = vcmp.lt.s32.totalorder %v2467_v56, 0  ;;  %v3914_v25 = vadd.s32 4294967295, %v4386_v29  ;;  %v4615_v31 = vunpack.i.h.bf16 %v7837_v53  ;;  %v7840_v63 = vld [vmem:[#allocation8_spill] sm:$0xff] }
 0x13c   : > { %v4960_v34 = vunpack.i.h.bf16 %v4958_v45  ;;  %v4959_v36 = vunpack.i.l.bf16 %v4958_v45  ;;  %v1601_v11 = vsel %vm1584_vm6, %v1568_v54, %v4964_v26  ;;  %v1602_v42 = vsel %vm1584_vm6, %v1569_v37, %v4965_v23 }
 0x13d   : > { %v4973_v46 = vpop.permute.xlu1 %4972  ;;  %v2563_v51 = vsel %vm2499_vm10, %v3916_v4, %v4390_v41  ;;  %v2595_v45 = vadd.s32 16, %v2467_v56  ;;  %vm2497_vm11 = vcmp.lt.s32.totalorder %v2465_v14, 0  ;;  %v4387_v58 = vtrunc.f32 %v2370_v49 }
 0x13e   : > { %v4974_v40 = vunpack.i.l.bf16 %v4973_v46  ;;  %v4975_v60 = vunpack.i.h.bf16 %v4973_v46  ;;  %v1570_v52 = vsel %vm1551_vm5, %v1537_v61, %v4959_v36  ;;  %v1571_v38 = vsel %vm1551_vm5, %v1538_v32, %v4960_v34  ;;  %v5319_v61 = vld [vmem:[#allocation2 + $0xa8] sm:$0xff] }
 0x13f   : > { %v4968_v3 = vpop.permute.xlu0 %4967  ;;  %v2691_v33 = vadd.s32 1, %v2563_v51  ;;  %v6237_v36 = vsel %vm2499_vm10, %v2595_v45, %v2467_v56  ;;  %v2593_v46 = vadd.s32 16, %v2465_v14  ;;  %v1441_v32 = vsel %vm381_vm0, %v5319_v61, %v4600_v48 }
 0x140   : > { %v4970_v18 = vunpack.i.h.bf16 %v4968_v3  ;;  %v4969_v47 = vunpack.i.l.bf16 %v4968_v3  ;;  %v1634_v12 = vsel %vm1617_vm7, %v1601_v11, %v4974_v40  ;;  %v1635_v50 = vsel %vm1617_vm7, %v1602_v42, %v4975_v60  ;;  %v7838_v11 = vld [vmem:[#allocation17_spill] sm:$0xff] }
 0x141   : > { %v4983_v10 = vpop.permute.xlu1 %4982  ;;  %vm2659_vm12 = vcmp.ge.s32.totalorder %v6237_v36, 16  ;;  %v4685_v42 = vunpack.i.h.bf16 %v7838_v11  ;;  %v4684_v60 = vunpack.i.l.bf16 %v7838_v11  ;;  %v6257_v2 = vsel %vm2497_vm11, %v2593_v46, %v2465_v14 }
 0x142   : > { %v4985_v55 = vunpack.i.h.bf16 %v4983_v10  ;;  %v4984_v28 = vunpack.i.l.bf16 %v4983_v10  ;;  %v1603_v5 = vsel %vm1584_vm6, %v1570_v52, %v4969_v47  ;;  %v1604_v19 = vsel %vm1584_vm6, %v1571_v38, %v4970_v18  ;;  %v7839_v38 = vld [vmem:[#allocation18_spill] sm:$0xff] }
 0x143   : > { %v4978_v8 = vpop.permute.xlu0 %4977  ;;  %v6248_v43 = vsel %vm2659_vm12, %v2691_v33, %v2563_v51  ;;  %v2561_v52 = vsel %vm2497_vm11, %v3914_v25, %v4386_v29  ;;  %v4679_v22 = vunpack.i.l.bf16 %v7839_v38  ;;  %v2436_v18 = vmul.u32 16, %v6232_v20 }
 0x144   : > { %v4980_v13 = vunpack.i.h.bf16 %v4978_v8  ;;  %v4979_v7 = vunpack.i.l.bf16 %v4978_v8  ;;  %v1667_v6 = vsel %vm1650_vm8, %v1634_v12, %v4984_v28  ;;  %v1668_v1 = vsel %vm1650_vm8, %v1635_v50, %v4985_v55 }
 0x145   : > { %v6229_v27 = vpop.permute.xlu1 %4992  ;;  %v1691_v59 = vpack.c.bf16 %v1668_v1, %v1667_v6  ;;  %v2819_v41 = vcvt.s32.f32 %v6248_v43  ;;  %v2689_v48 = vadd.s32 1, %v2561_v52  ;;  %v4680_v47 = vunpack.i.h.bf16 %v7839_v38 }
 0x146   : > { %v1636_v23 = vsel %vm1617_vm7, %v1603_v5, %v4979_v7  ;;  %v1637_v34 = vsel %vm1617_vm7, %v1604_v19, %v4980_v13  ;;  %vm2657_vm13 = vcmp.ge.s32.totalorder %v6257_v2, 16  ;;  %v4614_v55 = vunpack.i.l.bf16 %v7837_v53 }
 0x147   : > { %v4988_v57 = vpop.permute.xlu0 %4987  ;;  %4357 = vmatprep.mubr.msk.bf16.mxu1 %vm1735_vm9, %v1691_v59  ;;  %v2851_v9 = vmul.f32 0.0625, %v2819_v41  ;;  %v4995_v29 = vunpack.i.h.bf16 %v6229_v27  ;;  %v4994_v28 = vunpack.i.l.bf16 %v6229_v27  ;;  %v6269_v12 = vsel %vm2657_vm13, %v2689_v48, %v2561_v52 }
 0x148   : > { %v4990_v26 = vunpack.i.h.bf16 %v4988_v57  ;;  %v4989_v62 = vunpack.i.l.bf16 %v4988_v57  ;;  %v4610_v13 = vunpack.i.h.bf16 %v7840_v63  ;;  %v1475_v50 = vsel %vm1452_vm2, %v6151_v30, %v4684_v60 }
 0x149   : > { %v5003_v37 = vpop.permute.xlu1 %5002  ;;  %v2883_v56 = vfloor.f32 %v2851_v9  ;;  %v1473_v6 = vsel %vm1452_vm2, %v6168_v35, %v4679_v22  ;;  %v1476_v4 = vsel %vm1452_vm2, %v6174_v0, %v4685_v42  ;;  %v2468_v14 = vsub.s32 %v6203_v16, %v2436_v18 }
 0x14a   : > { %v1669_v24 = vsel %vm1650_vm8, %v1636_v23, %v4989_v62  ;;  %v1670_v54 = vsel %vm1650_vm8, %v1637_v34, %v4990_v26  ;;  %v5004_v7 = vunpack.i.l.bf16 %v5003_v37  ;;  %v5005_v1 = vunpack.i.h.bf16 %v5003_v37 }
 0x14b   : > { %v1692_v40 = vpack.c.bf16 %v1670_v54, %v1669_v24  ;;  %v4998_v3 = vpop.permute.xlu0 %4997  ;;  %v1474_v5 = vsel %vm1452_vm2, %v1441_v32, %v4680_v47  ;;  %v4453_v59 = vtrunc.f32 %v2883_v56  ;;  %v2817_v49 = vcvt.s32.f32 %v6269_v12 }
 0x14c   : > { %v6281_v19 = vcvt.f32.s32 %v4387_v58  ;;  %v1506_v30 = vsel %vm1485_vm3, %v1473_v6, %v4994_v28  ;;  %v1507_v57 = vsel %vm1485_vm3, %v1474_v5, %v4995_v29  ;;  %v5000_v51 = vunpack.i.h.bf16 %v4998_v3 }
 0x14d   : > { %4358 = vmatmul.mubr.msk.bf16.vlgmr.msra.gmra.mrb[0].mxu1 %vm1735_vm9, %v1692_v40  ;;  %v5013_v10 = vpop.permute.xlu1 %5012  ;;  %v4999_v35 = vunpack.i.l.bf16 %v4998_v3  ;;  %v1539_v23 = vsel %vm1518_vm4, %v1506_v30, %v5004_v7  ;;  %v4454_v26 = vcvt.f32.s32 %v4453_v59  ;;  %v3917_v62 = vadd.s32 4294967295, %v6232_v20 }
 0x14e   : > { %v5014_v0 = vunpack.i.l.bf16 %v5013_v10  ;;  %v1540_v33 = vsel %vm1518_vm4, %v1507_v57, %v5005_v1  ;;  %v5015_v34 = vunpack.i.h.bf16 %v5013_v10  ;;  %vm2500_vm14 = vcmp.lt.s32.totalorder %v2468_v14, 0 }
 0x14f   : > { %v6265_v8 = vpop.permute.xlu0 %5007  ;;  %v2947_v46 = vmul.u32 16, %v4454_v26  ;;  %v2849_v61 = vmul.f32 0.0625, %v2817_v49  ;;  %v1509_v32 = vsel %vm1485_vm3, %v1476_v4, %v5000_v51  ;;  %v1508_v40 = vsel %vm1485_vm3, %v1475_v50, %v4999_v35 }
 0x150   : > { %v5009_v25 = vunpack.i.l.bf16 %v6265_v8  ;;  %v5010_v3 = vunpack.i.h.bf16 %v6265_v8  ;;  %v2596_v42 = vadd.s32 16, %v2468_v14  ;;  %v1572_v60 = vsel %vm1551_vm5, %v1539_v23, %v5014_v0 }
 0x151   : > { %v5023_v27 = vpop.permute.xlu1 %5022  ;;  %v2564_v38 = vsel %vm2500_vm14, %v3917_v62, %v6232_v20  ;;  %v1573_v22 = vsel %vm1551_vm5, %v1540_v33, %v5015_v34  ;;  %v2979_v29 = vsub.s32 %v6248_v43, %v2947_v46  ;;  %v2881_v28 = vfloor.f32 %v2849_v61 }
 0x152   : > { %v5025_v24 = vunpack.i.h.bf16 %v5023_v27  ;;  %v5024_v54 = vunpack.i.l.bf16 %v5023_v27  ;;  %v1541_v48 = vsel %vm1518_vm4, %v1508_v40, %v5009_v25  ;;  %v6301_v56 = vsel %vm2500_vm14, %v2596_v42, %v2468_v14 }
 0x153   : > { %v5018_v45 = vpop.permute.xlu0 %5017  ;;  %v2692_v20 = vadd.s32 1, %v2564_v38  ;;  %v1542_v30 = vsel %vm1518_vm4, %v1509_v32, %v5010_v3  ;;  %v3043_v14 = vadd.s32 16, %v2979_v29  ;;  %vm2660_vm15 = vcmp.ge.s32.totalorder %v6301_v56, 16 }
 0x154   : > { %v5020_v18 = vunpack.i.h.bf16 %v5018_v45  ;;  %v5019_v47 = vunpack.i.l.bf16 %v5018_v45  ;;  %v1605_v10 = vsel %vm1584_vm6, %v1572_v60, %v5024_v54  ;;  %v1606_v9 = vsel %vm1584_vm6, %v1573_v22, %v5025_v24  ;;  %v5321_v60 = vld [vmem:[#allocation2 + $0xd8] sm:$0xff]  ;;  %v7841_v22 = vld [vmem:[#allocation19_spill] sm:$0xff] }
 0x155   : > { %v5033_v37 = vpop.permute.xlu1 %5032  ;;  %vm3011_vm1 = vcmp.lt.s32.totalorder %v2979_v29, 0  ;;  %v4449_v0 = vtrunc.f32 %v2881_v28  ;;  %v4609_v25 = vunpack.i.l.bf16 %v7840_v63  ;;  %v2434_v3 = vmul.u32 16, %v6281_v19 }
 0x156   : > { %v5035_v41 = vunpack.i.h.bf16 %v5033_v37  ;;  %v5034_v52 = vunpack.i.l.bf16 %v5033_v37  ;;  %v1574_v35 = vsel %vm1551_vm5, %v1541_v48, %v5019_v47  ;;  %v1575_v45 = vsel %vm1551_vm5, %v1542_v30, %v5020_v18 }
 0x157   : > { %v5028_v11 = vpop.permute.xlu0 %5027  ;;  %v6321_v37 = vsel %vm2660_vm15, %v2692_v20, %v2564_v38  ;;  %v3075_v40 = vsel %vm3011_vm1, %v3043_v14, %v2979_v29  ;;  %v4690_v48 = vunpack.i.h.bf16 %v7841_v22  ;;  %v4689_v18 = vunpack.i.l.bf16 %v7841_v22  ;;  %v5322_v29 = vld [vmem:[#allocation2 + $0xc0] sm:$0xff] }
 0x158   : > { %v1638_v6 = vsel %vm1617_vm7, %v1605_v10, %v5034_v52  ;;  %v1639_v1 = vsel %vm1617_vm7, %v1606_v9, %v5035_v41  ;;  %v5030_v4 = vunpack.i.h.bf16 %v5028_v11  ;;  %v5029_v5 = vunpack.i.l.bf16 %v5028_v11  ;;  %v5320_v11 = vld [vmem:[#allocation2 + $0xd0] sm:$0xff] }
 0x159   : > { %v5043_v58 = vpop.permute.xlu1 %5042  ;;  %v1446_v42 = vsel %vm381_vm0, %v5320_v11, %v4614_v55  ;;  %v1447_v41 = vsel %vm381_vm0, %v5321_v60, %v4615_v31  ;;  %v4450_v47 = vcvt.f32.s32 %v4449_v0  ;;  %v2820_v10 = vcvt.s32.f32 %v6321_v37  ;;  %v7842_v9 = vld [vmem:[#allocation9_spill] sm:$0xff]  ;;  %v5323_v55 = vld [vmem:[#allocation2 + $0xc8] sm:$0xff] }
 0x15a   : > { %v5045_v8 = vunpack.i.h.bf16 %v5043_v58  ;;  %v5044_v7 = vunpack.i.l.bf16 %v5043_v58  ;;  %v1607_v26 = vsel %vm1584_vm6, %v1574_v35, %v5029_v5  ;;  %v1608_v62 = vsel %vm1584_vm6, %v1575_v45, %v5030_v4 }
 0x15b   : > { %v5038_v50 = vpop.permute.xlu0 %5037  ;;  %v4625_v58 = vunpack.i.h.bf16 %v7842_v9  ;;  %v1444_v28 = vsel %vm381_vm0, %v5322_v29, %v4609_v25  ;;  %v1445_v53 = vsel %vm381_vm0, %v5323_v55, %v4610_v13  ;;  %v3980_v31 = vadd.s32 4294967280, %v3075_v40 }
 0x15c   : > { %v1671_v27 = vsel %vm1650_vm8, %v1638_v6, %v5044_v7  ;;  %v1672_v59 = vsel %vm1650_vm8, %v1639_v1, %v5045_v8  ;;  %v5040_v49 = vunpack.i.h.bf16 %v5038_v50  ;;  %v5039_v43 = vunpack.i.l.bf16 %v5038_v50  ;;  %v7843_v6 = vld [vmem:[#allocation10_spill] sm:$0xff] }
 0x15d   : > { %v1693_v57 = vpack.c.bf16 %v1672_v59, %v1671_v27  ;;  %v6308_v51 = vpop.permute.xlu1 %5052  ;;  %v4624_v8 = vunpack.i.l.bf16 %v7842_v9  ;;  %v3948_v50 = vadd.s32 4294967280, %v6237_v36  ;;  %vm3107_vm10 = vcmp.ge.s32.totalorder %v3075_v40, 16 }
 0x15e   : > { %v1640_v24 = vsel %vm1617_vm7, %v1607_v26, %v5039_v43  ;;  %v1641_v54 = vsel %vm1617_vm7, %v1608_v62, %v5040_v49  ;;  %v2466_v20 = vsub.s32 %v6209_v21, %v2434_v3  ;;  %v4620_v1 = vunpack.i.h.bf16 %v7843_v6 }
 0x15f   : > { %v5048_v23 = vpop.permute.xlu0 %5047  ;;  %4361 = vmatprep.mubr.msk.bf16.mxu1 %vm1735_vm9, %v1693_v57  ;;  %v4619_v4 = vunpack.i.l.bf16 %v7843_v6  ;;  %v5055_v5 = vunpack.i.h.bf16 %v6308_v51  ;;  %v5054_v63 = vunpack.i.l.bf16 %v6308_v51  ;;  %v1477_v27 = vsel %vm1452_vm2, %v1444_v28, %v4689_v18 }
 0x160   : > { %v5050_v33 = vunpack.i.h.bf16 %v5048_v23  ;;  %v5049_v34 = vunpack.i.l.bf16 %v5048_v23  ;;  %v1478_v59 = vsel %vm1452_vm2, %v1445_v53, %v4690_v48  ;;  %v2945_v49 = vmul.u32 16, %v4450_v47 }
 0x161   : > { %v5063_v32 = vpop.permute.xlu1 %5062  ;;  %v2852_v43 = vmul.f32 0.0625, %v2820_v10  ;;  %v6350_v35 = vsel %vm3107_vm10, %v3980_v31, %v3075_v40  ;;  %v6355_v26 = vsel %vm2659_vm12, %v3948_v50, %v6237_v36  ;;  %vm2498_vm11 = vcmp.lt.s32.totalorder %v2466_v20, 0 }
 0x162   : > { %v1673_v46 = vsel %vm1650_vm8, %v1640_v24, %v5049_v34  ;;  %v1674_v61 = vsel %vm1650_vm8, %v1641_v54, %v5050_v33  ;;  %v5065_v30 = vunpack.i.h.bf16 %v5063_v32  ;;  %v5064_v57 = vunpack.i.l.bf16 %v5063_v32 }
 0x163   : > { %v1694_v52 = vpack.c.bf16 %v1674_v61, %v1673_v46  ;;  %v5058_v38 = vpop.permute.xlu0 %5057  ;;  %v1480_v51 = vsel %vm1452_vm2, %v1447_v41, %v5055_v5  ;;  %v1479_v62 = vsel %vm1452_vm2, %v1446_v42, %v5054_v63  ;;  %vm3203_vm14 = vcmp.lt.s32.totalorder %v6190_v39, 512 }
 0x164   : > { %v5059_v14 = vunpack.i.l.bf16 %v5058_v38  ;;  %v5060_v45 = vunpack.i.h.bf16 %v5058_v38  ;;  %vm3235_vm1 = vcmp.lt.s32.totalorder %v6350_v35, 14  ;;  %v6362_v24 = vsub.s32 %v6269_v12, %v2945_v49 }
 0x165   : > { %4362 = vmatmul.mubr.msk.bf16.gmra.mrb[4].mxu1 %vm1735_vm9, %v1694_v52  ;;  %v5073_v7 = vpop.permute.xlu1 %5072  ;;  %v2884_v54 = vfloor.f32 %v2852_v43  ;;  %v3915_v46 = vadd.s32 4294967295, %v6281_v19  ;;  %v1512_v36 = vsel %vm1485_vm3, %v1479_v62, %v5064_v57  ;;  %v1513_v61 = vsel %vm1485_vm3, %v1480_v51, %v5065_v30 }
 0x166   : > { %v5074_v23 = vunpack.i.l.bf16 %v5073_v7  ;;  %v5075_v33 = vunpack.i.h.bf16 %v5073_v7  ;;  %v1510_v32 = vsel %vm1485_vm3, %v1477_v27, %v5059_v14  ;;  %v2594_v40 = vadd.s32 16, %v2466_v20 }
 0x167   : > { %v5068_v13 = vpop.permute.xlu0 %5067  ;;  %v1511_v3 = vsel %vm1485_vm3, %v1478_v59, %v5060_v45  ;;  %v2562_v12 = vsel %vm2498_vm11, %v3915_v46, %v6281_v19  ;;  %vm3299_vm12 = vcmp.lt.s32.totalorder %v6355_v26, 14  ;;  %v6378_v47 = vtrunc.f32 %v2884_v54  ;;  %v5325_v26 = vld [vmem:[#allocation2 + $0xf0] sm:$0xff] }
 0x168   : > { %v5069_v25 = vunpack.i.l.bf16 %v5068_v13  ;;  %v1545_v11 = vsel %vm1518_vm4, %v1512_v36, %v5074_v23  ;;  %v5070_v42 = vunpack.i.h.bf16 %v5068_v13  ;;  %v1546_v41 = vsel %vm1518_vm4, %v1513_v61, %v5075_v33 }
 0x169   : > { %v5083_v0 = vpop.permute.xlu1 %5082  ;;  %v6375_v48 = vsel %vm2498_vm11, %v2594_v40, %v2466_v20  ;;  %v2690_v10 = vadd.s32 1, %v2562_v12  ;;  %v4456_v30 = vcvt.f32.s32 %v6378_v47  ;;  %vm6402_vm11 = vmand %vm3203_vm14, %vm3235_vm1  ;;  %v2246_v40 = vadd.s32 48, %v6164_v44 }
 0x16a   : > { %v5085_v52 = vunpack.i.h.bf16 %v5083_v0  ;;  %v5084_v38 = vunpack.i.l.bf16 %v5083_v0  ;;  %v1543_v18 = vsel %vm1518_vm4, %v1510_v32, %v5069_v25  ;;  %vm2658_vm10 = vcmp.ge.s32.totalorder %v6375_v48, 16  ;;  %vm6418_vm14 = vmand %vm6402_vm11, %vm3299_vm12 }
 0x16b   : > { %v5078_v34 = vpop.permute.xlu0 %5077  ;;  %v1544_v53 = vsel %vm1518_vm4, %v1511_v3, %v5070_v42  ;;  %v6384_v20 = vsel %vm2658_vm10, %v2690_v10, %v2562_v12  ;;  %v2244_v39 = vadd.s32 32, %v6164_v44  ;;  %v6423_v10 = vadd.s32 %v6183_v17, %v2246_v40 }
 0x16c   : > { %v5080_v29 = vunpack.i.h.bf16 %v5078_v34  ;;  %v5079_v28 = vunpack.i.l.bf16 %v5078_v34  ;;  %v1578_v5 = vsel %vm1551_vm5, %v1545_v11, %v5084_v38  ;;  %v1579_v63 = vsel %vm1551_vm5, %v1546_v41, %v5085_v52 }
 0x16d   : > { %v5093_v60 = vpop.permute.xlu1 %5092  ;;  %v2818_v57 = vcvt.s32.f32 %v6384_v20  ;;  %vm3009_vm1 = vcmp.lt.s32.totalorder %v6362_v24, 0 }
 0x16e   : > { %v5095_v19 = vunpack.i.h.bf16 %v5093_v60  ;;  %v5094_v55 = vunpack.i.l.bf16 %v5093_v60  ;;  %v1576_v14 = vsel %vm1551_vm5, %v1543_v18, %v5079_v28  ;;  %v1577_v45 = vsel %vm1551_vm5, %v1544_v53, %v5080_v29  ;;  %v5324_v53 = vld [vmem:[#allocation2 + $0xf8] sm:$0xff] }
 0x16f   : > { %v5088_v22 = vpop.permute.xlu0 %5087  ;;  %v2850_v32 = vmul.f32 0.0625, %v2818_v57 }
 0x170   : > { %v5090_v31 = vunpack.i.h.bf16 %v5088_v22  ;;  %v5089_v7 = vunpack.i.l.bf16 %v5088_v22  ;;  %v1611_v23 = vsel %vm1584_vm6, %v1578_v5, %v5094_v55  ;;  %v1612_v0 = vsel %vm1584_vm6, %v1579_v63, %v5095_v19 }
 0x171   : > { %v5103_v50 = vpop.permute.xlu1 %5102  ;;  %v2882_v35 = vfloor.f32 %v2850_v32  ;;  %v3946_v19 = vadd.s32 4294967280, %v6257_v2  ;;  %v2311_v63 = vcvt.s32.f32 %v6423_v10 }
 0x172   : > { %v5105_v13 = vunpack.i.h.bf16 %v5103_v50  ;;  %v5104_v27 = vunpack.i.l.bf16 %v5103_v50  ;;  %v1609_v51 = vsel %vm1584_vm6, %v1576_v14, %v5089_v7  ;;  %v1610_v62 = vsel %vm1584_vm6, %v1577_v45, %v5090_v31  ;;  %v5326_v50 = vld [vmem:[#allocation2 + $0xe8] sm:$0xff] }
 0x173   : > { %v5098_v59 = vpop.permute.xlu0 %5097  ;;  %v4451_v55 = vtrunc.f32 %v2882_v35  ;;  %v1451_v31 = vsel %vm381_vm0, %v5324_v53, %v4625_v58  ;;  %v1450_v7 = vsel %vm381_vm0, %v5325_v26, %v4624_v8  ;;  %v1449_v5 = vsel %vm381_vm0, %v5326_v50, %v4620_v1 }
 0x174   : > { %v5100_v49 = vunpack.i.h.bf16 %v5098_v59  ;;  %v5099_v43 = vunpack.i.l.bf16 %v5098_v59  ;;  %v1644_v33 = vsel %vm1617_vm7, %v1611_v23, %v5104_v27  ;;  %v1645_v34 = vsel %vm1617_vm7, %v1612_v0, %v5105_v13  ;;  %v5327_v13 = vld [vmem:[#allocation2 + $0xe0] sm:$0xff] }
 0x175   : > { %v5113_v25 = vpop.permute.xlu1 %5112  ;;  %v1448_v27 = vsel %vm381_vm0, %v5327_v13, %v4619_v4  ;;  %v5360_v58 = vmov 0.0   ;;  %v3041_v8 = vadd.s32 16, %v6362_v24  ;;  %v2948_v59 = vmul.u32 16, %v4456_v30 }
 0x176   : > { %v5115_v54 = vunpack.i.h.bf16 %v5113_v25  ;;  %v5114_v46 = vunpack.i.l.bf16 %v5113_v25  ;;  %v1642_v3 = vsel %vm1617_vm7, %v1609_v51, %v5099_v43  ;;  %v1643_v11 = vsel %vm1617_vm7, %v1610_v62, %v5100_v49  ;;  %3621 = vst [vmem:[%s7469_s8] sm:$0x3] %v5360_v58 }
 0x177   : > { %v5108_v36 = vpop.permute.xlu0 %5107  ;;  %v6443_v9 = vsel %vm6418_vm14, 1.0, %v5360_v58  ;;  %v4452_v49 = vcvt.f32.s32 %v4451_v55  ;;  %v2343_v6 = vmul.f32 0.0625, %v2311_v63  ;;  %v6449_v4 = vadd.s32 %v6183_v17, %v2244_v39 }
 0x178   : > { %v5110_v42 = vunpack.i.h.bf16 %v5108_v36  ;;  %v5109_v60 = vunpack.i.l.bf16 %v5108_v36  ;;  %v1677_v12 = vsel %vm1650_vm8, %v1644_v33, %v5114_v46  ;;  %v1678_v41 = vsel %vm1650_vm8, %v1645_v34, %v5115_v54 }
 0x179   : > { %v1696_v52 = vpack.c.bf16 %v1678_v41, %v1677_v12  ;;  %v5123_v18 = vpop.permute.xlu1 %5122  ;;  %v6454_v45 = vsel %vm2657_vm13, %v3946_v19, %v6257_v2  ;;  %v6457_v30 = vadd.s32 4294967280, %v6301_v56  ;;  %v2375_v51 = vfloor.f32 %v2343_v6 }
 0x17a   : > { %v1675_v38 = vsel %vm1650_vm8, %v1642_v3, %v5109_v60  ;;  %v1676_v22 = vsel %vm1650_vm8, %v1643_v11, %v5110_v42  ;;  %v5125_v43 = vunpack.i.h.bf16 %v5123_v18  ;;  %v5124_v57 = vunpack.i.l.bf16 %v5123_v18 }
 0x17b   : > { %v1695_v29 = vpack.c.bf16 %v1676_v22, %v1675_v38  ;;  %v5118_v28 = vpop.permute.xlu0 %5117  ;;  %v2309_v62 = vcvt.s32.f32 %v6449_v4  ;;  %v6461_v25 = vsel %vm3009_vm1, %v3041_v8, %v6362_v24  ;;  %v6464_v54 = vsub.s32 %v6321_v37, %v2948_v59 }
 0x17c   : > { %v5120_v23 = vunpack.i.h.bf16 %v5118_v28  ;;  %v5119_v0 = vunpack.i.l.bf16 %v5118_v28  ;;  %v2946_v2 = vmul.u32 16, %v4452_v49  ;;  %v4397_v61 = vtrunc.f32 %v2375_v51 }
 0x17d   : > { %4365 = vmatprep.mubr.msk.bf16.mxu1 %vm1735_vm9, %v1695_v29  ;;  %v5133_v1 = vpop.permute.xlu1 %5132  ;;  %v2341_v32 = vmul.f32 0.0625, %v2309_v62  ;;  %v1484_v40 = vsel %vm1452_vm2, %v1451_v31, %v5125_v43  ;;  %v1483_v3 = vsel %vm1452_vm2, %v1450_v7, %v5124_v57  ;;  %v2247_v38 = vadd.s32 56, %v6164_v44 }
 0x17e   : > { %4366 = vmatmul.mubr.msk.bf16.gmra.mrb[8].mxu1 %vm1735_vm9, %v1696_v52  ;;  %v5135_v33 = vunpack.i.h.bf16 %v5133_v1  ;;  %v5134_v34 = vunpack.i.l.bf16 %v5133_v1  ;;  %v1481_v12 = vsel %vm1452_vm2, %v1448_v27, %v5119_v0  ;;  %v1482_v24 = vsel %vm1452_vm2, %v1449_v5, %v5120_v23 }
 0x17f   : > { %v5128_v14 = vpop.permute.xlu0 %5127  ;;  %v4398_v41 = vcvt.f32.s32 %v4397_v61  ;;  %v2373_v35 = vfloor.f32 %v2341_v32  ;;  %v6475_v28 = vsub.s32 %v6384_v20, %v2946_v2  ;;  %v6482_v59 = vadd.s32 %v6183_v17, %v2247_v38 }
 0x180   : > { %v5129_v46 = vunpack.i.l.bf16 %v5128_v14  ;;  %v5130_v11 = vunpack.i.h.bf16 %v5128_v14  ;;  %v1516_v37 = vsel %vm1485_vm3, %v1483_v3, %v5134_v34  ;;  %v1517_v39 = vsel %vm1485_vm3, %v1484_v40, %v5135_v33 }
 0x181   : > { %v5143_v36 = vpop.permute.xlu1 %5142  ;;  %v2439_v26 = vmul.u32 16, %v4398_v41  ;;  %v3920_v5 = vadd.s32 4294967295, %v4398_v41  ;;  %v4393_v63 = vtrunc.f32 %v2373_v35 }
 0x182   : > { %v5144_v42 = vunpack.i.l.bf16 %v5143_v36  ;;  %v5145_v52 = vunpack.i.h.bf16 %v5143_v36  ;;  %v1514_v22 = vsel %vm1485_vm3, %v1481_v12, %v5129_v46  ;;  %v1515_v19 = vsel %vm1485_vm3, %v1482_v24, %v5130_v11 }
 0x183   : > { %v5138_v60 = vpop.permute.xlu0 %5137  ;;  %v2471_v8 = vsub.s32 %v6423_v10, %v2439_v26  ;;  %v4394_v43 = vcvt.f32.s32 %v4393_v63  ;;  %v2312_v11 = vcvt.s32.f32 %v6482_v59  ;;  %vm3105_vm3 = vcmp.ge.s32.totalorder %v6461_v25, 16 }
 0x184   : > { %v5140_v18 = vunpack.i.h.bf16 %v5138_v60  ;;  %v5139_v47 = vunpack.i.l.bf16 %v5138_v60  ;;  %v1549_v55 = vsel %vm1518_vm4, %v1516_v37, %v5144_v42  ;;  %v1550_v13 = vsel %vm1518_vm4, %v1517_v39, %v5145_v52 }
 0x185   : > { %v5153_v29 = vpop.permute.xlu1 %5152  ;;  %vm2503_vm0 = vcmp.lt.s32.totalorder %v2471_v8, 0  ;;  %v2599_v0 = vadd.s32 16, %v2471_v8 }
 0x186   : > { %v5154_v53 = vunpack.i.l.bf16 %v5153_v29  ;;  %v5155_v7 = vunpack.i.h.bf16 %v5153_v29  ;;  %v1547_v20 = vsel %vm1518_vm4, %v1514_v22, %v5139_v47  ;;  %v1548_v1 = vsel %vm1518_vm4, %v1515_v19, %v5140_v18 }
 0x187   : > { %v5148_v31 = vpop.permute.xlu0 %5147  ;;  %v2567_v34 = vsel %vm2503_vm0, %v3920_v5, %v4398_v41  ;;  %v6490_v2 = vsel %vm2503_vm0, %v2599_v0, %v2471_v8  ;;  %v2437_v41 = vmul.u32 16, %v4394_v43 }
 0x188   : > { %v5149_v50 = vunpack.i.l.bf16 %v5148_v31  ;;  %v5150_v27 = vunpack.i.h.bf16 %v5148_v31  ;;  %v1582_v49 = vsel %vm1551_vm5, %v1549_v55, %v5154_v53  ;;  %v1583_v51 = vsel %vm1551_vm5, %v1550_v13, %v5155_v7 }
 0x189   : > { %v5163_v6 = vpop.permute.xlu1 %5162  ;;  %v2695_v61 = vadd.s32 1, %v2567_v34  ;;  %vm2663_vm2 = vcmp.ge.s32.totalorder %v6490_v2, 16  ;;  %v2469_v47 = vsub.s32 %v6449_v4, %v2437_v41  ;;  %v3918_v31 = vadd.s32 4294967295, %v4394_v43 }
 0x18a   : > { %v5165_v57 = vunpack.i.h.bf16 %v5163_v6  ;;  %v5164_v14 = vunpack.i.l.bf16 %v5163_v6  ;;  %v1580_v62 = vsel %vm1551_vm5, %v1547_v20, %v5149_v50  ;;  %v1581_v46 = vsel %vm1551_vm5, %v1548_v1, %v5150_v27 }
 0x18b   : > { %v5158_v23 = vpop.permute.xlu0 %5157  ;;  %v6498_v24 = vsel %vm2663_vm2, %v2695_v61, %v2567_v34  ;;  %vm2501_vm4 = vcmp.lt.s32.totalorder %v2469_v47, 0  ;;  %v2597_v5 = vadd.s32 16, %v2469_v47 }
 0x18c   : > { %v5159_v33 = vunpack.i.l.bf16 %v5158_v23  ;;  %v5160_v36 = vunpack.i.h.bf16 %v5158_v23  ;;  %v1615_v32 = vsel %vm1584_vm6, %v1582_v49, %v5164_v14  ;;  %v1616_v40 = vsel %vm1584_vm6, %v1583_v51, %v5165_v57 }
 0x18d   : > { %v5173_v3 = vpop.permute.xlu1 %5172  ;;  %v2823_v52 = vcvt.s32.f32 %v6498_v24  ;;  %v2565_v8 = vsel %vm2501_vm4, %v3918_v31, %v4394_v43  ;;  %v6511_v49 = vsel %vm2501_vm4, %v2597_v5, %v2469_v47  ;;  %v3947_v43 = vadd.s32 4294967280, %v6375_v48 }
 0x18e   : > { %v5175_v42 = vunpack.i.h.bf16 %v5173_v3  ;;  %v5174_v60 = vunpack.i.l.bf16 %v5173_v3  ;;  %v1613_v35 = vsel %vm1584_vm6, %v1580_v62, %v5159_v33  ;;  %v1614_v38 = vsel %vm1584_vm6, %v1581_v46, %v5160_v36 }
 0x18f   : > { %v5168_v12 = vpop.permute.xlu0 %5167  ;;  %v2855_v53 = vmul.f32 0.0625, %v2823_v52  ;;  %v2693_v6 = vadd.s32 1, %v2565_v8  ;;  %v3978_v62 = vadd.s32 4294967280, %v6461_v25  ;;  %vm2661_vm5 = vcmp.ge.s32.totalorder %v6511_v49, 16 }
 0x190   : > { %v5170_v37 = vunpack.i.h.bf16 %v5168_v12  ;;  %v5169_v39 = vunpack.i.l.bf16 %v5168_v12  ;;  %v1648_v22 = vsel %vm1617_vm7, %v1615_v32, %v5174_v60  ;;  %v1649_v18 = vsel %vm1617_vm7, %v1616_v40, %v5175_v42 }
 0x191   : > { %v5183_v55 = vpop.permute.xlu1 %5182  ;;  %v2887_v27 = vfloor.f32 %v2855_v53  ;;  %v2344_v33 = vmul.f32 0.0625, %v2312_v11  ;;  %vm3012_vm6 = vcmp.lt.s32.totalorder %v6464_v54, 0  ;;  %v6521_v34 = vsel %vm2661_vm5, %v2693_v6, %v2565_v8 }
 0x192   : > { %v1646_v29 = vsel %vm1617_vm7, %v1613_v35, %v5169_v39  ;;  %v1647_v19 = vsel %vm1617_vm7, %v1614_v38, %v5170_v37  ;;  %v5185_v26 = vunpack.i.h.bf16 %v5183_v55  ;;  %v5184_v7 = vunpack.i.l.bf16 %v5183_v55 }
 0x193   : > { %v5178_v50 = vpop.permute.xlu0 %5177  ;;  %v4461_v0 = vtrunc.f32 %v2887_v27  ;;  %v2245_v46 = vadd.s32 40, %v6164_v44  ;;  %v3044_v36 = vadd.s32 16, %v6464_v54  ;;  %v2821_v61 = vcvt.s32.f32 %v6521_v34 }
 0x194   : > { %v5180_v63 = vunpack.i.h.bf16 %v5178_v50  ;;  %v5179_v13 = vunpack.i.l.bf16 %v5178_v50  ;;  %v1681_v20 = vsel %vm1650_vm8, %v1648_v22, %v5184_v7  ;;  %v1682_v1 = vsel %vm1650_vm8, %v1649_v18, %v5185_v26 }
 0x195   : > { %v1698_v57 = vpack.c.bf16 %v1682_v1, %v1681_v20  ;;  %v2376_v32 = vfloor.f32 %v2344_v33  ;;  %v2250_v40 = vadd.s32 80, %v6164_v44  ;;  %v3042_v3 = vadd.s32 16, %v6475_v28 }
 0x196   : > { %v1679_v14 = vsel %vm1650_vm8, %v1646_v29, %v5179_v13  ;;  %v1680_v23 = vsel %vm1650_vm8, %v1647_v19, %v5180_v63  ;;  %v4462_v11 = vcvt.f32.s32 %v4461_v0  ;;  %v6531_v42 = vadd.s32 %v6183_v17, %v2245_v46 }
 0x197   : > { %v1697_v51 = vpack.c.bf16 %v1680_v23, %v1679_v14  ;;  %v2248_v60 = vadd.s32 64, %v6164_v44  ;;  %vm3010_vm7 = vcmp.lt.s32.totalorder %v6475_v28, 0  ;;  %v2853_v12 = vmul.f32 0.0625, %v2821_v61 }
 0x198   : > { %v4399_v41 = vtrunc.f32 %v2376_v32  ;;  %v6536_v35 = vadd.s32 %v6183_v17, %v2250_v40  ;;  %v6541_v37 = vsel %vm3105_vm3, %v3978_v62, %v6461_v25  ;;  %v6547_v39 = vsel %vm2660_vm15, %v6457_v30, %v6301_v56 }
 0x199   : > { %4369 = vmatprep.mubr.msk.bf16.mxu1 %vm1735_vm9, %v1697_v51  ;;  %v2310_v52 = vcvt.s32.f32 %v6531_v42  ;;  %v6551_v38 = vadd.s32 %v6183_v17, %v2248_v60  ;;  %v3076_v22 = vsel %vm3012_vm6, %v3044_v36, %v6464_v54  ;;  %v2885_v18 = vfloor.f32 %v2853_v12 }
 0x19a   : > { %4370 = vmatmul.mubr.msk.bf16.gmra.mrb[12].mxu1 %vm1735_vm9, %v1698_v57  ;;  %v4400_v47 = vcvt.f32.s32 %v4399_v41  ;;  %v2315_v25 = vcvt.s32.f32 %v6536_v35  ;;  %v3074_v29 = vsel %vm3010_vm7, %v3042_v3, %v6475_v28  ;;  %v2951_v19 = vmul.u32 16, %v4462_v11 }
 0x19b   : > { %v2342_v55 = vmul.f32 0.0625, %v2310_v52  ;;  %v2313_v56 = vcvt.s32.f32 %v6551_v38  ;;  %v6562_v30 = vsel %vm2658_vm10, %v3947_v43, %v6375_v48  ;;  %v4457_v53 = vtrunc.f32 %v2885_v18 }
 0x19c   : > { %v2440_v31 = vmul.u32 16, %v4400_v47  ;;  %v2347_v26 = vmul.f32 0.0625, %v2315_v25  ;;  %vm3108_vm8 = vcmp.ge.s32.totalorder %v3076_v22, 16  ;;  %v3921_v54 = vadd.s32 4294967295, %v4400_v47 }
 0x19d   : > { %v2374_v7 = vfloor.f32 %v2342_v55  ;;  %v2345_v50 = vmul.f32 0.0625, %v2313_v56  ;;  %v3981_v5 = vadd.s32 4294967280, %v3076_v22  ;;  %vm3106_vm9 = vcmp.ge.s32.totalorder %v3074_v29, 16 }
 0x19e   : > { %v4458_v63 = vcvt.f32.s32 %v4457_v53  ;;  %v2472_v28 = vsub.s32 %v6482_v59, %v2440_v31  ;;  %v2983_v13 = vsub.s32 %v6498_v24, %v2951_v19  ;;  %v2379_v8 = vfloor.f32 %v2347_v26 }
 0x19f   : > { %v4395_v27 = vtrunc.f32 %v2374_v7  ;;  %v2377_v20 = vfloor.f32 %v2345_v50  ;;  %v3979_v1 = vadd.s32 4294967280, %v3074_v29  ;;  %v2251_v6 = vadd.s32 88, %v6164_v44 }
 0x1a0   : > { %vm2504_vm13 = vcmp.lt.s32.totalorder %v2472_v28, 0  ;;  %v2600_v48 = vadd.s32 16, %v2472_v28  ;;  %v2949_v57 = vmul.u32 16, %v4458_v63  ;;  %v4405_v0 = vtrunc.f32 %v2379_v8 }
 0x1a1   : > { %v2568_v14 = vsel %vm2504_vm13, %v3921_v54, %v4400_v47  ;;  %v4396_v23 = vcvt.f32.s32 %v4395_v27  ;;  %v3952_v51 = vadd.s32 4294967280, %v6490_v2  ;;  %v4401_v43 = vtrunc.f32 %v2377_v20 }
 0x1a2   : > { %v6568_v62 = vsel %vm2504_vm13, %v2600_v48, %v2472_v28  ;;  %v2696_v33 = vadd.s32 1, %v2568_v14  ;;  %v3047_v46 = vadd.s32 16, %v2983_v13  ;;  %v3950_v24 = vadd.s32 4294967280, %v6511_v49 }
 0x1a3   : > { %vm2664_vm15 = vcmp.ge.s32.totalorder %v6568_v62, 16  ;;  %v2438_v36 = vmul.u32 16, %v4396_v23  ;;  %vm3015_vm12 = vcmp.lt.s32.totalorder %v2983_v13, 0  ;;  %v3919_v32 = vadd.s32 4294967295, %v4396_v23 }
 0x1a4   : > { %v2728_v61 = vsel %vm2664_vm15, %v2696_v33, %v2568_v14  ;;  %v6575_v40 = vadd.s32 %v6183_v17, %v2251_v6  ;;  %v2981_v3 = vsub.s32 %v6521_v34, %v2949_v57  ;;  %v4406_v12 = vcvt.f32.s32 %v4405_v0 }
 0x1a5   : > { %v2824_v11 = vcvt.s32.f32 %v2728_v61  ;;  %v2470_v60 = vsub.s32 %v6531_v42, %v2438_v36  ;;  %v6580_v41 = vsel %vm3108_vm8, %v3981_v5, %v3076_v22  ;;  %v6583_v52 = vsel %vm3106_vm9, %v3979_v1, %v3074_v29 }
 0x1a6   : > { %v6588_v18 = vsel %vm2663_vm2, %v3952_v51, %v6490_v2  ;;  %v4402_v47 = vcvt.f32.s32 %v4401_v43  ;;  %v3079_v25 = vsel %vm3015_vm12, %v3047_v46, %v2983_v13  ;;  %v6593_v34 = vsel %vm2661_vm5, %v3950_v24, %v6511_v49 }
 0x1a7   : > { %v2856_v19 = vmul.f32 0.0625, %v2824_v11  ;;  %vm2502_vm10 = vcmp.lt.s32.totalorder %v2470_v60, 0  ;;  %v2598_v22 = vadd.s32 16, %v2470_v60  ;;  %v2443_v56 = vmul.u32 16, %v4406_v12 }
 0x1a8   : > { %v2566_v55 = vsel %vm2502_vm10, %v3919_v32, %v4396_v23  ;;  %v2316_v29 = vcvt.s32.f32 %v6575_v40  ;;  %v3045_v53 = vadd.s32 16, %v2981_v3  ;;  %v2441_v54 = vmul.u32 16, %v4402_v47 }
 0x1a9   : > { %v2888_v31 = vfloor.f32 %v2856_v19  ;;  %v2694_v26 = vadd.s32 1, %v2566_v55  ;;  %vm3013_vm11 = vcmp.lt.s32.totalorder %v2981_v3, 0  ;;  %v6596_v2 = vsel %vm2502_vm10, %v2598_v22, %v2470_v60 }
 0x1aa   : > { %v2475_v7 = vsub.s32 %v6536_v35, %v2443_v56  ;;  %v3924_v50 = vadd.s32 4294967295, %v4406_v12  ;;  %vm2662_vm14 = vcmp.ge.s32.totalorder %v6596_v2, 16  ;;  %v2473_v49 = vsub.s32 %v6551_v38, %v2441_v54 }
 0x1ab   : > { %v4463_v5 = vtrunc.f32 %v2888_v31  ;;  %v3922_v63 = vadd.s32 4294967295, %v4402_v47  ;;  %v6603_v28 = vsel %vm2662_vm14, %v2694_v26, %v2566_v55  ;;  %v2348_v27 = vmul.f32 0.0625, %v2316_v29 }
 0x1ac   : > { %vm2507_vm1 = vcmp.lt.s32.totalorder %v2475_v7, 0  ;;  %v2603_v13 = vadd.s32 16, %v2475_v7  ;;  %vm3111_vm0 = vcmp.ge.s32.totalorder %v3079_v25, 16  ;;  %v3077_v8 = vsel %vm3013_vm11, %v3045_v53, %v2981_v3 }
 0x1ad   : > { %v4464_v20 = vcvt.f32.s32 %v4463_v5  ;;  %v2822_v1 = vcvt.s32.f32 %v6603_v28  ;;  %v3984_v48 = vadd.s32 4294967280, %v3079_v25  ;;  %v2571_v6 = vsel %vm2507_vm1, %v3924_v50, %v4406_v12 }
 0x1ae   : > { %v6606_v57 = vsel %vm2507_vm1, %v2603_v13, %v2475_v7  ;;  %vm2505_vm2 = vcmp.lt.s32.totalorder %v2473_v49, 0  ;;  %vm3201_vm3 = vcmp.lt.s32.totalorder %v6196_v15, 512  ;;  %vm3233_vm4 = vcmp.lt.s32.totalorder %v6541_v37, 14 }
 0x1af   : > { %v2952_v14 = vmul.u32 16, %v4464_v20  ;;  %v2854_v23 = vmul.f32 0.0625, %v2822_v1  ;;  %vm7808_vm5 = vcmp.ge.s32.totalorder %v6606_v57, 16  ;;  %v2699_v0 = vadd.s32 1, %v2571_v6 }
 0x1b0   : > { %v3982_v51 = vadd.s32 4294967280, %v3077_v8  ;;  %v2569_v33 = vsel %vm2505_vm2, %v3922_v63, %v4402_v47  ;;  %v2601_v43 = vadd.s32 16, %v2473_v49  ;;  %v2380_v46 = vfloor.f32 %v2348_v27 }
 0x1b1   : > { %v2984_v24 = vsub.s32 %v2728_v61, %v2952_v14  ;;  %v2886_v36 = vfloor.f32 %v2854_v23  ;;  %v6614_v32 = vsel %vm7808_vm5, %v2699_v0, %v2571_v6  ;;  %v2697_v3 = vadd.s32 1, %v2569_v33 }
 0x1b2   : > { %vm3297_vm6 = vcmp.lt.s32.totalorder %v6454_v45, 14  ;;  %vm3109_vm7 = vcmp.ge.s32.totalorder %v3077_v8, 16  ;;  %v2827_v11 = vcvt.s32.f32 %v6614_v32  ;;  %v6619_v60 = vsel %vm2505_vm2, %v2601_v43, %v2473_v49 }
 0x1b3   : > { %v4407_v12 = vtrunc.f32 %v2380_v46  ;;  %vm3204_vm8 = vcmp.lt.s32.totalorder %v6203_v16, 512  ;;  %vm3236_vm9 = vcmp.lt.s32.totalorder %v6580_v41, 14  ;;  %v6624_v61 = vsel %vm3111_vm0, %v3984_v48, %v3079_v25 }
 0x1b4   : > { %vm3016_vm13 = vcmp.lt.s32.totalorder %v2984_v24, 0  ;;  %v3048_v47 = vadd.s32 16, %v2984_v24  ;;  %v4459_v19 = vtrunc.f32 %v2886_v36  ;;  %vm3202_vm12 = vcmp.lt.s32.totalorder %v6209_v21, 512 }
 0x1b5   : > { %vm3234_vm10 = vcmp.lt.s32.totalorder %v6583_v52, 14  ;;  %v3953_v55 = vadd.s32 4294967280, %v6568_v62  ;;  %v2859_v22 = vmul.f32 0.0625, %v2827_v11  ;;  %vm7809_vm11 = vcmp.ge.s32.totalorder %v6619_v60, 16 }
 0x1b6   : > { %v4408_v56 = vcvt.f32.s32 %v4407_v12  ;;  %v6632_v29 = vsel %vm3109_vm7, %v3982_v51, %v3077_v8  ;;  %v3080_v25 = vsel %vm3016_vm13, %v3048_v47, %v2984_v24  ;;  %v4460_v53 = vcvt.f32.s32 %v4459_v19 }
 0x1b7   : > { %v6636_v31 = vsel %vm7809_vm11, %v2697_v3, %v2569_v33  ;;  %vm3300_vm0 = vcmp.lt.s32.totalorder %v6547_v39, 14  ;;  %vm3112_vm2 = vcmp.ge.s32.totalorder %v3080_v25, 16  ;;  %v3985_v26 = vadd.s32 4294967280, %v3080_v25 }
 0x1b8   : > { %v3951_v54 = vadd.s32 4294967280, %v6596_v2  ;;  %v2891_v7 = vfloor.f32 %v2859_v22  ;;  %vm3298_vm5 = vcmp.lt.s32.totalorder %v6562_v30, 14  ;;  %vm3239_vm1 = vcmp.lt.s32.totalorder %v6624_v61, 14 }
 0x1b9   : > { %v2950_v50 = vmul.u32 16, %v4460_v53  ;;  %v2825_v5 = vcvt.s32.f32 %v6636_v31  ;;  %v2444_v49 = vmul.u32 16, %v4408_v56  ;;  %vm3303_vm7 = vcmp.lt.s32.totalorder %v6588_v18, 14 }
 0x1ba   : > { %v6647_v63 = vsel %vm2664_vm15, %v3953_v55, %v6568_v62  ;;  %v4469_v13 = vtrunc.f32 %v2891_v7  ;;  %v3925_v27 = vadd.s32 4294967295, %v4408_v56  ;;  %v2249_v8 = vadd.s32 72, %v6164_v44  ;;  %vm6661_vm15 = vmand %vm3201_vm3, %vm3233_vm4 }
 0x1bb   : > { %vm3237_vm11 = vcmp.lt.s32.totalorder %v6632_v29, 14  ;;  %v6653_v20 = vsel %vm3112_vm2, %v3985_v26, %v3080_v25  ;;  %v2982_v1 = vsub.s32 %v6603_v28, %v2950_v50  ;;  %v2857_v48 = vmul.f32 0.0625, %v2825_v5  ;;  %vm6698_vm3 = vmand %vm3204_vm8, %vm3236_vm9 }
 0x1bc   : > { %v2476_v6 = vsub.s32 %v6575_v40, %v2444_v49  ;;  %v6669_v14 = vsel %vm2662_vm14, %v3951_v54, %v6596_v2  ;;  %v6672_v28 = vadd.s32 4294967280, %v6606_v57  ;;  %v4470_v23 = vcvt.f32.s32 %v4469_v13  ;;  %vm6686_vm14 = vmand %vm6661_vm15, %vm3297_vm6 }
 0x1bd   : > { %v6675_v0 = vadd.s32 %v6183_v17, %v2249_v8  ;;  %vm3014_vm2 = vcmp.lt.s32.totalorder %v2982_v1, 0  ;;  %v3046_v15 = vadd.s32 16, %v2982_v1  ;;  %v2889_v37 = vfloor.f32 %v2857_v48  ;;  %vm6710_vm15 = vmand %vm3202_vm12, %vm3234_vm10 }
 0x1be   : > { %vm2508_vm4 = vcmp.lt.s32.totalorder %v2476_v6, 0  ;;  %vm3240_vm13 = vcmp.lt.s32.totalorder %v6653_v20, 14  ;;  %v2955_v51 = vmul.u32 16, %v4470_v23  ;;  %v2604_v2 = vadd.s32 16, %v2476_v6  ;;  %vm6732_vm10 = vmand %vm6698_vm3, %vm3300_vm0 }
 0x1bf   : > { %v2572_v33 = vsel %vm2508_vm4, %v3925_v27, %v4408_v56  ;;  %v3078_v24 = vsel %vm3014_vm2, %v3046_v15, %v2982_v1  ;;  %v4465_v36 = vtrunc.f32 %v2889_v37  ;;  %v2314_v11 = vcvt.s32.f32 %v6675_v0 }
 0x1c0   : > { %v6680_v43 = vpop.f32.mrb[0].mxu0  ;;  %v2700_v3 = vadd.s32 1, %v2572_v33  ;;  %vm3110_vm6 = vcmp.ge.s32.totalorder %v3078_v24, 16  ;;  %v3983_v19 = vadd.s32 4294967280, %v3078_v24  ;;  %v2987_v55 = vsub.s32 %v6614_v32, %v2955_v51 }
 0x1c1   : > { %v1951_v12 = vmin.f32 %v6680_v43, 20.0  ;;  %v6692_v47 = vpop.f32.mrb[1].mxu0  ;;  %v4466_v16 = vcvt.f32.s32 %v4465_v36  ;;  %v6715_v25 = vsel %vm2508_vm4, %v2604_v2, %v2476_v6  ;;  %v2346_v53 = vmul.f32 0.0625, %v2314_v11 }
 0x1c2   : > { %v1949_v22 = vmin.f32 %v6692_v47, 20.0  ;;  %v6704_v56 = vpop.f32.mrb[2].mxu0  ;;  %vm7856_vm8 = vcmp.lt.s32.totalorder %v6423_v10, 512  ;;  %v3174_v52 = vsel %vm3110_vm6, %v3983_v19, %v3078_v24  ;;  %vm3019_vm12 = vcmp.lt.s32.totalorder %v2987_v55, 0 }
 0x1c3   : > { %v1985_v26 = vmul.f32 1.442695, %v1951_v12  ;;  %v1952_v32 = vmin.f32 %v6704_v56, 20.0  ;;  %v6718_v54 = vpop.f32.mrb[3].mxu0  ;;  %vm6724_vm9 = vmand %vm7856_vm8, %vm3239_vm1  ;;  %vm3238_vm2 = vcmp.lt.s32.totalorder %v3174_v52, 14  ;;  %v3051_v61 = vadd.s32 16, %v2987_v55 }
 0x1c4   : > { %v1981_v7 = vmul.f32 1.442695, %v1949_v22  ;;  %v1950_v5 = vmin.f32 %v6718_v54, 20.0  ;;  %vm6741_vm1 = vmand %vm6710_vm15, %vm3298_vm5  ;;  %v2953_v39 = vmul.u32 16, %v4466_v16  ;;  %vm2668_vm0 = vcmp.ge.s32.totalorder %v6715_v25, 16 }
 0x1c5   : > { %5191 = vpow2.f32 %v1985_v26  ;;  %v1987_v10 = vmul.f32 1.442695, %v1952_v32  ;;  %vm6750_vm3 = vmand %vm6724_vm9, %vm3303_vm7  ;;  %v3083_v30 = vsel %vm3019_vm12, %v3051_v61, %v2987_v55  ;;  %v6756_v8 = vsel %vm2668_vm0, %v2700_v3, %v2572_v33 }
 0x1c6   : > { %5193 = vpow2.f32 %v1981_v7  ;;  %v1983_v13 = vmul.f32 1.442695, %v1950_v5  ;;  %v6761_v1 = vsel %vm6686_vm14, 1.0, %v5360_v58  ;;  %vm7865_vm5 = vcmp.lt.s32.totalorder %v6449_v4, 512 }
 0x1c7   : > { %5195 = vpow2.f32 %v1987_v10  ;;  %vm6767_vm4 = vmand %vm7865_vm5, %vm3237_vm11  ;;  %vm3301_vm7 = vcmp.lt.s32.totalorder %v6593_v34, 14  ;;  %v2254_v48 = vadd.s32 112, %v6164_v44  ;;  %vm7868_vm6 = vcmp.lt.s32.totalorder %v6482_v59, 512 }
 0x1c8   : > { %5197 = vpow2.f32 %v1983_v13  ;;  %vm3272_vm14 = vmand %vm7868_vm6, %vm3240_vm13  ;;  %vm3304_vm15 = vcmp.lt.s32.totalorder %v6647_v63, 14  ;;  %v3988_v6 = vadd.s32 4294967280, %v3083_v30  ;;  %v2828_v29 = vcvt.s32.f32 %v6756_v8 }
 0x1c9   : > { %vm7869_vm11 = vcmp.lt.s32.totalorder %v6531_v42, 512  ;;  %vm3302_vm9 = vcmp.lt.s32.totalorder %v6669_v14, 14  ;;  %vm3115_vm12 = vcmp.ge.s32.totalorder %v3083_v30, 16  ;;  %v2985_v34 = vsub.s32 %v6636_v31, %v2953_v39  ;;  %vm3333_vm13 = vmand %vm6767_vm4, %vm3301_vm7 }
 0x1ca   : > { %vm6782_vm8 = vmand %vm7869_vm11, %vm3238_vm2  ;;  %v2378_v20 = vfloor.f32 %v2346_v53  ;;  %v6791_v59 = vsel %vm6732_vm10, 1.0, %v5360_v58  ;;  %v6796_v63 = vsel %vm6741_vm1, 1.0, %v5360_v58  ;;  %vm7872_vm2 = vcmp.ge.s32.totalorder %v6606_v57, 16 }
 0x1cb   : > { %v2795_v42 = vsel %vm7872_vm2, %v6672_v28, %v6606_v57  ;;  %v3954_v31 = vadd.s32 4294967280, %v6619_v60  ;;  %vm3336_vm5 = vmand %vm3272_vm14, %vm3304_vm15  ;;  %vm3211_vm6 = vcmp.lt.s32.totalorder %v6536_v35, 512  ;;  %v2860_v62 = vmul.f32 0.0625, %v2828_v29 }
 0x1cc   : > { %v4403_v23 = vtrunc.f32 %v2378_v20  ;;  %v6807_v15 = vadd.s32 %v6183_v17, %v2254_v48  ;;  %v6812_v37 = vsel %vm6750_vm3, 1.0, %v5360_v58  ;;  %vm3334_vm10 = vmand %vm6782_vm8, %vm3302_vm9  ;;  %v3179_v57 = vsel %vm3115_vm12, %v3988_v6, %v3083_v30 }
 0x1cd   : > { %v3957_v28 = vadd.s32 4294967280, %v6715_v25  ;;  %v2252_v51 = vadd.s32 96, %v6164_v44  ;;  %v6822_v33 = vsel %vm3333_vm13, 1.0, %v5360_v58  ;;  %vm3307_vm1 = vcmp.lt.s32.totalorder %v2795_v42, 14 }
 0x1ce   : > { %v3049_v2 = vadd.s32 16, %v2985_v34  ;;  %v2892_v46 = vfloor.f32 %v2860_v62  ;;  %v6825_v24 = vsel %vm3336_vm5, 1.0, %v5360_v58  ;;  %vm7873_vm3 = vcmp.ge.s32.totalorder %v6619_v60, 16 }
 0x1cf   : > { %v6830_v14 = vsel %vm7873_vm3, %v3954_v31, %v6619_v60  ;;  %vm3017_vm4 = vcmp.lt.s32.totalorder %v2985_v34, 0  ;;  %v4404_v36 = vcvt.f32.s32 %v4403_v23  ;;  %v5192_v3 = vpop.eup %5191  ;;  %v6833_v11 = vsel %vm3334_vm10, 1.0, %v5360_v58 }
 0x1d0   : > { %vm3243_vm7 = vcmp.lt.s32.totalorder %v3179_v57, 14  ;;  %v4471_v12 = vtrunc.f32 %v2892_v46  ;;  %v2319_v45 = vcvt.s32.f32 %v6807_v15  ;;  %v5194_v19 = vpop.eup %5193  ;;  %v2047_v55 = vadd.f32 2.0, %v5192_v3 }
 0x1d1   : > { %v6839_v22 = vsel %vm2668_vm0, %v3957_v28, %v6715_v25  ;;  %v2442_v41 = vmul.u32 16, %v4404_v36  ;;  %v6842_v60 = vadd.s32 %v6183_v17, %v2252_v51  ;;  %v5196_v16 = vpop.eup %5195  ;;  %v2045_v53 = vadd.f32 2.0, %v5194_v19  ;;  %vm3275_vm14 = vmand %vm3211_vm6, %vm3243_vm7 }
 0x1d2   : > { %v3081_v26 = vsel %vm3017_vm4, %v3049_v2, %v2985_v34  ;;  %v4472_v32 = vcvt.f32.s32 %v4471_v12  ;;  %v2255_v21 = vadd.s32 120, %v6164_v44  ;;  %v5198_v52 = vpop.eup %5197  ;;  %v2079_v7 = vmul.f32 %v5192_v3, %v2047_v55  ;;  %vm3339_vm15 = vmand %vm3275_vm14, %vm3307_vm1 }
 0x1d3   : > { %v2048_v50 = vadd.f32 2.0, %v5196_v16  ;;  %v2474_v25 = vsub.s32 %v6675_v0, %v2442_v41  ;;  %v3923_v5 = vadd.s32 4294967295, %v4404_v36  ;;  %v2077_v61 = vmul.f32 %v5194_v19, %v2045_v53 }
 0x1d4   : > { %v2046_v10 = vadd.f32 2.0, %v5198_v52  ;;  %v2956_v49 = vmul.u32 16, %v4472_v32  ;;  %v2351_v39 = vmul.f32 0.0625, %v2319_v45  ;;  %v2143_v13 = vadd.f32 2.0, %v2079_v7 }
 0x1d5   : > { %v2080_v27 = vmul.f32 %v5196_v16, %v2048_v50  ;;  %vm2506_vm0 = vcmp.lt.s32.totalorder %v2474_v25, 0  ;;  %v2317_v30 = vcvt.s32.f32 %v6842_v60  ;;  %v2141_v18 = vadd.f32 2.0, %v2077_v61 }
 0x1d6   : > { %v2078_v48 = vmul.f32 %v5198_v52, %v2046_v10  ;;  %vm3113_vm11 = vcmp.ge.s32.totalorder %v3081_v26, 16  ;;  %v2988_v35 = vsub.s32 %v6756_v8, %v2956_v49  ;;  %5199 = vrcp.f32 %v2143_v13 }
 0x1d7   : > { %v2144_v6 = vadd.f32 2.0, %v2080_v27  ;;  %v3986_v29 = vadd.s32 4294967280, %v3081_v26  ;;  %v2570_v4 = vsel %vm2506_vm0, %v3923_v5, %v4404_v36  ;;  %5201 = vrcp.f32 %v2141_v18 }
 0x1d8   : > { %v2142_v34 = vadd.f32 2.0, %v2078_v48  ;;  %v2383_v20 = vfloor.f32 %v2351_v39  ;;  %v6854_v31 = vadd.s32 %v6183_v17, %v2255_v21  ;;  %v6856_v62 = vpop.f32.mrb[4].mxu0  ;;  %v6859_v42 = vsel %vm3339_vm15, 1.0, %v5360_v58 }
 0x1d9   : > { %5203 = vrcp.f32 %v2144_v6  ;;  %v2602_v23 = vadd.s32 16, %v2474_v25  ;;  %v2349_v8 = vmul.f32 0.0625, %v2317_v30  ;;  %v1955_v57 = vmin.f32 %v6856_v62, 20.0  ;;  %v6862_v28 = vpop.f32.mrb[5].mxu0 }
 0x1da   : > { %5205 = vrcp.f32 %v2142_v34  ;;  %v3052_v51 = vadd.s32 16, %v2988_v35  ;;  %v2698_v2 = vadd.s32 1, %v2570_v4  ;;  %v1953_v46 = vmin.f32 %v6862_v28, 20.0  ;;  %v6865_v36 = vpop.f32.mrb[6].mxu0 }
 0x1db   : > { %v6868_v3 = vsel %vm3113_vm11, %v3986_v29, %v3081_v26  ;;  %vm3020_vm8 = vcmp.lt.s32.totalorder %v2988_v35, 0  ;;  %v6871_v12 = vsel %vm2506_vm0, %v2602_v23, %v2474_v25  ;;  %v1993_v45 = vmul.f32 1.442695, %v1955_v57  ;;  %v6875_v55 = vpop.f32.mrb[7].mxu0 }
 0x1dc   : > { %v1956_v19 = vmin.f32 %v6865_v36, 20.0  ;;  %v4413_v41 = vtrunc.f32 %v2383_v20  ;;  %v2320_v16 = vcvt.s32.f32 %v6854_v31  ;;  %v1989_v53 = vmul.f32 1.442695, %v1953_v46 }
 0x1dd   : > { %v1954_v32 = vmin.f32 %v6875_v55, 20.0  ;;  %vm2666_vm9 = vcmp.ge.s32.totalorder %v6871_v12, 16  ;;  %v2381_v26 = vfloor.f32 %v2349_v8  ;;  %5207 = vpow2.f32 %v1993_v45 }
 0x1de   : > { %v1995_v21 = vmul.f32 1.442695, %v1956_v19  ;;  %v3084_v52 = vsel %vm3020_vm8, %v3052_v51, %v2988_v35  ;;  %v6882_v50 = vsel %vm2666_vm9, %v2698_v2, %v2570_v4  ;;  %v2111_v25 = vmul.f32 %v6680_v43, %v2079_v7 }
 0x1df   : > { %v2109_v5 = vmul.f32 %v2077_v61, %v6692_v47  ;;  %5209 = vpow2.f32 %v1989_v53  ;;  %v1991_v10 = vmul.f32 1.442695, %v1954_v32  ;;  %v2112_v49 = vmul.f32 %v6704_v56, %v2080_v27 }
 0x1e0   : > { %5211 = vpow2.f32 %v1995_v21  ;;  %v2826_v39 = vcvt.s32.f32 %v6882_v50  ;;  %v4414_v13 = vcvt.f32.s32 %v4413_v41  ;;  %v5200_v30 = vpop.eup %5199  ;;  %v3989_v18 = vadd.s32 4294967280, %v3084_v52 }
 0x1e1   : > { %5213 = vpow2.f32 %v1991_v10  ;;  %v4409_v35 = vtrunc.f32 %v2381_v26  ;;  %v6893_v6 = vmul.f32 0.0625, %v2320_v16  ;;  %v5202_v43 = vpop.eup %5201  ;;  %v2207_v47 = vmul.f32 %v5200_v30, %v2111_v25 }
 0x1e2   : > { %vm3116_vm12 = vcmp.ge.s32.totalorder %v3084_v52, 16  ;;  %v2858_v7 = vmul.f32 0.0625, %v2826_v39  ;;  %v2447_v61 = vmul.u32 16, %v4414_v13  ;;  %v2205_v4 = vmul.f32 %v5202_v43, %v2109_v5 }
 0x1e3   : > { %v5204_v29 = vpop.eup %5203  ;;  %v2110_v56 = vmul.f32 %v2078_v48, %v6718_v54  ;;  %v6896_v27 = vcvt.f32.s32 %v4409_v35  ;;  %v6899_v34 = vadd.s32 104, %v6164_v44  ;;  %v3427_v23 = vmul.f32 %v6443_v9, %v2207_v47 }
 0x1e4   : > { %v5206_v20 = vpop.eup %5205  ;;  %v2208_v8 = vmul.f32 %v5204_v29, %v2112_v49  ;;  %v2890_v57 = vfloor.f32 %v2858_v7  ;;  %v2479_v51 = vsub.s32 %v6807_v15, %v2447_v61  ;;  %v3425_v2 = vmul.f32 %v6761_v1, %v2205_v4 }
 0x1e5   : > { %v2206_v46 = vmul.f32 %v5206_v20, %v2110_v56  ;;  %v6906_v45 = vsel %vm3116_vm12, %v3989_v18, %v3084_v52  ;;  %v3955_v54 = vadd.s32 4294967280, %v6871_v12  ;;  %v3928_v41 = vadd.s32 4294967295, %v4414_v13 }
 0x1e6   : > { %v3428_v48 = vmul.f32 %v6791_v59, %v2208_v8  ;;  %v4467_v19 = vtrunc.f32 %v2890_v57  ;;  %v2384_v16 = vfloor.f32 %v6893_v6  ;;  %vm2511_vm13 = vcmp.lt.s32.totalorder %v2479_v51, 0 }
 0x1e7   : > { %v3426_v9 = vmul.f32 %v6796_v63, %v2206_v46  ;;  %v2607_v1 = vadd.s32 16, %v2479_v51  ;;  %v2445_v53 = vmul.u32 16, %v6896_v27  ;;  %v5208_v32 = vpop.eup %5207  ;;  %v3665_v26 = vmul.f32 %v3427_v23, %v3427_v23 }
 0x1e8   : > { %v3663_v59 = vmul.f32 %v3425_v2, %v3425_v2  ;;  %v4203_v21 = vpack.c.bf16 %v3428_v48, %v3427_v23  ;;  %v4468_v52 = vcvt.f32.s32 %v4467_v19  ;;  %v2051_v39 = vadd.f32 2.0, %v5208_v32 }
 0x1e9   : > { %v5210_v25 = vpop.eup %5209  ;;  %v4198_v5 = vpack.c.bf16 %v3426_v9, %v3425_v2  ;;  %v3623_v10 = vadd.f32 %v3426_v9, %v3425_v2  ;;  %v3664_v49 = vmul.f32 %v3426_v9, %v3426_v9  ;;  %v2575_v63 = vsel %vm2511_vm13, %v3928_v41, %v4414_v13 }
 0x1ea   : > { %v5212_v30 = vpop.eup %5211  ;;  %4295 = vst [vmem:[%s6914_s30 + $0x8] sm:$0xff] %v4203_v21   ;;  %v2049_v18 = vadd.f32 2.0, %v5210_v25  ;;  %v2954_v35 = vmul.u32 16, %v4468_v52  ;;  %v6921_v6 = vsel %vm2511_vm13, %v2607_v1, %v2479_v51  ;;  %v2083_v61 = vmul.f32 %v5208_v32, %v2051_v39 }
 0x1eb   : > { %v5214_v43 = vpop.eup %5213  ;;  %4199 = vst [vmem:[%s6914_s30] sm:$0xff] %v4198_v5   ;;  %v3624_v47 = vadd.f32 %v3623_v10, %v3427_v23  ;;  %v3695_v7 = vadd.f32 %v3664_v49, %v3663_v59  ;;  %v2052_v29 = vadd.f32 2.0, %v5212_v30  ;;  %vm3209_vm2 = vcmp.lt.s32.totalorder %v6551_v38, 512 }
 0x1ec   : > { %v3666_v4 = vmul.f32 %v3428_v48, %v3428_v48  ;;  %v2081_v56 = vmul.f32 %v5210_v25, %v2049_v18  ;;  %v2050_v20 = vadd.f32 2.0, %v5214_v43  ;;  %vm3212_vm5 = vcmp.lt.s32.totalorder %v6575_v40, 512 }
 0x1ed   : > { %v2986_v8 = vsub.s32 %v6882_v50, %v2954_v35  ;;  %v3696_v57 = vadd.f32 %v3695_v7, %v3665_v26  ;;  %v2147_v13 = vadd.f32 2.0, %v2083_v61  ;;  %v6927_v2 = vadd.f32 %v3624_v47, %v3428_v48 }
 0x1ee   : > { %v2703_v51 = vadd.s32 1, %v2575_v63  ;;  %v2145_v46 = vadd.f32 2.0, %v2081_v56  ;;  %v2084_v19 = vmul.f32 %v5212_v30, %v2052_v29  ;;  %v6929_v23 = vmul.f32 %v5214_v43, %v2050_v20 }
 0x1ef   : > { %vm3305_vm6 = vcmp.lt.s32.totalorder %v6830_v14, 14  ;;  %vm2671_vm10 = vcmp.ge.s32.totalorder %v6921_v6, 16  ;;  %5215 = vrcp.f32 %v2147_v13  ;;  %v6933_v41 = vadd.f32 %v3696_v57, %v3666_v4 }
 0x1f0   : > { %vm3308_vm1 = vcmp.lt.s32.totalorder %v6839_v22, 14  ;;  %vm3018_vm3 = vcmp.lt.s32.totalorder %v2986_v8, 0  ;;  %v3050_v50 = vadd.s32 16, %v2986_v8  ;;  %5217 = vrcp.f32 %v2145_v46  ;;  %v6939_v1 = vpop.f32.mrb[8].mxu0 }
 0x1f1   : > { %v2148_v9 = vadd.f32 2.0, %v2084_v19  ;;  %vm3241_vm4 = vcmp.lt.s32.totalorder %v6868_v3, 14  ;;  %vm3244_vm7 = vcmp.lt.s32.totalorder %v6906_v45, 14  ;;  %v2146_v48 = vadd.f32 2.0, %v6929_v23  ;;  %v6951_v52 = vpop.f32.mrb[9].mxu0 }
 0x1f2   : > { %v6944_v32 = vsel %vm2666_vm9, %v3955_v54, %v6871_v12  ;;  %v6948_v26 = vsel %vm2671_vm10, %v2703_v51, %v2575_v63  ;;  %v4415_v59 = vtrunc.f32 %v2384_v16  ;;  %v1959_v21 = vmin.f32 %v6939_v1, 20.0  ;;  %v6955_v49 = vpop.f32.mrb[10].mxu0  ;;  %vm6969_vm14 = vmand %vm3209_vm2, %vm3241_vm4 }
 0x1f3   : > { %5219 = vrcp.f32 %v2148_v9  ;;  %v3082_v25 = vsel %vm3018_vm3, %v3050_v50, %v2986_v8  ;;  %v2477_v5 = vsub.s32 %v6842_v60, %v2445_v53  ;;  %v1957_v10 = vmin.f32 %v6951_v52, 20.0  ;;  %v6962_v35 = vpop.f32.mrb[11].mxu0  ;;  %vm6977_vm15 = vmand %vm3212_vm5, %vm3244_vm7 }
 0x1f4   : > { %5221 = vrcp.f32 %v2146_v48  ;;  %v2831_v12 = vcvt.s32.f32 %v6948_v26  ;;  %v3926_v54 = vadd.s32 4294967295, %v6896_v27  ;;  %v2115_v39 = vmul.f32 %v6856_v62, %v2083_v61  ;;  %vm6990_vm9 = vmand %vm6969_vm14, %vm3305_vm6 }
 0x1f5   : > { %v2113_v16 = vmul.f32 %v2081_v56, %v6862_v28  ;;  %v2001_v30 = vmul.f32 1.442695, %v1959_v21  ;;  %v1960_v18 = vmin.f32 %v6955_v49, 20.0  ;;  %v1997_v63 = vmul.f32 1.442695, %v1957_v10  ;;  %vm6999_vm13 = vmand %vm6977_vm15, %vm3308_vm1 }
 0x1f6   : > { %v1958_v53 = vmin.f32 %v6962_v35, 20.0  ;;  %v3987_v43 = vadd.s32 4294967280, %v3082_v25  ;;  %v2863_v47 = vmul.f32 0.0625, %v2831_v12  ;;  %vm2509_vm0 = vcmp.lt.s32.totalorder %v2477_v5, 0 }
 0x1f7   : > { %5223 = vpow2.f32 %v2001_v30  ;;  %v2003_v62 = vmul.f32 1.442695, %v1960_v18  ;;  %v2605_v28 = vadd.s32 16, %v2477_v5  ;;  %vm3210_vm11 = vcmp.lt.s32.totalorder %v6675_v0, 512 }
 0x1f8   : > { %5225 = vpow2.f32 %v1997_v63  ;;  %v1999_v29 = vmul.f32 1.442695, %v1958_v53  ;;  %v2895_v38 = vfloor.f32 %v2863_v47  ;;  %v2573_v3 = vsel %vm2509_vm0, %v3926_v54, %v6896_v27 }
 0x1f9   : > { %5227 = vpow2.f32 %v2003_v62  ;;  %vm3114_vm8 = vcmp.ge.s32.totalorder %v3082_v25, 16  ;;  %v6983_v4 = vsel %vm2509_vm0, %v2605_v28, %v2477_v5  ;;  %v2701_v56 = vadd.s32 1, %v2573_v3  ;;  %v5216_v20 = vpop.eup %5215 }
 0x1fa   : > { %v2116_v45 = vmul.f32 %v6865_v36, %v2084_v19  ;;  %5229 = vpow2.f32 %v1999_v29  ;;  %v4477_v8 = vtrunc.f32 %v2895_v38  ;;  %vm2669_vm12 = vcmp.ge.s32.totalorder %v6983_v4, 16  ;;  %v5218_v27 = vpop.eup %5217 }
 0x1fb   : > { %v2211_v57 = vmul.f32 %v5216_v20, %v2115_v39  ;;  %v3960_v14 = vadd.s32 4294967280, %v6921_v6  ;;  %v7006_v13 = vsel %vm2669_vm12, %v2701_v56, %v2573_v3  ;;  %v7008_v51 = vcvt.f32.s32 %v4415_v59 }
 0x1fc   : > { %v2209_v46 = vmul.f32 %v5218_v27, %v2113_v16  ;;  %v3178_v19 = vsel %vm3114_vm8, %v3987_v43, %v3082_v25  ;;  %v4478_v50 = vcvt.f32.s32 %v4477_v8  ;;  %v2829_v22 = vcvt.s32.f32 %v7006_v13 }
 0x1fd   : > { %v5220_v9 = vpop.eup %5219  ;;  %v3431_v48 = vmul.f32 %v6812_v37, %v2211_v57  ;;  %v2114_v21 = vmul.f32 %v6929_v23, %v6875_v55  ;;  %v7018_v5 = vsel %vm6990_vm9, 1.0, %v5360_v58  ;;  %vm3306_vm2 = vcmp.lt.s32.totalorder %v6944_v32, 14 }
 0x1fe   : > { %v5222_v59 = vpop.eup %5221  ;;  %v3429_v10 = vmul.f32 %v6822_v33, %v2209_v46  ;;  %v2212_v25 = vmul.f32 %v5220_v9, %v2116_v45  ;;  %v7025_v12 = vsel %vm6999_vm13, 1.0, %v5360_v58  ;;  %v2448_v37 = vmul.u32 16, %v7008_v51 }
 0x1ff   : > { %v2210_v54 = vmul.f32 %v5222_v59, %v2114_v21  ;;  %vm3242_vm5 = vcmp.lt.s32.totalorder %v3178_v19, 14  ;;  %v7031_v55 = vsel %vm2671_vm10, %v3960_v14, %v6921_v6  ;;  %v2959_v23 = vmul.u32 16, %v4478_v50 }
 0x200   : > { %v3626_v39 = vadd.f32 %v6927_v2, %v3429_v10  ;;  %v3667_v16 = vmul.f32 %v3429_v10, %v3429_v10  ;;  %v3432_v33 = vmul.f32 %v6825_v24, %v2212_v25  ;;  %v2861_v30 = vmul.f32 0.0625, %v2829_v22  ;;  %vm3274_vm6 = vmand %vm3210_vm11, %vm3242_vm5 }
 0x201   : > { %v5224_v18 = vpop.eup %5223  ;;  %v3669_v63 = vmul.f32 %v3431_v48, %v3431_v48  ;;  %v3430_v53 = vmul.f32 %v6833_v11, %v2210_v54  ;;  %v3929_v43 = vadd.s32 4294967295, %v7008_v51  ;;  %v7039_v47 = vadd.s32 %v6183_v17, %v6899_v34  ;;  %vm3338_vm10 = vmand %vm3274_vm6, %vm3306_vm2 }
 0x202   : > { %v5226_v6 = vpop.eup %5225  ;;  %v3698_v7 = vadd.f32 %v6933_v41, %v3667_v16  ;;  %v4213_v2 = vpack.c.bf16 %v3432_v33, %v3431_v48  ;;  %v2055_v62 = vadd.f32 2.0, %v5224_v18  ;;  %v2480_v24 = vsub.s32 %v6854_v31, %v2448_v37 }
 0x203   : > { %v5228_v28 = vpop.eup %5227  ;;  %v4208_v61 = vpack.c.bf16 %v3430_v53, %v3429_v10  ;;  %v3627_v29 = vadd.f32 %v3626_v39, %v3430_v53  ;;  %v3668_v38 = vmul.f32 %v3430_v53, %v3430_v53  ;;  %v2053_v3 = vadd.f32 2.0, %v5226_v6 }
 0x204   : > { %v5230_v11 = vpop.eup %5229  ;;  %4297 = vst [vmem:[%s6914_s30 + $0x18] sm:$0xff] %v4213_v2   ;;  %v2087_v34 = vmul.f32 %v5224_v18, %v2055_v62  ;;  %v2056_v56 = vadd.f32 2.0, %v5228_v28  ;;  %v2991_v41 = vsub.s32 %v6948_v26, %v2959_v23  ;;  %v2893_v20 = vfloor.f32 %v2861_v30 }
 0x205   : > { %4296 = vst [vmem:[%s6914_s30 + $0x10] sm:$0xff] %v4208_v61   ;;  %v3628_v45 = vadd.f32 %v3627_v29, %v3431_v48  ;;  %v3699_v40 = vadd.f32 %v3698_v7, %v3668_v38  ;;  %v2085_v8 = vmul.f32 %v5226_v6, %v2053_v3  ;;  %v2054_v27 = vadd.f32 2.0, %v5230_v11 }
 0x206   : > { %v2151_v57 = vadd.f32 2.0, %v2087_v34  ;;  %v2088_v36 = vmul.f32 %v5228_v28, %v2056_v56  ;;  %vm2512_vm1 = vcmp.lt.s32.totalorder %v2480_v24, 0  ;;  %v2608_v0 = vadd.s32 16, %v2480_v24 }
 0x207   : > { %v3670_v14 = vmul.f32 %v3432_v33, %v3432_v33  ;;  %v3700_v46 = vadd.f32 %v3699_v40, %v3669_v63  ;;  %v2149_v19 = vadd.f32 2.0, %v2085_v8  ;;  %v7051_v50 = vadd.f32 %v3628_v45, %v3432_v33 }
 0x208   : > { %5231 = vrcp.f32 %v2151_v57  ;;  %v2152_v26 = vadd.f32 2.0, %v2088_v36  ;;  %v2086_v22 = vmul.f32 %v5230_v11, %v2054_v27  ;;  %v3055_v9 = vadd.s32 16, %v2991_v41  ;;  %v7058_v59 = vpop.f32.mrb[12].mxu0 }
 0x209   : > { %5233 = vrcp.f32 %v2149_v19  ;;  %v7053_v48 = vadd.f32 %v3700_v46, %v3670_v14  ;;  %v7056_v21 = vsel %vm3338_vm10, 1.0, %v5360_v58  ;;  %vm3023_vm3 = vcmp.lt.s32.totalorder %v2991_v41, 0  ;;  %v7062_v54 = vpop.f32.mrb[13].mxu0 }
 0x20a   : > { %5235 = vrcp.f32 %v2152_v26  ;;  %v2150_v32 = vadd.f32 2.0, %v2086_v22  ;;  %v3958_v10 = vadd.s32 4294967280, %v6983_v4  ;;  %v4473_v25 = vtrunc.f32 %v2893_v20  ;;  %v7069_v63 = vpop.f32.mrb[14].mxu0 }
 0x20b   : > { %v1963_v37 = vmin.f32 %v7058_v59, 20.0  ;;  %v2576_v23 = vsel %vm2512_vm1, %v3929_v43, %v7008_v51  ;;  %v2640_v39 = vsel %vm2512_vm1, %v2608_v0, %v2480_v24  ;;  %v2318_v16 = vcvt.s32.f32 %v7039_v47  ;;  %v7072_v2 = vpop.f32.mrb[15].mxu0 }
 0x20c   : > { %5237 = vrcp.f32 %v2150_v32  ;;  %v3087_v33 = vsel %vm3023_vm3, %v3055_v9, %v2991_v41  ;;  %v1961_v30 = vmin.f32 %v7062_v54, 20.0  ;;  %v4474_v18 = vcvt.f32.s32 %v4473_v25 }
 0x20d   : > { %v2009_v53 = vmul.f32 1.442695, %v1963_v37  ;;  %v1964_v6 = vmin.f32 %v7069_v63, 20.0  ;;  %vm2672_vm4 = vcmp.ge.s32.totalorder %v2640_v39, 16  ;;  %v2704_v7 = vadd.s32 1, %v2576_v23 }
 0x20e   : > { %v2119_v51 = vmul.f32 %v6939_v1, %v2087_v34  ;;  %v2005_v43 = vmul.f32 1.442695, %v1961_v30  ;;  %v2957_v62 = vmul.u32 16, %v4474_v18  ;;  %v1962_v24 = vmin.f32 %v7072_v2, 20.0 }
 0x20f   : > { %5239 = vpow2.f32 %v2009_v53  ;;  %v3992_v28 = vadd.s32 4294967280, %v3087_v33  ;;  %v2011_v61 = vmul.f32 1.442695, %v1964_v6  ;;  %v7077_v29 = vsel %vm2672_vm4, %v2704_v7, %v2576_v23 }
 0x210   : > { %vm3119_vm7 = vcmp.ge.s32.totalorder %v3087_v33, 16  ;;  %5241 = vpow2.f32 %v2005_v43  ;;  %v2989_v38 = vsub.s32 %v7006_v13, %v2957_v62  ;;  %v2832_v3 = vcvt.s32.f32 %v7077_v29 }
 0x211   : > { %v2117_v11 = vmul.f32 %v2085_v8, %v6951_v52  ;;  %5243 = vpow2.f32 %v2011_v61  ;;  %v2007_v1 = vmul.f32 1.442695, %v1962_v24  ;;  %v2350_v34 = vmul.f32 0.0625, %v2318_v16 }
 0x212   : > { %v5232_v56 = vpop.eup %5231  ;;  %v2120_v41 = vmul.f32 %v6955_v49, %v2088_v36  ;;  %vm3021_vm14 = vcmp.lt.s32.totalorder %v2989_v38, 0  ;;  %v3053_v20 = vadd.s32 16, %v2989_v38  ;;  %v2864_v45 = vmul.f32 0.0625, %v2832_v3 }
 0x213   : > { %v5234_v40 = vpop.eup %5233  ;;  %v2215_v27 = vmul.f32 %v5232_v56, %v2119_v51  ;;  %v7083_v57 = vsel %vm3119_vm7, %v3992_v28, %v3087_v33  ;;  %v3961_v0 = vadd.s32 4294967280, %v2640_v39  ;;  %v2382_v14 = vfloor.f32 %v2350_v34 }
 0x214   : > { %v5236_v13 = vpop.eup %5235  ;;  %v2213_v46 = vmul.f32 %v5234_v40, %v2117_v11  ;;  %v3085_v19 = vsel %vm3021_vm14, %v3053_v20, %v2989_v38  ;;  %v2896_v26 = vfloor.f32 %v2864_v45  ;;  %5245 = vpow2.f32 %v2007_v1 }
 0x215   : > { %v2216_v52 = vmul.f32 %v5236_v13, %v2120_v41  ;;  %v2118_v8 = vmul.f32 %v2086_v22, %v6962_v35  ;;  %v7089_v49 = vsel %vm2669_vm12, %v3958_v10, %v6983_v4  ;;  %v2258_v36 = vadd.s32 144, %v6164_v44 }
 0x216   : > { %v5238_v9 = vpop.eup %5237  ;;  %v3435_v32 = vmul.f32 %v6859_v42, %v2215_v27  ;;  %v3433_v25 = vmul.f32 %v7018_v5, %v2213_v46  ;;  %vm3215_vm0 = vcmp.lt.s32.totalorder %v6807_v15, 512  ;;  %vm3247_vm15 = vcmp.lt.s32.totalorder %v7083_v57, 14 }
 0x217   : > { %v4479_v37 = vtrunc.f32 %v2896_v26  ;;  %v4411_v23 = vtrunc.f32 %v2382_v14  ;;  %v3436_v35 = vmul.f32 %v7025_v12, %v2216_v52  ;;  %v2214_v22 = vmul.f32 %v5238_v9, %v2118_v8  ;;  %vm7124_vm6 = vmand %vm3215_vm0, %vm3247_vm15 }
 0x218   : > { %vm3117_vm11 = vcmp.ge.s32.totalorder %v3085_v19, 16  ;;  %v7098_v4 = vsel %vm2672_vm4, %v3961_v0, %v2640_v39  ;;  %v3630_v10 = vadd.f32 %v7051_v50, %v3433_v25  ;;  %v3671_v16 = vmul.f32 %v3433_v25, %v3433_v25 }
 0x219   : > { %v3990_v42 = vadd.s32 4294967280, %v3085_v19  ;;  %vm3213_vm8 = vcmp.lt.s32.totalorder %v6842_v60, 512  ;;  %v4480_v5 = vcvt.f32.s32 %v4479_v37  ;;  %v5240_v33 = vpop.eup %5239  ;;  %v4223_v30 = vpack.c.bf16 %v3436_v35, %v3435_v32 }
 0x21a   : > { %v3434_v18 = vmul.f32 %v7056_v21, %v2214_v22  ;;  %vm3311_vm9 = vcmp.lt.s32.totalorder %v7031_v55, 14  ;;  %v4412_v12 = vcvt.f32.s32 %v4411_v23  ;;  %v7105_v53 = vadd.s32 %v6183_v17, %v2258_v36  ;;  %v5242_v39 = vpop.eup %5241 }
 0x21b   : > { %v3673_v6 = vmul.f32 %v3435_v32, %v3435_v32  ;;  %v3702_v50 = vadd.f32 %v7053_v48, %v3671_v16  ;;  %v2059_v7 = vadd.f32 2.0, %v5240_v33  ;;  %v2960_v51 = vmul.u32 16, %v4480_v5  ;;  %v5244_v43 = vpop.eup %5243  ;;  %4299 = vst [vmem:[%s6914_s30 + $0x28] sm:$0xff] %v4223_v30   ;;  %vm7147_vm4 = vmand %vm7124_vm6, %vm3311_vm9 }
 0x21c   : > { %v4218_v62 = vpack.c.bf16 %v3434_v18, %v3433_v25  ;;  %v3631_v24 = vadd.f32 %v3630_v10, %v3434_v18  ;;  %v3672_v28 = vmul.f32 %v3434_v18, %v3434_v18  ;;  %v2057_v61 = vadd.f32 2.0, %v5242_v39 }
 0x21d   : > { %vm3309_vm12 = vcmp.lt.s32.totalorder %v7089_v49, 14  ;;  %v7110_v21 = vmul.f32 %v5240_v33, %v2059_v7  ;;  %v3181_v38 = vsel %vm3117_vm11, %v3990_v42, %v3085_v19  ;;  %v2060_v3 = vadd.f32 2.0, %v5244_v43 }
 0x21e   : > { %v2992_v11 = vsub.s32 %v7077_v29, %v2960_v51  ;;  %vm3216_vm13 = vcmp.lt.s32.totalorder %v6854_v31, 512  ;;  %4298 = vst [vmem:[%s6914_s30 + $0x20] sm:$0xff] %v4218_v62   ;;  %v3632_v48 = vadd.f32 %v3631_v24, %v3435_v32  ;;  %v3703_v1 = vadd.f32 %v3702_v50, %v3672_v28  ;;  %v5246_v41 = vpop.eup %5245 }
 0x21f   : > { %v2089_v34 = vmul.f32 %v5242_v39, %v2057_v61  ;;  %v2446_v56 = vmul.u32 16, %v4412_v12  ;;  %v3674_v20 = vmul.f32 %v3436_v35, %v3436_v35  ;;  %v2155_v45 = vadd.f32 2.0, %v7110_v21 }
 0x220   : > { %v2092_v40 = vmul.f32 %v5244_v43, %v2060_v3  ;;  %v2323_v27 = vcvt.s32.f32 %v7105_v53  ;;  %v3704_v0 = vadd.f32 %v3703_v1, %v3673_v6  ;;  %v7118_v13 = vadd.f32 %v3632_v48, %v3436_v35  ;;  %v7131_v32 = vpop.f32.mrb[0].mxu1 }
 0x221   : > { %v2153_v14 = vadd.f32 2.0, %v2089_v34  ;;  %vm3024_vm2 = vcmp.lt.s32.totalorder %v2992_v11, 0  ;;  %5247 = vrcp.f32 %v2155_v45  ;;  %vm3245_vm5 = vcmp.lt.s32.totalorder %v3181_v38, 14  ;;  %v7141_v23 = vpop.f32.mrb[1].mxu1 }
 0x222   : > { %v2156_v29 = vadd.f32 2.0, %v2092_v40  ;;  %v3056_v46 = vadd.s32 16, %v2992_v11  ;;  %v7128_v26 = vadd.f32 %v3704_v0, %v3674_v20  ;;  %v2058_v52 = vadd.f32 2.0, %v5246_v41  ;;  %vm7135_vm10 = vmand %vm3213_vm8, %vm3245_vm5  ;;  %v7152_v42 = vpop.f32.mrb[2].mxu1 }
 0x223   : > { %5249 = vrcp.f32 %v2153_v14  ;;  %v2478_v8 = vsub.s32 %v7039_v47, %v2446_v56  ;;  %v3927_v9 = vadd.s32 4294967295, %v4412_v12  ;;  %v2355_v25 = vmul.f32 0.0625, %v2323_v27  ;;  %v7156_v55 = vpop.f32.mrb[3].mxu1  ;;  %vm3341_vm14 = vmand %vm7135_vm10, %vm3309_vm12 }
 0x224   : > { %5251 = vrcp.f32 %v2156_v29  ;;  %v3088_v36 = vsel %vm3024_vm2, %v3056_v46, %v2992_v11  ;;  %v7139_v37 = vmul.f32 %v5246_v41, %v2058_v52  ;;  %v1967_v10 = vmin.f32 %v7131_v32, 20.0 }
 0x225   : > { %vm3120_vm1 = vcmp.ge.s32.totalorder %v3088_v36, 16  ;;  %v3993_v57 = vadd.s32 4294967280, %v3088_v36  ;;  %vm2510_vm3 = vcmp.lt.s32.totalorder %v2478_v8, 0  ;;  %v2606_v22 = vadd.s32 16, %v2478_v8 }
 0x226   : > { %v2574_v60 = vsel %vm2510_vm3, %v3927_v9, %v4412_v12  ;;  %v2387_v16 = vfloor.f32 %v2355_v25  ;;  %vm3312_vm7 = vcmp.lt.s32.totalorder %v7098_v4, 14  ;;  %v2256_v30 = vadd.s32 128, %v6164_v44 }
 0x227   : > { %v3184_v5 = vsel %vm3120_vm1, %v3993_v57, %v3088_v36  ;;  %v2702_v33 = vadd.s32 1, %v2574_v60  ;;  %v7162_v18 = vsel %vm2510_vm3, %v2606_v22, %v2478_v8  ;;  %v2017_v12 = vmul.f32 1.442695, %v1967_v10 }
 0x228   : > { %vm3248_vm0 = vcmp.lt.s32.totalorder %v3184_v5, 14  ;;  %v4421_v39 = vtrunc.f32 %v2387_v16  ;;  %v4024_v6 = vsel %vm7147_vm4, 1.0, %v5360_v58  ;;  %v2154_v50 = vadd.f32 2.0, %v7139_v37 }
 0x229   : > { %vm3280_vm15 = vmand %vm3216_vm13, %vm3248_vm0  ;;  %vm2670_vm11 = vcmp.ge.s32.totalorder %v7162_v18, 16  ;;  %5253 = vpow2.f32 %v2017_v12  ;;  %v1965_v51 = vmin.f32 %v7141_v23, 20.0  ;;  %v2123_v43 = vmul.f32 %v7058_v59, %v7110_v21 }
 0x22a   : > { %v2734_v49 = vsel %vm2670_vm11, %v2702_v33, %v2574_v60  ;;  %v4422_v7 = vcvt.f32.s32 %v4421_v39  ;;  %v4022_v62 = vsel %vm3341_vm14, 1.0, %v5360_v58  ;;  %vm3344_vm8 = vmand %vm3280_vm15, %vm3312_vm7  ;;  %v7180_v24 = vadd.s32 %v6183_v17, %v2256_v30 }
 0x22b   : > { %v2830_v31 = vcvt.s32.f32 %v2734_v49  ;;  %v5248_v28 = vpop.eup %5247  ;;  %v2121_v61 = vmul.f32 %v2089_v34, %v7062_v54  ;;  %v2124_v38 = vmul.f32 %v7069_v63, %v2092_v40  ;;  %v2013_v11 = vmul.f32 1.442695, %v1965_v51 }
 0x22c   : > { %v2451_v3 = vmul.u32 16, %v4422_v7  ;;  %v2219_v1 = vmul.f32 %v5248_v28, %v2123_v43  ;;  %v3932_v59 = vadd.s32 4294967295, %v4422_v7  ;;  %v2321_v21 = vcvt.s32.f32 %v7180_v24 }
 0x22d   : > { %v5250_v48 = vpop.eup %5249  ;;  %v2862_v56 = vmul.f32 0.0625, %v2830_v31  ;;  %v4025_v20 = vsel %vm3344_vm8, 1.0, %v5360_v58  ;;  %5255 = vrcp.f32 %v2154_v50  ;;  %v1968_v15 = vmin.f32 %v7152_v42, 20.0 }
 0x22e   : > { %v5252_v41 = vpop.eup %5251  ;;  %v2217_v4 = vmul.f32 %v5250_v48, %v2121_v61  ;;  %v2483_v45 = vsub.s32 %v7105_v53, %v2451_v3  ;;  %5257 = vpow2.f32 %v2013_v11  ;;  %v7187_v54 = vmul.f32 %v4024_v6, %v2219_v1 }
 0x22f   : > { %v2220_v27 = vmul.f32 %v5252_v41, %v2124_v38  ;;  %v2894_v0 = vfloor.f32 %v2862_v56  ;;  %v2353_v46 = vmul.f32 0.0625, %v2321_v21  ;;  %v3959_v5 = vadd.s32 4294967280, %v7162_v18 }
 0x230   : > { %v7189_v63 = vmul.f32 %v4022_v62, %v2217_v4  ;;  %vm2515_vm9 = vcmp.lt.s32.totalorder %v2483_v45, 0  ;;  %v2611_v34 = vadd.s32 16, %v2483_v45  ;;  %v2259_v33 = vadd.s32 152, %v6164_v44 }
 0x231   : > { %v7191_v40 = vmul.f32 %v4025_v20, %v2220_v27  ;;  %v4475_v14 = vtrunc.f32 %v2894_v0  ;;  %v2579_v29 = vsel %vm2515_vm9, %v3932_v59, %v4422_v7  ;;  %v2385_v16 = vfloor.f32 %v2353_v46 }
 0x232   : > { %v7195_v19 = vadd.f32 %v7118_v13, %v7189_v63  ;;  %v3675_v52 = vmul.f32 %v7189_v63, %v7189_v63  ;;  %v7199_v8 = vsel %vm2515_vm9, %v2611_v34, %v2483_v45  ;;  %v2707_v36 = vadd.s32 1, %v2579_v29 }
 0x233   : > { %v4233_v9 = vpack.c.bf16 %v7191_v40, %v7187_v54  ;;  %v4476_v25 = vcvt.f32.s32 %v4475_v14  ;;  %vm2675_vm12 = vcmp.ge.s32.totalorder %v7199_v8, 16  ;;  %v5254_v57 = vpop.eup %5253  ;;  %v2019_v39 = vmul.f32 1.442695, %v1968_v15 }
 0x234   : > { %v7206_v35 = vadd.f32 %v7128_v26, %v3675_v52  ;;  %v2739_v13 = vsel %vm2675_vm12, %v2707_v36, %v2579_v29  ;;  %v2063_v22 = vadd.f32 2.0, %v5254_v57  ;;  %v4417_v26 = vtrunc.f32 %v2385_v16 }
 0x235   : > { %4301 = vst [vmem:[%s6914_s30 + $0x38] sm:$0xff] %v4233_v9   ;;  %v2958_v60 = vmul.u32 16, %v4476_v25  ;;  %v2835_v10 = vcvt.s32.f32 %v2739_v13  ;;  %v7216_v7 = vadd.s32 %v6183_v17, %v2259_v33  ;;  %vm3214_vm2 = vcmp.lt.s32.totalorder %v7039_v47, 512 }
 0x236   : > { %v7213_v50 = vmul.f32 %v5254_v57, %v2063_v22  ;;  %v1966_v62 = vmin.f32 %v7156_v55, 20.0  ;;  %v4418_v28 = vcvt.f32.s32 %v4417_v26  ;;  %v2122_v38 = vmul.f32 %v7139_v37, %v7072_v2 }
 0x237   : > { %v2990_v30 = vsub.s32 %v2734_v49, %v2958_v60  ;;  %v2867_v12 = vmul.f32 0.0625, %v2835_v10  ;;  %v5256_v6 = vpop.eup %5255  ;;  %v2798_v49 = vsel %vm2670_vm11, %v3959_v5, %v7162_v18  ;;  %v2324_v61 = vcvt.s32.f32 %v7216_v7 }
 0x238   : > { %v5258_v51 = vpop.eup %5257  ;;  %5259 = vpow2.f32 %v2019_v39  ;;  %v2257_v11 = vadd.s32 136, %v6164_v44  ;;  %v2159_v1 = vadd.f32 2.0, %v7213_v50  ;;  %v7228_v59 = vpop.f32.mrb[4].mxu1  ;;  %vm3310_vm6 = vcmp.lt.s32.totalorder %v2798_v49, 14 }
 0x239   : > { %vm3022_vm13 = vcmp.lt.s32.totalorder %v2990_v30, 0  ;;  %v3054_v43 = vadd.s32 16, %v2990_v30  ;;  %v2899_v31 = vfloor.f32 %v2867_v12  ;;  %v2449_v18 = vmul.u32 16, %v4418_v28  ;;  %v7230_v4 = vpop.f32.mrb[5].mxu1 }
 0x23a   : > { %v2356_v21 = vmul.f32 0.0625, %v2324_v61  ;;  %v2015_v41 = vmul.f32 1.442695, %v1966_v62  ;;  %v2061_v2 = vadd.f32 2.0, %v5258_v51  ;;  %v3930_v37 = vadd.s32 4294967295, %v4418_v28  ;;  %v7232_v27 = vpop.f32.mrb[6].mxu1 }
 0x23b   : > { %v3086_v3 = vsel %vm3022_vm13, %v3054_v43, %v2990_v30  ;;  %v4485_v56 = vtrunc.f32 %v2899_v31  ;;  %v2218_v0 = vmul.f32 %v5256_v6, %v2122_v38  ;;  %v2481_v34 = vsub.s32 %v7180_v24, %v2449_v18  ;;  %v7238_v29 = vpop.f32.mrb[7].mxu1 }
 0x23c   : > { %vm3118_vm5 = vcmp.ge.s32.totalorder %v3086_v3, 16  ;;  %v3991_v48 = vadd.s32 4294967280, %v3086_v3  ;;  %v7236_v14 = vadd.s32 %v6183_v17, %v2257_v11  ;;  %5261 = vrcp.f32 %v2159_v1 }
 0x23d   : > { %v4486_v45 = vcvt.f32.s32 %v4485_v56  ;;  %v2388_v52 = vfloor.f32 %v2356_v21  ;;  %vm2513_vm4 = vcmp.lt.s32.totalorder %v2481_v34, 0  ;;  %v2609_v36 = vadd.s32 16, %v2481_v34 }
 0x23e   : > { %v3182_v20 = vsel %vm3118_vm5, %v3991_v48, %v3086_v3  ;;  %5263 = vpow2.f32 %v2015_v41  ;;  %v2093_v15 = vmul.f32 %v5258_v51, %v2061_v2  ;;  %v2577_v57 = vsel %vm2513_vm4, %v3930_v37, %v4418_v28 }
 0x23f   : > { %vm3246_vm10 = vcmp.lt.s32.totalorder %v3182_v20, 14  ;;  %v2963_v46 = vmul.u32 16, %v4486_v45  ;;  %v2641_v22 = vsel %vm2513_vm4, %v2609_v36, %v2481_v34  ;;  %v2705_v10 = vadd.s32 1, %v2577_v57 }
 0x240   : > { %vm3278_vm1 = vmand %vm3214_vm2, %vm3246_vm10  ;;  %v2322_v47 = vcvt.s32.f32 %v7236_v14  ;;  %vm2673_vm14 = vcmp.ge.s32.totalorder %v2641_v22, 16  ;;  %v4423_v5 = vtrunc.f32 %v2388_v52  ;;  %v3964_v6 = vadd.s32 4294967280, %v7199_v8 }
 0x241   : > { %vm3342_vm3 = vmand %vm3278_vm1, %vm3310_vm6  ;;  %v2995_v25 = vsub.s32 %v2739_v13, %v2963_v46  ;;  %v2737_v13 = vsel %vm2673_vm14, %v2705_v10, %v2577_v57  ;;  %v3677_v43 = vmul.f32 %v7187_v54, %v7187_v54  ;;  %v2157_v31 = vadd.f32 2.0, %v2093_v15 }
 0x242   : > { %v4023_v9 = vsel %vm3342_vm3, 1.0, %v5360_v58  ;;  %v5260_v33 = vpop.eup %5259  ;;  %v2833_v51 = vcvt.s32.f32 %v2737_v13  ;;  %v2354_v61 = vmul.f32 0.0625, %v2322_v47  ;;  %v4424_v48 = vcvt.f32.s32 %v4423_v5 }
 0x243   : > { %v3438_v60 = vmul.f32 %v4023_v9, %v2218_v0  ;;  %vm3027_vm7 = vcmp.lt.s32.totalorder %v2995_v25, 0  ;;  %v3059_v16 = vadd.s32 16, %v2995_v25  ;;  %v2064_v28 = vadd.f32 2.0, %v5260_v33 }
 0x244   : > { %v2127_v56 = vmul.f32 %v7131_v32, %v7213_v50  ;;  %vm3219_vm15 = vcmp.lt.s32.totalorder %v7105_v53, 512  ;;  %5265 = vrcp.f32 %v2157_v31  ;;  %v3962_v21 = vadd.s32 4294967280, %v2641_v22 }
 0x245   : > { %v4228_v30 = vpack.c.bf16 %v3438_v60, %v7189_v63  ;;  %v3635_v12 = vadd.f32 %v7195_v19, %v3438_v60  ;;  %v3676_v39 = vmul.f32 %v3438_v60, %v3438_v60  ;;  %v3091_v26 = vsel %vm3027_vm7, %v3059_v16, %v2995_v25 }
 0x246   : > { %v3678_v63 = vmul.f32 %v7191_v40, %v7191_v40  ;;  %v2865_v19 = vmul.f32 0.0625, %v2833_v51  ;;  %v3996_v3 = vadd.s32 4294967280, %v3091_v26  ;;  %v5262_v1 = vpop.eup %5261  ;;  %vm3123_vm0 = vcmp.ge.s32.totalorder %v3091_v26, 16 }
 0x247   : > { %4300 = vst [vmem:[%s6914_s30 + $0x30] sm:$0xff] %v4228_v30   ;;  %v3636_v62 = vadd.f32 %v3635_v12, %v7187_v54  ;;  %v3707_v49 = vadd.f32 %v7206_v35, %v3676_v39  ;;  %v7264_v54 = vsel %vm2675_vm12, %v3964_v6, %v7199_v8  ;;  %v7269_v45 = vmul.f32 %v5260_v33, %v2064_v28 }
 0x248   : > { %v2897_v35 = vfloor.f32 %v2865_v19  ;;  %v5264_v18 = vpop.eup %5263  ;;  %v3933_v2 = vadd.s32 4294967295, %v4424_v48  ;;  %v2386_v32 = vfloor.f32 %v2354_v61  ;;  %v3187_v50 = vsel %vm3123_vm0, %v3996_v3, %v3091_v26 }
 0x249   : > { %v3708_v38 = vadd.f32 %v3707_v49, %v3677_v43  ;;  %v7257_v11 = vadd.f32 %v3636_v62, %v7191_v40  ;;  %v2452_v40 = vmul.u32 16, %v4424_v48  ;;  %vm3315_vm11 = vcmp.lt.s32.totalorder %v7264_v54, 14 }
 0x24a   : > { %v4481_v20 = vtrunc.f32 %v2897_v35  ;;  %v2125_v8 = vmul.f32 %v2093_v15, %v7141_v23  ;;  %v2262_v0 = vadd.s32 176, %v6164_v44  ;;  %v7275_v34 = vmul.f32 %v5262_v1, %v2127_v56 }
 0x24b   : > { %v7267_v41 = vadd.f32 %v3708_v38, %v3678_v63  ;;  %v2484_v37 = vsub.s32 %v7216_v7, %v2452_v40  ;;  %v2062_v52 = vadd.f32 2.0, %v5264_v18  ;;  %v1971_v36 = vmin.f32 %v7228_v59, 20.0 }
 0x24c   : > { %v4482_v46 = vcvt.f32.s32 %v4481_v20  ;;  %v2801_v9 = vsel %vm2673_vm14, %v3962_v21, %v2641_v22  ;;  %v4419_v57 = vtrunc.f32 %v2386_v32  ;;  %vm3251_vm9 = vcmp.lt.s32.totalorder %v3187_v50, 14 }
 0x24d   : > { %vm2516_vm8 = vcmp.lt.s32.totalorder %v2484_v37, 0  ;;  %v2612_v25 = vadd.s32 16, %v2484_v37  ;;  %vm3217_vm12 = vcmp.lt.s32.totalorder %v7180_v24, 512  ;;  %v2160_v23 = vadd.f32 2.0, %v7269_v45  ;;  %vm7299_vm6 = vmand %vm3219_vm15, %vm3251_vm9 }
 0x24e   : > { %v2961_v60 = vmul.u32 16, %v4482_v46  ;;  %v2580_v15 = vsel %vm2516_vm8, %v3933_v2, %v4424_v48  ;;  %v4420_v16 = vcvt.f32.s32 %v4419_v57  ;;  %v7284_v5 = vadd.s32 %v6183_v17, %v2262_v0  ;;  %vm3347_vm3 = vmand %vm7299_vm6, %vm3315_vm11 }
 0x24f   : > { %v7281_v10 = vsel %vm2516_vm8, %v2612_v25, %v2484_v37  ;;  %v2708_v47 = vadd.s32 1, %v2580_v15  ;;  %v7287_v22 = vmul.f32 %v5264_v18, %v2062_v52  ;;  %v1969_v30 = vmin.f32 %v7230_v4, 20.0 }
 0x250   : > { %v2993_v33 = vsub.s32 %v2737_v13, %v2961_v60  ;;  %vm2676_vm13 = vcmp.ge.s32.totalorder %v7281_v10, 16  ;;  %vm3313_vm2 = vcmp.lt.s32.totalorder %v2801_v9, 14  ;;  %v2450_v39 = vmul.u32 16, %v4420_v16  ;;  %v5266_v13 = vpop.eup %5265 }
 0x251   : > { %v7292_v12 = vsel %vm2676_vm13, %v2708_v47, %v2580_v15  ;;  %v2327_v6 = vcvt.s32.f32 %v7284_v5  ;;  %v3931_v43 = vadd.s32 4294967295, %v4420_v16  ;;  %5267 = vrcp.f32 %v2160_v23  ;;  %v7304_v19 = vpop.f32.mrb[8].mxu1 }
 0x252   : > { %vm3025_vm5 = vcmp.lt.s32.totalorder %v2993_v33, 0  ;;  %v3057_v26 = vadd.s32 16, %v2993_v33  ;;  %v2836_v51 = vcvt.s32.f32 %v7292_v12  ;;  %v2482_v49 = vsub.s32 %v7236_v14, %v2450_v39  ;;  %v7307_v48 = vpop.f32.mrb[9].mxu1 }
 0x253   : > { %v2025_v31 = vmul.f32 1.442695, %v1971_v36  ;;  %v2359_v63 = vmul.f32 0.0625, %v2327_v6  ;;  %v2158_v38 = vadd.f32 2.0, %v7287_v22  ;;  %v2021_v3 = vmul.f32 1.442695, %v1969_v30 }
 0x254   : > { %v3089_v28 = vsel %vm3025_vm5, %v3057_v26, %v2993_v33  ;;  %v2868_v61 = vmul.f32 0.0625, %v2836_v51  ;;  %vm2514_vm1 = vcmp.lt.s32.totalorder %v2482_v49, 0  ;;  %v2610_v1 = vadd.s32 16, %v2482_v49  ;;  %v7309_v56 = vpop.f32.mrb[10].mxu1 }
 0x255   : > { %vm3121_vm10 = vcmp.ge.s32.totalorder %v3089_v28, 16  ;;  %v3994_v53 = vadd.s32 4294967280, %v3089_v28  ;;  %v2578_v18 = vsel %vm2514_vm1, %v3931_v43, %v4420_v16  ;;  %v2391_v21 = vfloor.f32 %v2359_v63  ;;  %v7316_v20 = vpop.f32.mrb[11].mxu1 }
 0x256   : > { %v2900_v35 = vfloor.f32 %v2868_v61  ;;  %v2260_v40 = vadd.s32 160, %v6164_v44  ;;  %v2221_v2 = vmul.f32 %v5266_v13, %v2125_v8  ;;  %v7318_v50 = vsel %vm2514_vm1, %v2610_v1, %v2482_v49 }
 0x257   : > { %v3185_v32 = vsel %vm3121_vm10, %v3994_v53, %v3089_v28  ;;  %v2706_v37 = vadd.s32 1, %v2578_v18  ;;  %vm2674_vm7 = vcmp.ge.s32.totalorder %v7318_v50, 16  ;;  %5269 = vpow2.f32 %v2025_v31 }
 0x258   : > { %vm3249_vm4 = vcmp.lt.s32.totalorder %v3185_v32, 14  ;;  %v4487_v0 = vtrunc.f32 %v2900_v35  ;;  %v4028_v54 = vsel %vm3347_vm3, 1.0, %v5360_v58  ;;  %5271 = vrcp.f32 %v2158_v38 }
 0x259   : > { %vm3281_vm14 = vmand %vm3217_vm12, %vm3249_vm4  ;;  %v2738_v46 = vsel %vm2674_vm7, %v2706_v37, %v2578_v18  ;;  %v4429_v52 = vtrunc.f32 %v2391_v21  ;;  %5273 = vpow2.f32 %v2021_v3  ;;  %v7328_v25 = vadd.s32 %v6183_v17, %v2260_v40 }
 0x25a   : > { %vm3345_vm0 = vmand %vm3281_vm14, %vm3313_vm2  ;;  %v4488_v8 = vcvt.f32.s32 %v4487_v0  ;;  %v2834_v36 = vcvt.s32.f32 %v2738_v46  ;;  %v3965_v60 = vadd.s32 4294967280, %v7281_v10  ;;  %vm3220_vm15 = vcmp.lt.s32.totalorder %v7216_v7, 512 }
 0x25b   : > { %v4026_v57 = vsel %vm3345_vm0, 1.0, %v5360_v58  ;;  %v4430_v23 = vcvt.f32.s32 %v4429_v52  ;;  %v2325_v9 = vcvt.s32.f32 %v7328_v25  ;;  %v5268_v16 = vpop.eup %5267  ;;  %v7337_v33 = vmul.f32 %v4028_v54, %v7275_v34 }
 0x25c   : > { %v7332_v24 = vmul.f32 %v4026_v57, %v2221_v2  ;;  %v2964_v15 = vmul.u32 16, %v4488_v8  ;;  %v2866_v47 = vmul.f32 0.0625, %v2834_v36  ;;  %v2128_v30 = vmul.f32 %v7152_v42, %v7269_v45 }
 0x25d   : > { %v2455_v39 = vmul.u32 16, %v4430_v23  ;;  %v3936_v6 = vadd.s32 4294967295, %v4430_v23  ;;  %v2804_v34 = vsel %vm2676_vm13, %v3965_v60, %v7281_v10  ;;  %v2126_v62 = vmul.f32 %v7287_v22, %v7156_v55 }
 0x25e   : > { %v7343_v26 = vadd.f32 %v7257_v11, %v7332_v24  ;;  %v3679_v51 = vmul.f32 %v7332_v24, %v7332_v24  ;;  %v2996_v43 = vsub.s32 %v7292_v12, %v2964_v15  ;;  %v2898_v13 = vfloor.f32 %v2866_v47 }
 0x25f   : > { %v2487_v42 = vsub.s32 %v7284_v5, %v2455_v39  ;;  %v2357_v45 = vmul.f32 0.0625, %v2325_v9  ;;  %v1972_v28 = vmin.f32 %v7232_v27, 20.0  ;;  %v3963_v10 = vadd.s32 4294967280, %v7318_v50 }
 0x260   : > { %v7355_v49 = vadd.f32 %v7267_v41, %v3679_v51  ;;  %vm3028_vm11 = vcmp.lt.s32.totalorder %v2996_v43, 0  ;;  %v3060_v11 = vadd.s32 16, %v2996_v43  ;;  %v4483_v31 = vtrunc.f32 %v2898_v13 }
 0x261   : > { %vm2519_vm8 = vcmp.lt.s32.totalorder %v2487_v42, 0  ;;  %v2615_v63 = vadd.s32 16, %v2487_v42  ;;  %v2389_v12 = vfloor.f32 %v2357_v45  ;;  %v5270_v61 = vpop.eup %5269  ;;  %v2224_v18 = vmul.f32 %v5268_v16, %v2128_v30 }
 0x262   : > { %v3092_v38 = vsel %vm3028_vm11, %v3060_v11, %v2996_v43  ;;  %v4484_v3 = vcvt.f32.s32 %v4483_v31  ;;  %v2583_v55 = vsel %vm2519_vm8, %v3936_v6, %v4430_v23  ;;  %v5272_v22 = vpop.eup %5271  ;;  %vm3316_vm12 = vcmp.lt.s32.totalorder %v2804_v34, 14 }
 0x263   : > { %vm3124_vm9 = vcmp.ge.s32.totalorder %v3092_v38, 16  ;;  %v3997_v53 = vadd.s32 4294967280, %v3092_v38  ;;  %v7359_v1 = vsel %vm2519_vm8, %v2615_v63, %v2487_v42  ;;  %v2711_v41 = vadd.s32 1, %v2583_v55  ;;  %v5274_v35 = vpop.eup %5273 }
 0x264   : > { %v2962_v21 = vmul.u32 16, %v4484_v3  ;;  %vm3218_vm13 = vcmp.lt.s32.totalorder %v7236_v14, 512  ;;  %vm2679_vm2 = vcmp.ge.s32.totalorder %v7359_v1, 16  ;;  %v2067_v2 = vadd.f32 2.0, %v5270_v61 }
 0x265   : > { %v3188_v40 = vsel %vm3124_vm9, %v3997_v53, %v3092_v38  ;;  %v2743_v32 = vsel %vm2679_vm2, %v2711_v41, %v2583_v55  ;;  %v4425_v37 = vtrunc.f32 %v2389_v12  ;;  %v2802_v0 = vsel %vm2674_vm7, %v3963_v10, %v7318_v50 }
 0x266   : > { %vm3252_vm5 = vcmp.lt.s32.totalorder %v3188_v40, 14  ;;  %v2994_v54 = vsub.s32 %v2738_v46, %v2962_v21  ;;  %v2839_v52 = vcvt.s32.f32 %v2743_v32  ;;  %v2222_v8 = vmul.f32 %v5272_v22, %v2126_v62 }
 0x267   : > { %vm3284_vm6 = vmand %vm3220_vm15, %vm3252_vm5  ;;  %v2065_v36 = vadd.f32 2.0, %v5274_v35  ;;  %v4426_v57 = vcvt.f32.s32 %v4425_v37  ;;  %v2027_v60 = vmul.f32 1.442695, %v1972_v28  ;;  %v2263_v47 = vadd.s32 184, %v6164_v44 }
 0x268   : > { %vm3348_vm10 = vmand %vm3284_vm6, %vm3316_vm12  ;;  %vm3026_vm1 = vcmp.lt.s32.totalorder %v2994_v54, 0  ;;  %v3058_v23 = vadd.s32 16, %v2994_v54  ;;  %v2871_v15 = vmul.f32 0.0625, %v2839_v52  ;;  %vm3314_vm3 = vcmp.lt.s32.totalorder %v2802_v0, 14 }
 0x269   : > { %v4029_v9 = vsel %vm3348_vm10, 1.0, %v5360_v58  ;;  %v7373_v50 = vmul.f32 %v5270_v61, %v2067_v2  ;;  %v2453_v46 = vmul.u32 16, %v4426_v57  ;;  %v3934_v39 = vadd.s32 4294967295, %v4426_v57 }
 0x26a   : > { %v7375_v16 = vmul.f32 %v4029_v9, %v2224_v18  ;;  %v3090_v7 = vsel %vm3026_vm1, %v3058_v23, %v2994_v54  ;;  %v2903_v30 = vfloor.f32 %v2871_v15  ;;  %v7379_v43 = vadd.s32 %v6183_v17, %v2263_v47 }
 0x26b   : > { %vm3122_vm4 = vcmp.ge.s32.totalorder %v3090_v7, 16  ;;  %v3995_v6 = vadd.s32 4294967280, %v3090_v7  ;;  %v2485_v51 = vsub.s32 %v7328_v25, %v2453_v46  ;;  %v7383_v62 = vmul.f32 %v5274_v35, %v2065_v36 }
 0x26c   : > { %v4243_v13 = vpack.c.bf16 %v7375_v16, %v7337_v33  ;;  %v4493_v34 = vtrunc.f32 %v2903_v30  ;;  %5275 = vpow2.f32 %v2027_v60  ;;  %v2328_v11 = vcvt.s32.f32 %v7379_v43 }
 0x26d   : > { %v3186_v42 = vsel %vm3122_vm4, %v3995_v6, %v3090_v7  ;;  %vm2517_vm7 = vcmp.lt.s32.totalorder %v2485_v51, 0  ;;  %v2613_v45 = vadd.s32 16, %v2485_v51  ;;  %v1970_v12 = vmin.f32 %v7238_v29, 20.0  ;;  %v7393_v3 = vpop.f32.mrb[12].mxu1 }
 0x26e   : > { %4303 = vst [vmem:[%s6914_s30 + $0x48] sm:$0xff] %v4243_v13   ;;  %vm3250_vm14 = vcmp.lt.s32.totalorder %v3186_v42, 14  ;;  %v4494_v31 = vcvt.f32.s32 %v4493_v34  ;;  %v2581_v63 = vsel %vm2517_vm7, %v3934_v39, %v4426_v57  ;;  %v2163_v28 = vadd.f32 2.0, %v7373_v50  ;;  %v7399_v41 = vpop.f32.mrb[13].mxu1 }
 0x26f   : > { %vm3282_vm0 = vmand %vm3218_vm13, %vm3250_vm14  ;;  %v7391_v61 = vsel %vm2517_vm7, %v2613_v45, %v2485_v51  ;;  %v2709_v38 = vadd.s32 1, %v2581_v63  ;;  %v2360_v10 = vmul.f32 0.0625, %v2328_v11  ;;  %v2161_v22 = vadd.f32 2.0, %v7383_v62  ;;  %v7404_v21 = vpop.f32.mrb[14].mxu1 }
 0x270   : > { %vm3346_vm15 = vmand %vm3282_vm0, %vm3314_vm3  ;;  %v2967_v55 = vmul.u32 16, %v4494_v31  ;;  %vm2677_vm11 = vcmp.ge.s32.totalorder %v7391_v61, 16  ;;  %v2261_v53 = vadd.s32 168, %v6164_v44  ;;  %v3681_v40 = vmul.f32 %v7337_v33, %v7337_v33  ;;  %v7408_v54 = vpop.f32.mrb[15].mxu1 }
 0x271   : > { %v4027_v14 = vsel %vm3346_vm15, 1.0, %v5360_v58  ;;  %v2741_v35 = vsel %vm2677_vm11, %v2709_v38, %v2581_v63  ;;  %v2392_v18 = vfloor.f32 %v2360_v10  ;;  %v2023_v0 = vmul.f32 1.442695, %v1970_v12 }
 0x272   : > { %v3442_v2 = vmul.f32 %v4027_v14, %v2222_v8  ;;  %v2999_v37 = vsub.s32 %v2743_v32, %v2967_v55  ;;  %5277 = vrcp.f32 %v2163_v28  ;;  %v2837_v52 = vcvt.s32.f32 %v2741_v35 }
 0x273   : > { %v4431_v36 = vtrunc.f32 %v2392_v18  ;;  %v7411_v57 = vadd.s32 %v6183_v17, %v2261_v53  ;;  %5279 = vrcp.f32 %v2161_v22  ;;  %v3968_v34 = vadd.s32 4294967280, %v7359_v1 }
 0x274   : > { %v4238_v60 = vpack.c.bf16 %v3442_v2, %v7332_v24  ;;  %v3639_v23 = vadd.f32 %v7343_v26, %v3442_v2  ;;  %v3680_v15 = vmul.f32 %v3442_v2, %v3442_v2  ;;  %vm3031_vm8 = vcmp.lt.s32.totalorder %v2999_v37, 0 }
 0x275   : > { %v3063_v47 = vadd.s32 16, %v2999_v37  ;;  %v2869_v8 = vmul.f32 0.0625, %v2837_v52  ;;  %v4432_v32 = vcvt.f32.s32 %v4431_v36  ;;  %5281 = vpow2.f32 %v2023_v0 }
 0x276   : > { %v5276_v9 = vpop.eup %5275  ;;  %4302 = vst [vmem:[%s6914_s30 + $0x40] sm:$0xff] %v4238_v60   ;;  %v3640_v46 = vadd.f32 %v3639_v23, %v7337_v33  ;;  %v3711_v7 = vadd.f32 %v7355_v49, %v3680_v15  ;;  %v2326_v30 = vcvt.s32.f32 %v7411_v57  ;;  %v3682_v24 = vmul.f32 %v7375_v16, %v7375_v16 }
 0x277   : > { %v2901_v39 = vfloor.f32 %v2869_v8  ;;  %v2456_v6 = vmul.u32 16, %v4432_v32  ;;  %v3095_v51 = vsel %vm3031_vm8, %v3063_v47, %v2999_v37  ;;  %v2068_v45 = vadd.f32 2.0, %v5276_v9 }
 0x278   : > { %v3712_v26 = vadd.f32 %v3711_v7, %v3681_v40  ;;  %v7422_v13 = vadd.f32 %v3640_v46, %v7375_v16  ;;  %v3966_v49 = vadd.s32 4294967280, %v7391_v61  ;;  %v3937_v31 = vadd.s32 4294967295, %v4432_v32 }
 0x279   : > { %v4489_v42 = vtrunc.f32 %v2901_v39  ;;  %v2488_v33 = vsub.s32 %v7379_v43, %v2456_v6  ;;  %v2358_v63 = vmul.f32 0.0625, %v2326_v30  ;;  %v2131_v12 = vmul.f32 %v7228_v59, %v7373_v50 }
 0x27a   : > { %v7427_v11 = vadd.f32 %v3712_v26, %v3682_v24  ;;  %v4000_v28 = vadd.s32 4294967280, %v3095_v51  ;;  %vm3127_vm12 = vcmp.ge.s32.totalorder %v3095_v51, 16  ;;  %vm3223_vm13 = vcmp.lt.s32.totalorder %v7284_v5, 512 }
 0x27b   : > { %v4490_v38 = vcvt.f32.s32 %v4489_v42  ;;  %vm2520_vm9 = vcmp.lt.s32.totalorder %v2488_v33, 0  ;;  %v2616_v10 = vadd.s32 16, %v2488_v33  ;;  %v2390_v55 = vfloor.f32 %v2358_v63 }
 0x27c   : > { %v2584_v16 = vsel %vm2520_vm9, %v3937_v31, %v4432_v32  ;;  %v5278_v22 = vpop.eup %5277  ;;  %v2129_v53 = vmul.f32 %v7383_v62, %v7230_v4  ;;  %v2100_v18 = vmul.f32 %v5276_v9, %v2068_v45  ;;  %v7437_v59 = vsel %vm2679_vm2, %v3968_v34, %v7359_v1 }
 0x27d   : > { %v2965_v14 = vmul.u32 16, %v4490_v38  ;;  %v2712_v40 = vadd.s32 1, %v2584_v16  ;;  %v5280_v2 = vpop.eup %5279  ;;  %v2805_v50 = vsel %vm2677_vm11, %v3966_v49, %v7391_v61  ;;  %v7442_v37 = vsel %vm2520_vm9, %v2616_v10, %v2488_v33 }
 0x27e   : > { %v4427_v0 = vtrunc.f32 %v2390_v55  ;;  %v3191_v52 = vsel %vm3127_vm12, %v4000_v28, %v3095_v51  ;;  %vm2680_vm5 = vcmp.ge.s32.totalorder %v7442_v37, 16  ;;  %v2266_v4 = vadd.s32 208, %v6164_v44 }
 0x27f   : > { %v2997_v36 = vsub.s32 %v2741_v35, %v2965_v14  ;;  %v5282_v62 = vpop.eup %5281  ;;  %v7446_v60 = vmul.f32 %v5278_v22, %v2131_v12  ;;  %vm3221_vm2 = vcmp.lt.s32.totalorder %v7328_v25, 512  ;;  %v7451_v1 = vsel %vm2680_vm5, %v2712_v40, %v2584_v16 }
 0x280   : > { %v4428_v61 = vcvt.f32.s32 %v4427_v0  ;;  %vm3319_vm6 = vcmp.lt.s32.totalorder %v7437_v59, 14  ;;  %v2225_v23 = vmul.f32 %v5280_v2, %v2129_v53  ;;  %v2164_v15 = vadd.f32 2.0, %v2100_v18 }
 0x281   : > { %vm3029_vm10 = vcmp.lt.s32.totalorder %v2997_v36, 0  ;;  %v3061_v35 = vadd.s32 16, %v2997_v36  ;;  %vm3255_vm1 = vcmp.lt.s32.totalorder %v3191_v52, 14  ;;  %vm3317_vm3 = vcmp.lt.s32.totalorder %v2805_v50, 14 }
 0x282   : > { %v2840_v47 = vcvt.s32.f32 %v7451_v1  ;;  %v2454_v8 = vmul.u32 16, %v4428_v61  ;;  %v2066_v9 = vadd.f32 2.0, %v5282_v62  ;;  %v3935_v46 = vadd.s32 4294967295, %v4428_v61  ;;  %vm7477_vm14 = vmand %vm3223_vm13, %vm3255_vm1 }
 0x283   : > { %v3093_v32 = vsel %vm3029_vm10, %v3061_v35, %v2997_v36  ;;  %v7458_v7 = vadd.s32 %v6183_v17, %v2266_v4  ;;  %v7462_v24 = vmul.f32 %v7232_v27, %v2100_v18  ;;  %5283 = vrcp.f32 %v2164_v15  ;;  %vm3351_vm9 = vmand %vm7477_vm14, %vm3319_vm6 }
 0x284   : > { %vm3125_vm4 = vcmp.ge.s32.totalorder %v3093_v32, 16  ;;  %v3998_v30 = vadd.s32 4294967280, %v3093_v32  ;;  %v2872_v39 = vmul.f32 0.0625, %v2840_v47  ;;  %v2486_v6 = vsub.s32 %v7411_v57, %v2454_v8 }
 0x285   : > { %v2331_v26 = vcvt.s32.f32 %v7458_v7  ;;  %v1973_v51 = vmin.f32 %v7307_v48, 20.0  ;;  %v1975_v45 = vmin.f32 %v7304_v19, 20.0  ;;  %v7483_v12 = vmul.f32 %v5282_v62, %v2066_v9 }
 0x286   : > { %v3189_v34 = vsel %vm3125_vm4, %v3998_v30, %v3093_v32  ;;  %v2904_v42 = vfloor.f32 %v2872_v39  ;;  %vm2518_vm7 = vcmp.lt.s32.totalorder %v2486_v6, 0  ;;  %v2614_v49 = vadd.s32 16, %v2486_v6 }
 0x287   : > { %vm3253_vm0 = vcmp.lt.s32.totalorder %v3189_v34, 14  ;;  %v2582_v33 = vsel %vm2518_vm7, %v3935_v46, %v4428_v61  ;;  %v2363_v31 = vmul.f32 0.0625, %v2331_v26  ;;  %v2264_v38 = vadd.s32 192, %v6164_v44 }
 0x288   : > { %vm3285_vm15 = vmand %vm3221_vm2, %vm3253_vm0  ;;  %v4495_v63 = vtrunc.f32 %v2904_v42  ;;  %v2710_v28 = vadd.s32 1, %v2582_v33  ;;  %v3969_v5 = vadd.s32 4294967280, %v7442_v37  ;;  %v7488_v16 = vsel %vm2518_vm7, %v2614_v49, %v2486_v6 }
 0x289   : > { %vm3349_vm11 = vmand %vm3285_vm15, %vm3317_vm3  ;;  %v2395_v10 = vfloor.f32 %v2363_v31  ;;  %v2029_v55 = vmul.f32 1.442695, %v1973_v51  ;;  %vm2678_vm8 = vcmp.ge.s32.totalorder %v7488_v16, 16  ;;  %v2033_v25 = vmul.f32 1.442695, %v1975_v45 }
 0x28a   : > { %v4030_v22 = vsel %vm3349_vm11, 1.0, %v5360_v58  ;;  %v4496_v53 = vcvt.f32.s32 %v4495_v63  ;;  %v2742_v18 = vsel %vm2678_vm8, %v2710_v28, %v2582_v33  ;;  %v2267_v2 = vadd.s32 216, %v6164_v44 }
 0x28b   : > { %v7492_v14 = vmul.f32 %v4030_v22, %v2225_v23  ;;  %v4437_v40 = vtrunc.f32 %v2395_v10  ;;  %vm3224_vm12 = vcmp.lt.s32.totalorder %v7379_v43, 512  ;;  %v2162_v0 = vadd.f32 2.0, %v7483_v12 }
 0x28c   : > { %v2968_v50 = vmul.u32 16, %v4496_v53  ;;  %v2838_v52 = vcvt.s32.f32 %v2742_v18  ;;  %v7504_v36 = vadd.s32 %v6183_v17, %v2264_v38  ;;  %5285 = vpow2.f32 %v2029_v55 }
 0x28d   : > { %v7508_v4 = vadd.f32 %v7422_v13, %v7492_v14  ;;  %v3683_v62 = vmul.f32 %v7492_v14, %v7492_v14  ;;  %v1976_v59 = vmin.f32 %v7309_v56, 20.0  ;;  %v4438_v35 = vcvt.f32.s32 %v4437_v40  ;;  %v5284_v47 = vpop.eup %5283 }
 0x28e   : > { %v3000_v61 = vsub.s32 %v7451_v1, %v2968_v50  ;;  %v2870_v23 = vmul.f32 0.0625, %v2838_v52  ;;  %v2329_v15 = vcvt.s32.f32 %v7504_v36  ;;  %v4032_v8 = vsel %vm3351_vm9, 1.0, %v5360_v58 }
 0x28f   : > { %v7517_v32 = vadd.f32 %v7427_v11, %v3683_v62  ;;  %5287 = vpow2.f32 %v2033_v25  ;;  %v7520_v13 = vadd.s32 %v6183_v17, %v2267_v2  ;;  %v2808_v1 = vsel %vm2680_vm5, %v3969_v5, %v7442_v37 }
 0x290   : > { %vm3032_vm13 = vcmp.lt.s32.totalorder %v3000_v61, 0  ;;  %v3064_v9 = vadd.s32 16, %v3000_v61  ;;  %5289 = vrcp.f32 %v2162_v0  ;;  %v2902_v46 = vfloor.f32 %v2870_v23 }
 0x291   : > { %v2459_v30 = vmul.u32 16, %v4438_v35  ;;  %v2361_v39 = vmul.f32 0.0625, %v2329_v15  ;;  %v2035_v6 = vmul.f32 1.442695, %v1976_v59  ;;  %v3940_v34 = vadd.s32 4294967295, %v4438_v35 }
 0x292   : > { %v3096_v26 = vsel %vm3032_vm13, %v3064_v9, %v3000_v61  ;;  %v4491_v51 = vtrunc.f32 %v2902_v46  ;;  %v2332_v11 = vcvt.s32.f32 %v7520_v13  ;;  %v2228_v33 = vmul.f32 %v5284_v47, %v7462_v24 }
 0x293   : > { %vm3128_vm2 = vcmp.ge.s32.totalorder %v3096_v26, 16  ;;  %v4001_v42 = vadd.s32 4294967280, %v3096_v26  ;;  %v2491_v45 = vsub.s32 %v7458_v7, %v2459_v30  ;;  %v2393_v27 = vfloor.f32 %v2361_v39 }
 0x294   : > { %vm3320_vm6 = vcmp.lt.s32.totalorder %v2808_v1, 14  ;;  %v3967_v49 = vadd.s32 4294967280, %v7488_v16  ;;  %v4492_v31 = vcvt.f32.s32 %v4491_v51  ;;  %5291 = vpow2.f32 %v2035_v6 }
 0x295   : > { %v3192_v37 = vsel %vm3128_vm2, %v4001_v42, %v3096_v26  ;;  %vm2523_vm5 = vcmp.lt.s32.totalorder %v2491_v45, 0  ;;  %v2619_v63 = vadd.s32 16, %v2491_v45  ;;  %v4433_v28 = vtrunc.f32 %v2393_v27 }
 0x296   : > { %vm3256_vm10 = vcmp.lt.s32.totalorder %v3192_v37, 14  ;;  %v2966_v38 = vmul.u32 16, %v4492_v31  ;;  %v2587_v5 = vsel %vm2523_vm5, %v3940_v34, %v4438_v35  ;;  %v5286_v10 = vpop.eup %5285  ;;  %v2364_v53 = vmul.f32 0.0625, %v2332_v11 }
 0x297   : > { %vm3288_vm1 = vmand %vm3224_vm12, %vm3256_vm10  ;;  %v7531_v55 = vsel %vm2523_vm5, %v2619_v63, %v2491_v45  ;;  %v2715_v22 = vadd.s32 1, %v2587_v5  ;;  %v4434_v24 = vcvt.f32.s32 %v4433_v28  ;;  %vm3222_vm4 = vcmp.lt.s32.totalorder %v7411_v57, 512 }
 0x298   : > { %vm3352_vm3 = vmand %vm3288_vm1, %vm3320_vm6  ;;  %v2998_v25 = vsub.s32 %v2742_v18, %v2966_v38  ;;  %vm2683_vm7 = vcmp.ge.s32.totalorder %v7531_v55, 16  ;;  %v7537_v2 = vmul.f32 %v4032_v8, %v7446_v60  ;;  %v2130_v18 = vmul.f32 %v7483_v12, %v7238_v29 }
 0x299   : > { %v5288_v40 = vpop.eup %5287  ;;  %v4033_v50 = vsel %vm3352_vm3, 1.0, %v5360_v58  ;;  %v2747_v43 = vsel %vm2683_vm7, %v2715_v22, %v2587_v5  ;;  %v2457_v0 = vmul.u32 16, %v4434_v24  ;;  %v2806_v60 = vsel %vm2678_vm8, %v3967_v49, %v7488_v16 }
 0x29a   : > { %v5290_v52 = vpop.eup %5289  ;;  %v7542_v62 = vmul.f32 %v4033_v50, %v2228_v33  ;;  %vm3030_vm14 = vcmp.lt.s32.totalorder %v2998_v25, 0  ;;  %v3062_v59 = vadd.s32 16, %v2998_v25  ;;  %v2843_v61 = vcvt.s32.f32 %v2747_v43 }
 0x29b   : > { %v2069_v23 = vadd.f32 2.0, %v5286_v10  ;;  %v2396_v35 = vfloor.f32 %v2364_v53  ;;  %v2071_v8 = vadd.f32 2.0, %v5288_v40  ;;  %v2489_v9 = vsub.s32 %v7504_v36, %v2457_v0 }
 0x29c   : > { %v4253_v15 = vpack.c.bf16 %v7542_v62, %v7537_v2  ;;  %v3094_v47 = vsel %vm3030_vm14, %v3062_v59, %v2998_v25  ;;  %v2226_v46 = vmul.f32 %v5290_v52, %v2130_v18  ;;  %v2875_v29 = vmul.f32 0.0625, %v2843_v61 }
 0x29d   : > { %vm3126_vm0 = vcmp.ge.s32.totalorder %v3094_v47, 16  ;;  %v3999_v1 = vadd.s32 4294967280, %v3094_v47  ;;  %vm3318_vm15 = vcmp.lt.s32.totalorder %v2806_v60, 14  ;;  %vm2521_vm11 = vcmp.lt.s32.totalorder %v2489_v9, 0 }
 0x29e   : > { %4305 = vst [vmem:[%s6914_s30 + $0x58] sm:$0xff] %v4253_v15   ;;  %v3938_v12 = vadd.s32 4294967295, %v4434_v24  ;;  %v2617_v30 = vadd.s32 16, %v2489_v9  ;;  %v2907_v39 = vfloor.f32 %v2875_v29  ;;  %v7553_v6 = vmul.f32 %v5286_v10, %v2069_v23  ;;  %v5292_v51 = vpop.eup %5291 }
 0x29f   : > { %v3190_v16 = vsel %vm3126_vm0, %v3999_v1, %v3094_v47  ;;  %v4439_v26 = vtrunc.f32 %v2396_v35  ;;  %v2103_v34 = vmul.f32 %v5288_v40, %v2071_v8  ;;  %v3685_v33 = vmul.f32 %v7537_v2, %v7537_v2 }
 0x2a0   : > { %vm3254_vm8 = vcmp.lt.s32.totalorder %v3190_v16, 14  ;;  %v2585_v11 = vsel %vm2521_vm11, %v3938_v12, %v4434_v24  ;;  %v7555_v42 = vsel %vm2521_vm11, %v2617_v30, %v2489_v9  ;;  %v4501_v45 = vtrunc.f32 %v2907_v39 }
 0x2a1   : > { %vm3286_vm9 = vmand %vm3222_vm4, %vm3254_vm8  ;;  %vm2681_vm12 = vcmp.ge.s32.totalorder %v7555_v42, 16  ;;  %v2713_v27 = vadd.s32 1, %v2585_v11  ;;  %v4440_v49 = vcvt.f32.s32 %v4439_v26  ;;  %v2165_v63 = vadd.f32 2.0, %v7553_v6 }
 0x2a2   : > { %vm3350_vm13 = vmand %vm3286_vm9, %vm3318_vm15  ;;  %v4502_v37 = vcvt.f32.s32 %v4501_v45  ;;  %v2167_v38 = vadd.f32 2.0, %v2103_v34  ;;  %v2072_v10 = vadd.f32 2.0, %v5292_v51  ;;  %v3686_v22 = vmul.f32 %v7542_v62, %v7542_v62 }
 0x2a3   : > { %v4031_v31 = vsel %vm3350_vm13, 1.0, %v5360_v58  ;;  %v2745_v28 = vsel %vm2681_vm12, %v2713_v27, %v2585_v11  ;;  %v2460_v53 = vmul.u32 16, %v4440_v49  ;;  %v3941_v25 = vadd.s32 4294967295, %v4440_v49 }
 0x2a4   : > { %v3446_v57 = vmul.f32 %v4031_v31, %v2226_v46  ;;  %v2841_v5 = vcvt.s32.f32 %v2745_v28  ;;  %v2971_v24 = vmul.u32 16, %v4502_v37  ;;  %5293 = vrcp.f32 %v2165_v63 }
 0x2a5   : > { %v2492_v59 = vsub.s32 %v7520_v13, %v2460_v53  ;;  %v1974_v60 = vmin.f32 %v7316_v20, 20.0  ;;  %v7576_v15 = vmul.f32 %v5292_v51, %v2072_v10  ;;  %5295 = vrcp.f32 %v2167_v38 }
 0x2a6   : > { %v4248_v40 = vpack.c.bf16 %v3446_v57, %v7492_v14  ;;  %v3643_v50 = vadd.f32 %v7508_v4, %v3446_v57  ;;  %v3684_v0 = vmul.f32 %v3446_v57, %v3446_v57  ;;  %v2873_v52 = vmul.f32 0.0625, %v2841_v5 }
 0x2a7   : > { %v3003_v18 = vsub.s32 %v2747_v43, %v2971_v24  ;;  %vm2524_vm2 = vcmp.lt.s32.totalorder %v2492_v59, 0  ;;  %v2620_v14 = vadd.s32 16, %v2492_v59  ;;  %v2265_v4 = vadd.s32 200, %v6164_v44 }
 0x2a8   : > { %4304 = vst [vmem:[%s6914_s30 + $0x50] sm:$0xff] %v4248_v40   ;;  %v3644_v61 = vadd.f32 %v3643_v50, %v7537_v2  ;;  %v3715_v23 = vadd.f32 %v7517_v32, %v3684_v0  ;;  %v2905_v35 = vfloor.f32 %v2873_v52  ;;  %v2588_v46 = vsel %vm2524_vm2, %v3941_v25, %v4440_v49 }
 0x2a9   : > { %v3067_v47 = vadd.s32 16, %v3003_v18  ;;  %vm3035_vm6 = vcmp.lt.s32.totalorder %v3003_v18, 0  ;;  %v7582_v1 = vsel %vm2524_vm2, %v2620_v14, %v2492_v59  ;;  %v2716_v2 = vadd.s32 1, %v2588_v46 }
 0x2aa   : > { %v3716_v8 = vadd.f32 %v3715_v23, %v3685_v33  ;;  %v4497_v43 = vtrunc.f32 %v2905_v35  ;;  %v7580_v9 = vadd.f32 %v3644_v61, %v7542_v62  ;;  %v2031_v29 = vmul.f32 1.442695, %v1974_v60 }
 0x2ab   : > { %v3972_v32 = vadd.s32 4294967280, %v7531_v55  ;;  %v3970_v16 = vadd.s32 4294967280, %v7555_v42  ;;  %vm2684_vm5 = vcmp.ge.s32.totalorder %v7582_v1, 16  ;;  %v7590_v39 = vadd.s32 %v6183_v17, %v2265_v4 }
 0x2ac   : > { %v4498_v12 = vcvt.f32.s32 %v4497_v43  ;;  %v7585_v30 = vadd.f32 %v3716_v8, %v3686_v22  ;;  %v3099_v62 = vsel %vm3035_vm6, %v3067_v47, %v3003_v18  ;;  %vm3225_vm10 = vcmp.lt.s32.totalorder %v7504_v36, 512 }
 0x2ad   : > { %v2748_v51 = vsel %vm2684_vm5, %v2716_v2, %v2588_v46  ;;  %v2270_v11 = vadd.s32 240, %v6164_v44  ;;  %v2135_v45 = vmul.f32 %v7304_v19, %v2103_v34  ;;  %v2168_v27 = vadd.f32 2.0, %v7576_v15 }
 0x2ae   : > { %v2969_v26 = vmul.u32 16, %v4498_v12  ;;  %v2844_v33 = vcvt.s32.f32 %v2748_v51  ;;  %5297 = vpow2.f32 %v2031_v29  ;;  %v7601_v49 = vsel %vm2683_vm7, %v3972_v32, %v7531_v55  ;;  %v5294_v57 = vpop.eup %5293 }
 0x2af   : > { %vm3227_vm1 = vcmp.lt.s32.totalorder %v7458_v7, 512  ;;  %v2133_v31 = vmul.f32 %v7553_v6, %v7307_v48  ;;  %v2330_v63 = vcvt.s32.f32 %v7590_v39  ;;  %v4004_v38 = vadd.s32 4294967280, %v3099_v62  ;;  %v5296_v40 = vpop.eup %5295 }
 0x2b0   : > { %v3001_v37 = vsub.s32 %v2745_v28, %v2969_v26  ;;  %v2809_v19 = vsel %vm2681_vm12, %v3970_v16, %v7555_v42  ;;  %v2876_v34 = vmul.f32 0.0625, %v2844_v33  ;;  %v7611_v5 = vadd.s32 %v6183_v17, %v2270_v11 }
 0x2b1   : > { %vm3131_vm3 = vcmp.ge.s32.totalorder %v3099_v62, 16  ;;  %v2362_v10 = vmul.f32 0.0625, %v2330_v63  ;;  %vm3323_vm7 = vcmp.lt.s32.totalorder %v7601_v49, 14  ;;  %5299 = vrcp.f32 %v2168_v27 }
 0x2b2   : > { %vm3033_vm4 = vcmp.lt.s32.totalorder %v3001_v37, 0  ;;  %v3065_v55 = vadd.s32 16, %v3001_v37  ;;  %v2908_v48 = vfloor.f32 %v2876_v34  ;;  %v2335_v6 = vcvt.s32.f32 %v7611_v5 }
 0x2b3   : > { %v2229_v28 = vmul.f32 %v5294_v57, %v2133_v31  ;;  %vm3321_vm14 = vcmp.lt.s32.totalorder %v2809_v19, 14  ;;  %v2394_v24 = vfloor.f32 %v2362_v10  ;;  %v3195_v53 = vsel %vm3131_vm3, %v4004_v38, %v3099_v62 }
 0x2b4   : > { %v3097_v22 = vsel %vm3033_vm4, %v3065_v55, %v3001_v37  ;;  %v4503_v25 = vtrunc.f32 %v2908_v48  ;;  %v3973_v50 = vadd.s32 4294967280, %v7582_v1  ;;  %v2367_v52 = vmul.f32 0.0625, %v2335_v6 }
 0x2b5   : > { %vm3129_vm0 = vcmp.ge.s32.totalorder %v3097_v22, 16  ;;  %v4002_v42 = vadd.s32 4294967280, %v3097_v22  ;;  %v4435_v0 = vtrunc.f32 %v2394_v24  ;;  %v1977_v18 = vmin.f32 %v7399_v41, 20.0 }
 0x2b6   : > { %v4504_v60 = vcvt.f32.s32 %v4503_v25  ;;  %v1979_v61 = vmin.f32 %v7393_v3, 20.0  ;;  %v2268_v23 = vadd.s32 224, %v6164_v44  ;;  %vm3259_vm15 = vcmp.lt.s32.totalorder %v3195_v53, 14 }
 0x2b7   : > { %v3193_v59 = vsel %vm3129_vm0, %v4002_v42, %v3097_v22  ;;  %v4436_v35 = vcvt.f32.s32 %v4435_v0  ;;  %v2399_v47 = vfloor.f32 %v2367_v52  ;;  %v2231_v4 = vmul.f32 %v5296_v40, %v2135_v45  ;;  %vm3291_vm13 = vmand %vm3227_vm1, %vm3259_vm15 }
 0x2b8   : > { %vm3257_vm11 = vcmp.lt.s32.totalorder %v3193_v59, 14  ;;  %v5298_v14 = vpop.eup %5297  ;;  %v2972_v8 = vmul.u32 16, %v4504_v60  ;;  %vm3228_vm9 = vcmp.lt.s32.totalorder %v7520_v13, 512  ;;  %v7623_v43 = vadd.s32 %v6183_v17, %v2268_v23  ;;  %vm3355_vm6 = vmand %vm3291_vm13, %vm3323_vm7 }
 0x2b9   : > { %vm3289_vm8 = vmand %vm3225_vm10, %vm3257_vm11  ;;  %v2136_v46 = vmul.f32 %v7309_v56, %v7576_v15  ;;  %v2812_v2 = vsel %vm2684_vm5, %v3973_v50, %v7582_v1  ;;  %v2458_v29 = vmul.u32 16, %v4436_v35  ;;  %v2037_v32 = vmul.f32 1.442695, %v1977_v18 }
 0x2ba   : > { %vm3353_vm12 = vmand %vm3289_vm8, %vm3321_vm14  ;;  %v3004_v12 = vsub.s32 %v2748_v51, %v2972_v8  ;;  %v3939_v16 = vadd.s32 4294967295, %v4436_v35  ;;  %v4445_v62 = vtrunc.f32 %v2399_v47  ;;  %v2070_v11 = vadd.f32 2.0, %v5298_v14 }
 0x2bb   : > { %v4034_v36 = vsel %vm3353_vm12, 1.0, %v5360_v58  ;;  %v2490_v56 = vsub.s32 %v7590_v39, %v2458_v29  ;;  %v2041_v15 = vmul.f32 1.442695, %v1979_v61  ;;  %v5300_v45 = vpop.eup %5299  ;;  %v2333_v33 = vcvt.s32.f32 %v7623_v43 }
 0x2bc   : > { %v7635_v26 = vmul.f32 %v4034_v36, %v2229_v28  ;;  %vm3036_vm2 = vcmp.lt.s32.totalorder %v3004_v12, 0  ;;  %v3068_v1 = vadd.s32 16, %v3004_v12  ;;  %v4446_v27 = vcvt.f32.s32 %v4445_v62 }
 0x2bd   : > { %vm2522_vm5 = vcmp.lt.s32.totalorder %v2490_v56, 0  ;;  %v2618_v31 = vadd.s32 16, %v2490_v56  ;;  %5301 = vpow2.f32 %v2037_v32  ;;  %v4036_v34 = vsel %vm3355_vm6, 1.0, %v5360_v58 }
 0x2be   : > { %v7643_v7 = vadd.f32 %v7580_v9, %v7635_v26  ;;  %v3687_v51 = vmul.f32 %v7635_v26, %v7635_v26  ;;  %v3100_v37 = vsel %vm3036_vm2, %v3068_v1, %v3004_v12  ;;  %v2586_v63 = vsel %vm2522_vm5, %v3939_v16, %v4436_v35 }
 0x2bf   : > { %v2463_v57 = vmul.u32 16, %v4446_v27  ;;  %vm3132_vm10 = vcmp.ge.s32.totalorder %v3100_v37, 16  ;;  %v4005_v19 = vadd.s32 4294967280, %v3100_v37  ;;  %v7650_v49 = vsel %vm2522_vm5, %v2618_v31, %v2490_v56 }
 0x2c0   : > { %v7648_v38 = vadd.f32 %v7585_v30, %v3687_v51  ;;  %vm2682_vm1 = vcmp.ge.s32.totalorder %v7650_v49, 16  ;;  %v2714_v9 = vadd.s32 1, %v2586_v63  ;;  %v2365_v55 = vmul.f32 0.0625, %v2333_v33 }
 0x2c1   : > { %v3196_v10 = vsel %vm3132_vm10, %v4005_v19, %v3100_v37  ;;  %vm3324_vm3 = vcmp.lt.s32.totalorder %v2812_v2, 14  ;;  %v2495_v48 = vsub.s32 %v7611_v5, %v2463_v57  ;;  %v3944_v6 = vadd.s32 4294967295, %v4446_v27 }
 0x2c2   : > { %v2232_v28 = vmul.f32 %v5300_v45, %v2136_v46  ;;  %vm3260_vm4 = vcmp.lt.s32.totalorder %v3196_v10, 14  ;;  %v7655_v22 = vmul.f32 %v5298_v14, %v2070_v11  ;;  %v2746_v30 = vsel %vm2682_vm1, %v2714_v9, %v2586_v63 }
 0x2c3   : > { %v7659_v24 = vmul.f32 %v4036_v34, %v2231_v4  ;;  %vm3292_vm7 = vmand %vm3228_vm9, %vm3260_vm4  ;;  %v2842_v53 = vcvt.s32.f32 %v2746_v30  ;;  %vm2527_vm14 = vcmp.lt.s32.totalorder %v2495_v48, 0  ;;  %5303 = vpow2.f32 %v2041_v15 }
 0x2c4   : > { %vm3356_vm0 = vmand %vm3292_vm7, %vm3324_vm3  ;;  %v2591_v42 = vsel %vm2527_vm14, %v3944_v6, %v4446_v27  ;;  %v2623_v25 = vadd.s32 16, %v2495_v48  ;;  %v2397_v40 = vfloor.f32 %v2365_v55  ;;  %v1980_v18 = vmin.f32 %v7404_v21, 20.0 }
 0x2c5   : > { %v4037_v50 = vsel %vm3356_vm0, 1.0, %v5360_v58  ;;  %v2874_v0 = vmul.f32 0.0625, %v2842_v53  ;;  %v2719_v52 = vadd.s32 1, %v2591_v42  ;;  %v2166_v60 = vadd.f32 2.0, %v7655_v22 }
 0x2c6   : > { %v7665_v59 = vmul.f32 %v4037_v50, %v2232_v28  ;;  %v7668_v13 = vsel %vm2527_vm14, %v2623_v25, %v2495_v48  ;;  %v2271_v61 = vadd.s32 248, %v6164_v44  ;;  %v4441_v4 = vtrunc.f32 %v2397_v40 }
 0x2c7   : > { %v2906_v23 = vfloor.f32 %v2874_v0  ;;  %vm2687_vm15 = vcmp.ge.s32.totalorder %v7668_v13, 16  ;;  %v5302_v35 = vpop.eup %5301  ;;  %5305 = vrcp.f32 %v2166_v60  ;;  %v2043_v29 = vmul.f32 1.442695, %v1980_v18 }
 0x2c8   : > { %v4263_v47 = vpack.c.bf16 %v7665_v59, %v7659_v24  ;;  %v7676_v14 = vsel %vm2687_vm15, %v2719_v52, %v2591_v42  ;;  %v4442_v2 = vcvt.f32.s32 %v4441_v4  ;;  %v7681_v32 = vadd.s32 %v6183_v17, %v2271_v61 }
 0x2c9   : > { %v4499_v8 = vtrunc.f32 %v2906_v23  ;;  %v2847_v46 = vcvt.s32.f32 %v7676_v14  ;;  %v2073_v16 = vadd.f32 2.0, %v5302_v35  ;;  %v2269_v62 = vadd.s32 232, %v6164_v44 }
 0x2ca   : > { %4307 = vst [vmem:[%s6914_s30 + $0x68] sm:$0xff] %v4263_v47   ;;  %v2461_v11 = vmul.u32 16, %v4442_v2  ;;  %v2336_v56 = vcvt.s32.f32 %v7681_v32  ;;  %v3942_v1 = vadd.s32 4294967295, %v4442_v2  ;;  %vm3226_vm11 = vcmp.lt.s32.totalorder %v7590_v39, 512 }
 0x2cb   : > { %v4500_v36 = vcvt.f32.s32 %v4499_v8  ;;  %v2879_v12 = vmul.f32 0.0625, %v2847_v46  ;;  %v7686_v27 = vadd.s32 %v6183_v17, %v2269_v62  ;;  %v3971_v37 = vadd.s32 4294967280, %v7650_v49 }
 0x2cc   : > { %v2493_v51 = vsub.s32 %v7623_v43, %v2461_v11  ;;  %v2368_v31 = vmul.f32 0.0625, %v2336_v56  ;;  %v7691_v57 = vmul.f32 %v5302_v35, %v2073_v16  ;;  %5307 = vpow2.f32 %v2043_v29 }
 0x2cd   : > { %v2970_v15 = vmul.u32 16, %v4500_v36  ;;  %v2911_v45 = vfloor.f32 %v2879_v12  ;;  %v5304_v33 = vpop.eup %5303  ;;  %v2334_v34 = vcvt.s32.f32 %v7686_v27  ;;  %v1978_v28 = vmin.f32 %v7408_v54, 20.0 }
 0x2ce   : > { %vm2525_vm8 = vcmp.lt.s32.totalorder %v2493_v51, 0  ;;  %v2621_v44 = vadd.s32 16, %v2493_v51  ;;  %v2400_v19 = vfloor.f32 %v2368_v31  ;;  %v2075_v42 = vadd.f32 2.0, %v5304_v33 }
 0x2cf   : > { %v3002_v63 = vsub.s32 %v2746_v30, %v2970_v15  ;;  %v4509_v9 = vtrunc.f32 %v2911_v45  ;;  %v2589_v55 = vsel %vm2525_vm8, %v3942_v1, %v4442_v2  ;;  %v2810_v30 = vsel %vm2682_vm1, %v3971_v37, %v7650_v49 }
 0x2d0   : > { %v7694_v10 = vsel %vm2525_vm8, %v2621_v44, %v2493_v51  ;;  %v2717_v48 = vadd.s32 1, %v2589_v55  ;;  %v4447_v6 = vtrunc.f32 %v2400_v19  ;;  %v2366_v0 = vmul.f32 0.0625, %v2334_v34 }
 0x2d1   : > { %vm3034_vm9 = vcmp.lt.s32.totalorder %v3002_v63, 0  ;;  %v3066_v17 = vadd.s32 16, %v3002_v63  ;;  %vm2685_vm12 = vcmp.ge.s32.totalorder %v7694_v10, 16  ;;  %v5306_v25 = vpop.eup %5305  ;;  %v2134_v52 = vmul.f32 %v7655_v22, %v7316_v20 }
 0x2d2   : > { %v2749_v50 = vsel %vm2685_vm12, %v2717_v48, %v2589_v55  ;;  %v4510_v18 = vcvt.f32.s32 %v4509_v9  ;;  %v2169_v60 = vadd.f32 2.0, %v7691_v57  ;;  %vm3322_vm2 = vcmp.lt.s32.totalorder %v2810_v30, 14 }
 0x2d3   : > { %v3098_v53 = vsel %vm3034_vm9, %v3066_v17, %v3002_v63  ;;  %v2845_v61 = vcvt.s32.f32 %v2749_v50  ;;  %v4448_v49 = vcvt.f32.s32 %v4447_v6  ;;  %v2039_v35 = vmul.f32 1.442695, %v1978_v28 }
 0x2d4   : > { %vm3130_vm13 = vcmp.ge.s32.totalorder %v3098_v53, 16  ;;  %v4003_v40 = vadd.s32 4294967280, %v3098_v53  ;;  %v2230_v47 = vmul.f32 %v5306_v25, %v2134_v52  ;;  %v7708_v8 = vmul.f32 %v5304_v33, %v2075_v42 }
 0x2d5   : > { %v2877_v4 = vmul.f32 0.0625, %v2845_v61  ;;  %v2464_v46 = vmul.u32 16, %v4448_v49  ;;  %v2398_v2 = vfloor.f32 %v2366_v0  ;;  %v2975_v20 = vmul.u32 16, %v4510_v18 }
 0x2d6   : > { %v3194_v23 = vsel %vm3130_vm13, %v4003_v40, %v3098_v53  ;;  %v5308_v29 = vpop.eup %5307  ;;  %5309 = vrcp.f32 %v2169_v60  ;;  %v3945_v11 = vadd.s32 4294967295, %v4448_v49  ;;  %v3689_v39 = vmul.f32 %v7659_v24, %v7659_v24 }
 0x2d7   : > { %vm3258_vm6 = vcmp.lt.s32.totalorder %v3194_v23, 14  ;;  %v2909_v22 = vfloor.f32 %v2877_v4  ;;  %5311 = vpow2.f32 %v2039_v35  ;;  %v2496_v62 = vsub.s32 %v7681_v32, %v2464_v46 }
 0x2d8   : > { %vm3290_vm5 = vmand %vm3226_vm11, %vm3258_vm6  ;;  %v3690_v56 = vmul.f32 %v7665_v59, %v7665_v59  ;;  %v2171_v15 = vadd.f32 2.0, %v7708_v8  ;;  %v4443_v45 = vtrunc.f32 %v2398_v2  ;;  %v3007_v31 = vsub.s32 %v7676_v14, %v2975_v20 }
 0x2d9   : > { %vm3354_vm10 = vmand %vm3290_vm5, %vm3322_vm2  ;;  %v4505_v16 = vtrunc.f32 %v2909_v22  ;;  %v2076_v63 = vadd.f32 2.0, %v5308_v29  ;;  %vm2528_vm1 = vcmp.lt.s32.totalorder %v2496_v62, 0  ;;  %v2624_v44 = vadd.s32 16, %v2496_v62 }
 0x2da   : > { %v4035_v36 = vsel %vm3354_vm10, 1.0, %v5360_v58  ;;  %v3974_v17 = vadd.s32 4294967280, %v7694_v10  ;;  %v2592_v9 = vsel %vm2528_vm1, %v3945_v11, %v4448_v49  ;;  %vm3229_vm3 = vcmp.lt.s32.totalorder %v7623_v43, 512 }
 0x2db   : > { %v3450_v12 = vmul.f32 %v4035_v36, %v2230_v47  ;;  %v4506_v37 = vcvt.f32.s32 %v4505_v16  ;;  %v4444_v48 = vcvt.f32.s32 %v4443_v45  ;;  %v3071_v6 = vadd.s32 16, %v3007_v31 }
 0x2dc   : > { %vm3039_vm7 = vcmp.lt.s32.totalorder %v3007_v31, 0  ;;  %v7729_v30 = vmul.f32 %v5308_v29, %v2076_v63  ;;  %5313 = vrcp.f32 %v2171_v15  ;;  %v2137_v42 = vmul.f32 %v7691_v57, %v7399_v41 }
 0x2dd   : > { %v4258_v1 = vpack.c.bf16 %v3450_v12, %v7635_v26  ;;  %v3647_v33 = vadd.f32 %v7643_v7, %v3450_v12  ;;  %v3688_v51 = vmul.f32 %v3450_v12, %v3450_v12  ;;  %v2973_v55 = vmul.u32 16, %v4506_v37 }
 0x2de   : > { %v7725_v26 = vsel %vm2528_vm1, %v2624_v44, %v2496_v62  ;;  %v2720_v7 = vadd.s32 1, %v2592_v9  ;;  %v3976_v18 = vadd.s32 4294967280, %v7668_v13  ;;  %v3103_v60 = vsel %vm3039_vm7, %v3071_v6, %v3007_v31 }
 0x2df   : > { %4306 = vst [vmem:[%s6914_s30 + $0x60] sm:$0xff] %v4258_v1   ;;  %v3648_v19 = vadd.f32 %v3647_v33, %v7659_v24  ;;  %v3719_v34 = vadd.f32 %v7648_v38, %v3688_v51  ;;  %vm2688_vm4 = vcmp.ge.s32.totalorder %v7725_v26, 16  ;;  %v3005_v24 = vsub.s32 %v2749_v50, %v2973_v55 }
 0x2e0   : > { %v2752_v38 = vsel %vm2688_vm4, %v2720_v7, %v2592_v9  ;;  %v5310_v53 = vpop.eup %5309  ;;  %v2462_v50 = vmul.u32 16, %v4444_v48  ;;  %v3943_v23 = vadd.s32 4294967295, %v4444_v48  ;;  %v2172_v47 = vadd.f32 2.0, %v7729_v30 }
 0x2e1   : > { %v3720_v14 = vadd.f32 %v3719_v34, %v3689_v39  ;;  %v3649_v28 = vadd.f32 %v3648_v19, %v7665_v59  ;;  %v2848_v40 = vcvt.s32.f32 %v2752_v38  ;;  %v5312_v0 = vpop.eup %5311  ;;  %v2813_v59 = vsel %vm2685_vm12, %v3974_v17, %v7694_v10 }
 0x2e2   : > { %vm3037_vm14 = vcmp.lt.s32.totalorder %v3005_v24, 0  ;;  %v3069_v52 = vadd.s32 16, %v3005_v24  ;;  %v2233_v49 = vmul.f32 %v5310_v53, %v2137_v42  ;;  %v2494_v41 = vsub.s32 %v7686_v27, %v2462_v50 }
 0x2e3   : > { %v3721_v25 = vadd.f32 %v3720_v14, %v3690_v56  ;;  %v2880_v61 = vmul.f32 0.0625, %v2848_v40  ;;  %vm3325_vm11 = vcmp.lt.s32.totalorder %v2813_v59, 14  ;;  %v4008_v46 = vadd.s32 4294967280, %v3103_v60 }
 0x2e4   : > { %v3101_v35 = vsel %vm3037_vm14, %v3069_v52, %v3005_v24  ;;  %v2074_v10 = vadd.f32 2.0, %v5312_v0  ;;  %vm2526_vm8 = vcmp.lt.s32.totalorder %v2494_v41, 0  ;;  %v2622_v2 = vadd.s32 16, %v2494_v41 }
 0x2e5   : > { %vm3133_vm0 = vcmp.ge.s32.totalorder %v3101_v35, 16  ;;  %v4006_v57 = vadd.s32 4294967280, %v3101_v35  ;;  %v2912_v4 = vfloor.f32 %v2880_v61  ;;  %vm3135_vm9 = vcmp.ge.s32.totalorder %v3103_v60, 16 }
 0x2e6   : > { %v2590_v22 = vsel %vm2526_vm8, %v3943_v23, %v4444_v48  ;;  %5315 = vrcp.f32 %v2172_v47  ;;  %v2654_v36 = vsel %vm2526_vm8, %v2622_v2, %v2494_v41  ;;  %v3199_v62 = vsel %vm3135_vm9, %v4008_v46, %v3103_v60  ;;  %v5314_v56 = vpop.eup %5313 }
 0x2e7   : > { %v3197_v29 = vsel %vm3133_vm0, %v4006_v57, %v3101_v35  ;;  %v4511_v20 = vtrunc.f32 %v2912_v4  ;;  %v2718_v12 = vadd.s32 1, %v2590_v22  ;;  %vm2686_vm2 = vcmp.ge.s32.totalorder %v2654_v36, 16 }
 0x2e8   : > { %vm3261_vm12 = vcmp.lt.s32.totalorder %v3197_v29, 14  ;;  %v2106_v11 = vmul.f32 %v5312_v0, %v2074_v10  ;;  %v2815_v33 = vsel %vm2687_vm15, %v3976_v18, %v7668_v13  ;;  %vm3231_vm5 = vcmp.lt.s32.totalorder %v7611_v5, 512 }
 0x2e9   : > { %vm3293_vm13 = vmand %vm3229_vm3, %vm3261_vm12  ;;  %v4512_v16 = vcvt.f32.s32 %v4511_v20  ;;  %v2750_v39 = vsel %vm2686_vm2, %v2718_v12, %v2590_v22  ;;  %vm3263_vm10 = vcmp.lt.s32.totalorder %v3199_v62, 14  ;;  %v3977_v51 = vadd.s32 4294967280, %v7725_v26 }
 0x2ea   : > { %vm3357_vm6 = vmand %vm3293_vm13, %vm3325_vm11  ;;  %v2846_v1 = vcvt.s32.f32 %v2750_v39  ;;  %v2170_v19 = vadd.f32 2.0, %v2106_v11  ;;  %vm3327_vm15 = vcmp.lt.s32.totalorder %v2815_v33, 14  ;;  %v2139_v14 = vmul.f32 %v7393_v3, %v7708_v8 }
 0x2eb   : > { %v4038_v15 = vsel %vm3357_vm6, 1.0, %v5360_v58  ;;  %v2976_v45 = vmul.u32 16, %v4512_v16  ;;  %vm3295_vm3 = vmand %vm3231_vm5, %vm3263_vm10  ;;  %v2816_v5 = vsel %vm2688_vm4, %v3977_v51, %v7725_v26  ;;  %v2140_v6 = vmul.f32 %v7404_v21, %v7729_v30 }
 0x2ec   : > { %v7750_v43 = vmul.f32 %v4038_v15, %v2233_v49  ;;  %v2878_v37 = vmul.f32 0.0625, %v2846_v1  ;;  %5317 = vrcp.f32 %v2170_v19  ;;  %vm3359_vm14 = vmand %vm3295_vm3, %vm3327_vm15  ;;  %vm3232_vm0 = vcmp.lt.s32.totalorder %v7681_v32, 512 }
 0x2ed   : > { %v3008_v31 = vsub.s32 %v2752_v38, %v2976_v45  ;;  %vm3328_vm11 = vcmp.lt.s32.totalorder %v2816_v5, 14  ;;  %v2235_v38 = vmul.f32 %v5314_v56, %v2139_v14  ;;  %v4040_v42 = vsel %vm3359_vm14, 1.0, %v5360_v58  ;;  %v3662_v45 = vld [vmem:[%s7469_s8 + $0x1] sm:$0x1] }
 0x2ee   : > { %v3650_v63 = vadd.f32 %v3649_v28, %v7750_v43  ;;  %v3691_v44 = vmul.f32 %v7750_v43, %v7750_v43  ;;  %v2910_v17 = vfloor.f32 %v2878_v37  ;;  %v2138_v18 = vmul.f32 %v2106_v11, %v7408_v54 }
 0x2ef   : > { %vm3040_vm1 = vcmp.lt.s32.totalorder %v3008_v31, 0  ;;  %v3072_v34 = vadd.s32 16, %v3008_v31  ;;  %v3455_v40 = vmul.f32 %v4040_v42, %v2235_v38  ;;  %vm3230_vm6 = vcmp.lt.s32.totalorder %v7686_v27, 512 }
 0x2f0   : > { %v3722_v13 = vadd.f32 %v3721_v25, %v3691_v44  ;;  %v4507_v55 = vtrunc.f32 %v2910_v17  ;;  %v5316_v7 = vpop.eup %5315  ;;  %v3975_v25 = vadd.s32 4294967280, %v2654_v36 }
 0x2f1   : > { %v3104_v9 = vsel %vm3040_vm1, %v3072_v34, %v3008_v31  ;;  %v2236_v26 = vmul.f32 %v5316_v7, %v2140_v6  ;;  %v3693_v57 = vmul.f32 %v3455_v40, %v3455_v40 }
 0x2f2   : > { %vm3136_vm7 = vcmp.ge.s32.totalorder %v3104_v9, 16  ;;  %v4009_v48 = vadd.s32 4294967280, %v3104_v9  ;;  %v4508_v28 = vcvt.f32.s32 %v4507_v55  ;;  %v2814_v0 = vsel %vm2686_vm2, %v3975_v25, %v2654_v36 }
 0x2f3   : > { %vm3326_vm5 = vcmp.lt.s32.totalorder %v2814_v0, 14 }
 0x2f4   : > { %v3200_v24 = vsel %vm3136_vm7, %v4009_v48, %v3104_v9  ;;  %v2974_v53 = vmul.u32 16, %v4508_v28 }
 0x2f5   : > { %vm3264_vm4 = vcmp.lt.s32.totalorder %v3200_v24, 14 }
 0x2f6   : > { %vm3296_vm8 = vmand %vm3232_vm0, %vm3264_vm4  ;;  %v3006_v3 = vsub.s32 %v2750_v39, %v2974_v53  ;;  %v5318_v52 = vpop.eup %5317  ;;  %v3622_v39 = vld [vmem:[%s7469_s8] sm:$0x1] }
 0x2f7   : > { %vm3360_vm9 = vmand %vm3296_vm8, %vm3328_vm11  ;;  %v2234_v61 = vmul.f32 %v5318_v52, %v2138_v18 }
 0x2f8   : > { %v4041_v8 = vsel %vm3360_vm9, 1.0, %v5360_v58  ;;  %vm3038_vm12 = vcmp.lt.s32.totalorder %v3006_v3, 0  ;;  %v3070_v32 = vadd.s32 16, %v3006_v3 }
 0x2f9   : > { %v3456_v21 = vmul.f32 %v4041_v8, %v2236_v26 }
 0x2fa   : > { %v3102_v59 = vsel %vm3038_vm12, %v3070_v32, %v3006_v3 }
 0x2fb   : > { %v4273_v30 = vpack.c.bf16 %v3456_v21, %v3455_v40  ;;  %vm3134_vm13 = vcmp.ge.s32.totalorder %v3102_v59, 16  ;;  %v4007_v50 = vadd.s32 4294967280, %v3102_v59  ;;  %v3694_v46 = vmul.f32 %v3456_v21, %v3456_v21 }
 0x2fd   : > { %4309 = vst [vmem:[%s6914_s30 + $0x78] sm:$0xff] %v4273_v30   ;;  %v3198_v60 = vsel %vm3134_vm13, %v4007_v50, %v3102_v59 }
 0x2fe   : > { %vm3262_vm10 = vcmp.lt.s32.totalorder %v3198_v60, 14 }
 0x2ff   : > { %vm3294_vm1 = vmand %vm3230_vm6, %vm3262_vm10 }
 0x300   : > { %vm3358_vm3 = vmand %vm3294_vm1, %vm3326_vm5 }
 0x301   : > { %v4039_v23 = vsel %vm3358_vm3, 1.0, %v5360_v58 }
 0x302   : > { %v3454_v49 = vmul.f32 %v4039_v23, %v2234_v61 }
 0x304   : > { %v4268_v35 = vpack.c.bf16 %v3454_v49, %v7750_v43  ;;  %v3651_v47 = vadd.f32 %v3650_v63, %v3454_v49  ;;  %v3692_v41 = vmul.f32 %v3454_v49, %v3454_v49 }
 0x306   : > { %4308 = vst [vmem:[%s6914_s30 + $0x70] sm:$0xff] %v4268_v35   ;;  %v3652_v4 = vadd.f32 %v3651_v47, %v3455_v40  ;;  %v3723_v54 = vadd.f32 %v3722_v13, %v3692_v41 }
 0x308   : > { %v3653_v27 = vadd.f32 %v3652_v4, %v3456_v21  ;;  %v3724_v10 = vadd.f32 %v3723_v54, %v3693_v57 }
 0x30a   : > { %v3654_v2 = vrot.slane %v3653_v27, 4  ;;  %v3725_v29 = vadd.f32 %v3724_v10, %v3694_v46 }
 0x30c   : > { %v3655_v20 = vadd.f32 %v3654_v2, %v3653_v27  ;;  %v3726_v58 = vrot.slane %v3725_v29, 4 }
 0x30e   : > { %v3656_v22 = vrot.slane %v3655_v20, 2  ;;  %v3727_v36 = vadd.f32 %v3726_v58, %v3725_v29 }
 0x310   : > { %v3657_v12 = vadd.f32 %v3656_v22, %v3655_v20  ;;  %v3728_v16 = vrot.slane %v3727_v36, 2 }
 0x312   : > { %v3658_v62 = vrot.slane %v3657_v12, 1  ;;  %v3729_v11 = vadd.f32 %v3728_v16, %v3727_v36 }
 0x314   : > { %v3659_v56 = vadd.f32 %v3658_v62, %v3657_v12  ;;  %v3730_v15 = vrot.slane %v3729_v11, 1 }
 0x316   : > { %v3660_v1 = vadd.f32 %v3659_v56, %v3622_v39  ;;  %v3731_v33 = vadd.f32 %v3730_v15, %v3729_v11 }
 0x318   : > { %3661 = vst [vmem:[%s7469_s8] sm:$0x1] %v3660_v1  ;;  %v3732_v43 = vadd.f32 %v3731_v33, %v3662_v45 }
 0x31a   : > { %3733 = vst [vmem:[%s7469_s8 + $0x1] sm:$0x1] %v3732_v43 }
 0x31b PF: > { %s15_s17 = sadd.s32 1, %s5350_s17   ;;  %s7892_s15 = smov %s5346_s16 }
 0x31c   : > { %p12_p8 = scmp.ge.s32.totalorder %s15_s17, 4   ;;  %s7893_s16 = smov %s7895_s18 }
 0x31e   :  { %14 = sbr.rel (!%p12_p8) target bundleno = 2 (0x2), region = 84 }

</bundles_post_ra>
